<compile_context>
chip_gen: v7x
topology: tpu7x:2x2x1
jax: 0.10.0
libtpu: 0.0.40
codegen_flags: <defaults>
</compile_context>

<pallas_src>
import functools

import jax
import jax.numpy as jnp
from jax import lax
from jax.experimental import pallas as pl
from jax.experimental.pallas import tpu as pltpu


def _pick_lane_tile(n, cap):
    """Lane-tile: full dim when small, otherwise a 128-multiple cap."""
    assert cap % 128 == 0
    if n <= cap:
        return n
    return cap


# --------------------------------------------------------------------------
# Kernel 1: fused backbone+neck (patchify conv + 1x1 conv, both + ReLU),
# channels-first:  relu(W2 @ relu(W1 @ patches + b1) + b2)
# --------------------------------------------------------------------------
def _backneck_cf_kernel(x_ref, w1_ref, b1_ref, w2_ref, b2_ref, o_ref):
    x = x_ref[0]                                                   # (K1, thw) bf16
    h = jnp.dot(w1_ref[...], x, preferred_element_type=jnp.float32)
    h = jnp.maximum(h + b1_ref[...], 0.0)
    y = jnp.dot(w2_ref[...], h.astype(jnp.bfloat16),
                preferred_element_type=jnp.float32)
    y = jnp.maximum(y + b2_ref[...], 0.0)
    o_ref[0] = y.astype(o_ref.dtype)                               # (C2, thw)


def pallas_backneck_cf(patches_cf, w1, b1, w2, b2, lane_cap=2048):
    """patches_cf: (btn, K1, HW) -> (btn, C2, HW) bf16, channels-first."""
    btn, k1, hw = patches_cf.shape
    c1 = w1.shape[0]
    c2 = w2.shape[0]
    thw = _pick_lane_tile(hw, lane_cap)
    return pl.pallas_call(
        _backneck_cf_kernel,
        out_shape=jax.ShapeDtypeStruct((btn, c2, hw), jnp.bfloat16),
        grid=(btn, pl.cdiv(hw, thw)),
        in_specs=[
            pl.BlockSpec((1, k1, thw), lambda i, j: (i, 0, j)),
            pl.BlockSpec((c1, k1), lambda i, j: (0, 0)),
            pl.BlockSpec((c1, 1), lambda i, j: (0, 0)),
            pl.BlockSpec((c2, c1), lambda i, j: (0, 0)),
            pl.BlockSpec((c2, 1), lambda i, j: (0, 0)),
        ],
        out_specs=pl.BlockSpec((1, c2, thw), lambda i, j: (i, 0, j)),
        compiler_params=pltpu.CompilerParams(
            dimension_semantics=("parallel", "parallel")),
    )(patches_cf.astype(jnp.bfloat16),
      w1.astype(jnp.bfloat16), b1.reshape(-1, 1).astype(jnp.float32),
      w2.astype(jnp.bfloat16), b2.reshape(-1, 1).astype(jnp.float32))


# --------------------------------------------------------------------------
# Kernel 2: camera projection + fused epilogue (perspective divide, clip,
# round, valid mask) -> int32 pixel index stream (-1 == invalid).
# Tiled over the Npts (lane) axis; projection done with VPU broadcasts.
# --------------------------------------------------------------------------
def _proj_idx_kernel(mat_ref, pts_ref, idx_ref, *, Hf, Wf):
    P = mat_ref[0]                                                 # (3, 4) f32
    pts = pts_ref[...]                                             # (4, tn) f32
    proj = (P[:, 0:1] * pts[0:1, :] + P[:, 1:2] * pts[1:2, :]
            + P[:, 2:3] * pts[2:3, :] + P[:, 3:4] * pts[3:4, :])   # (3, tn)
    u, v, d = proj[0:1, :], proj[1:2, :], proj[2:3, :]
    safe_d = jnp.where(jnp.abs(d) > 1e-6, d, 1e-6)
    u = u / safe_d
    v = v / safe_d
    valid = ((d > 0.1) & (u >= 0.0) & (u <= Wf - 1)
             & (v >= 0.0) & (v <= Hf - 1))
    ui = jnp.clip(jnp.round(u), 0, Wf - 1).astype(jnp.int32)
    vi = jnp.clip(jnp.round(v), 0, Hf - 1).astype(jnp.int32)
    lin = vi * Wf + ui
    idx_ref[...] = jnp.where(valid, lin, -1).reshape(idx_ref.shape)


def pallas_project_idx(mats, pts_hom_T, Hf, Wf, lane_cap=8192):
    """mats: (bt*n, 3, 4); pts_hom_T: (4, Npts) -> idx (bt*n, 1, Npts) int32."""
    btn = mats.shape[0]
    npts = pts_hom_T.shape[1]
    tn = _pick_lane_tile(npts, lane_cap)
    kernel = functools.partial(_proj_idx_kernel, Hf=int(Hf), Wf=int(Wf))
    return pl.pallas_call(
        kernel,
        out_shape=jax.ShapeDtypeStruct((btn, 1, npts), jnp.int32),
        grid=(btn, pl.cdiv(npts, tn)),
        in_specs=[
            pl.BlockSpec((1, 3, 4), lambda c, j: (c, 0, 0)),
            pl.BlockSpec((4, tn), lambda c, j: (0, j)),
        ],
        out_specs=pl.BlockSpec((1, 1, tn), lambda c, j: (c, 0, j)),
        compiler_params=pltpu.CompilerParams(
            dimension_semantics=("parallel", "parallel")),
    )(mats.astype(jnp.float32), pts_hom_T.astype(jnp.float32))


# --------------------------------------------------------------------------
# Kernel 3: view transform = one-hot MXU gather + valid mask + pillar (Z)
# pooling + camera-sum accumulation + mean normalization.
#   grid = (bt, xy_blocks, cams); cams is the reduction axis (last, arbitrary)
#   per step: onehot_T (HW, tp) built from lane-major idx via sublane iota,
#             gathered   = feat(C,HW) @ onehot_T            (MXU)
#             pillar sum = gathered @ poolmat(tp, txy)       (MXU)
# --------------------------------------------------------------------------
def _gather_pool_kernel(idx_ref, feat_ref, pool_ref, o_ref, acc_ref, cnt_ref):
    cam = pl.program_id(2)

    @pl.when(cam == 0)
    def _():
        acc_ref[...] = jnp.zeros_like(acc_ref)
        cnt_ref[...] = jnp.zeros_like(cnt_ref)

    hw = feat_ref.shape[3]
    tp = idx_ref.shape[-1]

    idx = idx_ref[...].reshape(1, tp)                               # int32, -1 == invalid
    hw_iota = lax.broadcasted_iota(jnp.int32, (hw, tp), 0)
    onehot_t = jnp.where(hw_iota == idx, 1.0, 0.0).astype(jnp.bfloat16)   # (HW, tp)
    valid = jnp.where(idx >= 0, 1.0, 0.0).astype(jnp.bfloat16)            # (1, tp)

    feat = feat_ref[0, 0]                                           # (C, HW) bf16
    g = jnp.dot(feat, onehot_t, preferred_element_type=jnp.float32)       # (C, tp)
    pm = pool_ref[...]                                              # (tp, txy) bf16
    acc_ref[...] += jnp.dot(g.astype(jnp.bfloat16), pm,
                            preferred_element_type=jnp.float32)            # (C, txy)
    cnt_ref[...] += jnp.dot(valid, pm, preferred_element_type=jnp.float32)  # (1, txy)

    @pl.when(cam == pl.num_programs(2) - 1)
    def _():
        o_ref[0] = (acc_ref[...] / jnp.maximum(cnt_ref[...], 1.0)
                    ).astype(o_ref.dtype)


def pallas_gather_pool_cf(idx, feat_cf, X, Y, Z, lane_cap=256):
    """idx: (bt, n, 1, X*Y*Z) int32; feat_cf: (bt, n, C, HW) bf16.

    Returns pooled BEV features channels-first: (bt, C, X*Y) f32."""
    bt, n, _, npts = idx.shape
    C, hw = feat_cf.shape[2], feat_cf.shape[3]
    xy = X * Y
    assert npts == xy * Z
    txy = _pick_lane_tile(xy, lane_cap)
    tp = txy * Z
    # constant pillar-pooling matrix: poolmat[p, q] = 1 iff p // Z == q
    poolmat = (jnp.arange(tp, dtype=jnp.int32)[:, None] // Z
               == jnp.arange(txy, dtype=jnp.int32)[None, :]).astype(jnp.bfloat16)
    return pl.pallas_call(
        _gather_pool_kernel,
        out_shape=jax.ShapeDtypeStruct((bt, C, xy), jnp.float32),
        grid=(bt, pl.cdiv(xy, txy), n),
        in_specs=[
            pl.BlockSpec((1, 1, 1, tp), lambda b, q, cam: (b, cam, 0, q)),
            pl.BlockSpec((1, 1, C, hw), lambda b, q, cam: (b, cam, 0, 0)),
            pl.BlockSpec((tp, txy), lambda b, q, cam: (0, 0)),
        ],
        out_specs=pl.BlockSpec((1, C, txy), lambda b, q, cam: (b, 0, q)),
        scratch_shapes=[pltpu.VMEM((C, txy), jnp.float32),
                        pltpu.VMEM((1, txy), jnp.float32)],
        compiler_params=pltpu.CompilerParams(
            dimension_semantics=("parallel", "parallel", "arbitrary")),
    )(idx, feat_cf, poolmat)


# --------------------------------------------------------------------------
# Kernel 4: fused decoder + head (two 1x1 convs), channels-first.
# Head channel count is 1, so the output block (1, txy) is lane-dense.
# --------------------------------------------------------------------------
def _dechead_cf_kernel(x_ref, wd_ref, bd_ref, wh_ref, bh_ref, o_ref):
    x = x_ref[0].astype(jnp.bfloat16)                               # (C, t)
    h = jnp.dot(wd_ref[...], x, preferred_element_type=jnp.float32)
    h = jnp.maximum(h + bd_ref[...], 0.0)
    y = jnp.dot(wh_ref[...], h.astype(jnp.bfloat16),
                preferred_element_type=jnp.float32)
    y = y + bh_ref[...]
    o_ref[0] = y.astype(o_ref.dtype)                                # (1, t)


def pallas_decoder_head_cf(bev_cf, wd, bd, wh, bh, lane_cap=2048):
    """bev_cf: (bt, C, XY) f32 -> (bt, 1, XY) f32."""
    bt, C, xy = bev_cf.shape
    t = _pick_lane_tile(xy, lane_cap)
    return pl.pallas_call(
        _dechead_cf_kernel,
        out_shape=jax.ShapeDtypeStruct((bt, 1, xy), jnp.float32),
        grid=(bt, pl.cdiv(xy, t)),
        in_specs=[
            pl.BlockSpec((1, C, t), lambda i, j: (i, 0, j)),
            pl.BlockSpec((C, C), lambda i, j: (0, 0)),
            pl.BlockSpec((C, 1), lambda i, j: (0, 0)),
            pl.BlockSpec((1, C), lambda i, j: (0, 0)),
            pl.BlockSpec((1, 1), lambda i, j: (0, 0)),
        ],
        out_specs=pl.BlockSpec((1, 1, t), lambda i, j: (i, 0, j)),
        compiler_params=pltpu.CompilerParams(
            dimension_semantics=("parallel", "parallel")),
    )(bev_cf,
      wd.astype(jnp.bfloat16), bd.reshape(-1, 1).astype(jnp.float32),
      wh.astype(jnp.bfloat16), bh.reshape(1, 1).astype(jnp.float32))


# --------------------------------------------------------------------------
# CoordSelector (dense voxel coordinate buffers)
# --------------------------------------------------------------------------
class CoordSelector:
    def __init__(self, spatial_kwargs, voxel_ref='spatial'):
        self.spatial_bounds = spatial_kwargs['spatial_bounds']
        self.spatial_range = spatial_kwargs['projector']
        assert voxel_ref in ('spatial', 'camera')
        self.voxel_ref = voxel_ref
        X, Y, Z = self.spatial_range
        XMIN, XMAX, YMIN, YMAX, ZMIN, ZMAX = self.spatial_bounds
        gx = jnp.linspace(XMIN, XMAX, X, dtype=jnp.float32)
        gy = jnp.linspace(YMIN, YMAX, Y, dtype=jnp.float32)
        gz = jnp.linspace(ZMIN, ZMAX, Z, dtype=jnp.float32)
        coords = jnp.stack(jnp.meshgrid(gx, gy, gz, indexing='ij'))   # (3,X,Y,Z)
        self.dense_vox_coords = jnp.flip(coords, axis=(1, 2)).astype(jnp.float32)
        idx = jnp.stack(jnp.meshgrid(jnp.arange(X), jnp.arange(Y),
                                     jnp.arange(Z), indexing='ij'))
        self.dense_vox_idx = jnp.flip(idx, axis=(1, 2)).astype(jnp.int32)

    def get_dense_coords(self, bt):
        vc = jnp.broadcast_to(self.dense_vox_coords[None],
                              (bt,) + self.dense_vox_coords.shape)
        vi = jnp.broadcast_to(self.dense_vox_idx[None],
                              (bt,) + self.dense_vox_idx.shape)
        return {'vox_coords': vc, 'vox_idx': vi}


def update_intrinsics(intrins, scale):
    # scale fx, fy, cx, cy (rows 0 and 1 of the 3x3 intrinsics)
    s = jnp.array([[scale], [scale], [1.0]], jnp.float32)
    return intrins * s


def _im2col_cf(imgs_flat, p):
    """(btn, c, h, w) -> channels-first patches (btn, c*p*p, hf*wf)."""
    btn, c, h, w = imgs_flat.shape
    hf, wf = h // p, w // p
    x = imgs_flat.reshape(btn, c, hf, p, wf, p)
    x = jnp.transpose(x, (0, 1, 3, 5, 2, 4))             # (btn, c, p, p, hf, wf)
    return x.reshape(btn, c * p * p, hf * wf), hf, wf


# --------------------------------------------------------------------------
# Network
# --------------------------------------------------------------------------
class Network:
    def __init__(self, key, in_c=3, c_backbone=32, c_feat=32, downsample=4,
                 in_shape=None, voxel_ref='spatial'):
        self.downsample = downsample
        self.c_feat = c_feat
        self.temporal = None
        self.num_pass = 1
        self.coord_selector = CoordSelector(in_shape, voxel_ref)

        k = jax.random.split(key, 8)
        kdim = in_c * downsample * downsample
        # weights stored in native conv (C_out, C_in*) / channels-first layout
        self.w_backbone = jax.random.normal(k[0], (c_backbone, kdim), jnp.float32) / jnp.sqrt(kdim)
        self.b_backbone = 0.01 * jax.random.normal(k[1], (c_backbone,), jnp.float32)
        self.w_neck = jax.random.normal(k[2], (c_feat, c_backbone), jnp.float32) / jnp.sqrt(c_backbone)
        self.b_neck = 0.01 * jax.random.normal(k[3], (c_feat,), jnp.float32)
        self.w_dec = jax.random.normal(k[4], (c_feat, c_feat), jnp.float32) / jnp.sqrt(c_feat)
        self.b_dec = 0.01 * jax.random.normal(k[5], (c_feat,), jnp.float32)
        self.w_head = jax.random.normal(k[6], (1, c_feat), jnp.float32) / jnp.sqrt(c_feat)
        self.b_head = 0.01 * jax.random.normal(k[7], (1,), jnp.float32)

    # ----- backbone + neck (single fused Pallas kernel, channels-first) ----
    def forward_backneck(self, imgs):
        b, t, n, c, h, w = imgs.shape
        btn = b * t * n
        patches_cf, hf, wf = _im2col_cf(imgs.reshape(btn, c, h, w), self.downsample)
        feat_cf = pallas_backneck_cf(patches_cf, self.w_backbone, self.b_backbone,
                                     self.w_neck, self.b_neck)      # (btn, C, HW) bf16
        return feat_cf.reshape(b * t, n, self.c_feat, hf * wf), hf, wf

    # ----- synthetic CamProjector matrices (pinhole, fused with BEV aug) ---
    def _build_proj_mats(self, rots, trans, intrins, bev_aug, egoTin_to_seq, bt, n):
        Rt = jnp.swapaxes(rots, -1, -2)                              # ego -> cam rotation
        tvec = trans[..., 0]
        ext = jnp.concatenate(
            [Rt, -jnp.einsum('bnij,bnj->bni', Rt, tvec)[..., None]], axis=-1)   # (bt,n,3,4)
        P = jnp.einsum('bnij,bnjk->bnik', intrins, ext)              # (bt,n,3,4)
        aug = jnp.einsum('bij,btjk->btik', egoTin_to_seq[:, 0],
                         bev_aug).reshape(bt, 4, 4)
        P_full = jnp.einsum('bnij,bjk->bnik', P, aug)                # (bt,n,3,4)
        return P_full.reshape(bt * n, 3, 4)

    def forward_temporal(self, bev_feats):
        if not self.temporal:
            return bev_feats
        return bev_feats

    # ----- decoder + heads (fused, channels-first, lane-dense head out) ----
    def forward_decoder_heads(self, bev_cf, b, nq, X, Y):
        out = pallas_decoder_head_cf(bev_cf, self.w_dec, self.b_dec,
                                     self.w_head, self.b_head)       # (bt, 1, XY)
        return {'binimg': out.reshape(b, nq, 1, X, Y)}

    # ----- full forward -----------------------------------------------------
    def forward(self, imgs, rots, trans, intrins, bev_aug, egoTin_to_seq):
        b, t, n, c, h, w = imgs.shape
        nq = egoTin_to_seq.shape[1]
        assert egoTin_to_seq.shape[0] == b
        assert egoTin_to_seq.shape[2] == 4 and egoTin_to_seq.shape[3] == 4
        bt = b * t

        # backbone + neck (fused Pallas kernel)
        feat_cf, hf, wf = self.forward_backneck(imgs)                # (bt,n,C,HW)

        # prepare view transform matrices (fuse b,t) + downscale intrinsics
        rots_ = rots.reshape(bt, n, 3, 3)
        trans_ = trans.reshape(bt, n, 3, 1)
        intrins_ = update_intrinsics(intrins.reshape(bt, n, 3, 3), 1.0 / self.downsample)

        # dense voxel coordinates + fused projection/index kernel
        X, Y, Z = self.coord_selector.spatial_range
        dict_vox = self.coord_selector.get_dense_coords(bt)
        pts = dict_vox['vox_coords'][0].reshape(3, -1)               # (3, Npts)
        npts = pts.shape[1]
        pts_hom_T = jnp.concatenate(
            [pts, jnp.ones((1, npts), jnp.float32)], axis=0)         # (4, Npts)
        mats = self._build_proj_mats(rots_, trans_, intrins_, bev_aug,
                                     egoTin_to_seq, bt, n)           # (bt*n, 3, 4)
        idx = pallas_project_idx(mats, pts_hom_T, hf, wf)            # (bt*n,1,Npts) i32
        idx = idx.reshape(bt, n, 1, npts)

        # view transform: one-hot MXU gather + pillar pooling (Pallas)
        bev_cf = pallas_gather_pool_cf(idx, feat_cf, X, Y, Z)        # (bt, C, X*Y)

        assert t == nq, "synthetic setup assumes nq == t"
        bev_cf = self.forward_temporal(bev_cf)                       # identity
        dict_out = self.forward_decoder_heads(bev_cf, b, nq, X, Y)
        return {'bev': dict_out}


if __name__ == "__main__":
    key = jax.random.PRNGKey(0)
    b, t, n, c, h, w = 2, 1, 2, 3, 16, 16
    nq = 1
    X, Y, Z = 16, 16, 4
    in_shape = {'spatial_bounds': (-4.0, 4.0, -4.0, 4.0, 0.0, 2.0),
                'projector': (X, Y, Z)}

    k_param, k_data = jax.random.split(key)
    net = Network(k_param, in_c=c, c_backbone=32, c_feat=32, downsample=4,
                  in_shape=in_shape, voxel_ref='spatial')

    imgs = jax.random.normal(k_data, (b, t, n, c, h, w), jnp.float32)
    # cam -> ego rotation (cam z forward -> ego x, cam x -> -ego y, cam y -> -ego z)
    R = jnp.array([[0., 0., 1.], [-1., 0., 0.], [0., -1., 0.]], jnp.float32)
    rots = jnp.broadcast_to(R, (b, t, n, 3, 3))
    trans = jnp.broadcast_to(jnp.array([0., 0., 1.5], jnp.float32)[:, None],
                             (b, t, n, 3, 1))
    K = jnp.array([[float(w), 0., w / 2.], [0., float(w), h / 2.], [0., 0., 1.]],
                  jnp.float32)
    intrins = jnp.broadcast_to(K, (b, t, n, 3, 3))
    bev_aug = jnp.broadcast_to(jnp.eye(4, dtype=jnp.float32), (b, t, 4, 4))
    egoTin_to_seq = jnp.broadcast_to(jnp.eye(4, dtype=jnp.float32), (b, nq, 4, 4))

    forward_jit = jax.jit(net.forward)
    out = forward_jit(imgs, rots, trans, intrins, bev_aug, egoTin_to_seq)
    bev = out['bev']['binimg']
    jax.block_until_ready(bev)
    assert bev.shape == (b, nq, 1, X, Y), bev.shape
    assert bev.dtype == jnp.float32
    assert bool(jnp.all(jnp.isfinite(bev)))
    print("KERNEL_OK")
</pallas_src>

<mosaic_0001>
module attributes {stable_mosaic.version = 11 : i64} {
  func.func @_proj_idx_kernel(%arg0: i32, %arg1: i32, %arg2: memref<1x3x4xf32, #tpu.memory_space<vmem>>, %arg3: memref<4x1024xf32, #tpu.memory_space<vmem>>, %arg4: memref<1x1x1024xi32, #tpu.memory_space<vmem>>) attributes {dimension_semantics = [#tpu.dimension_semantics<parallel>, #tpu.dimension_semantics<parallel>], iteration_bounds = array<i64: 4, 1>, scalar_prefetch = 0 : i64, scratch_operands = 0 : i64, tpu.core_type = #tpu.core_type<tc>, window_params = [{transform_indices = @transform_0, window_bounds = array<i64: 1, 3, 4>}, {transform_indices = @transform_1, window_bounds = array<i64: 4, 1024>}, {transform_indices = @transform_2, window_bounds = array<i64: 1, 1, 1024>}]} {
    %c0 = arith.constant 0 : index
    %c0_0 = arith.constant 0 : index
    %c0_1 = arith.constant 0 : index
    %0 = vector.load %arg2[%c0, %c0_0, %c0_1] : memref<1x3x4xf32, #tpu.memory_space<vmem>>, vector<1x3x4xf32>
    %1 = vector.shape_cast %0 : vector<1x3x4xf32> to vector<3x4xf32>
    %c0_2 = arith.constant 0 : index
    %c0_3 = arith.constant 0 : index
    %2 = vector.load %arg3[%c0_2, %c0_3] : memref<4x1024xf32, #tpu.memory_space<vmem>>, vector<4x1024xf32>
    %3 = vector.extract_strided_slice %1 {offsets = [0, 0], sizes = [3, 1], strides = [1, 1]} : vector<3x4xf32> to vector<3x1xf32>
    %4 = vector.extract_strided_slice %2 {offsets = [0, 0], sizes = [1, 1024], strides = [1, 1]} : vector<4x1024xf32> to vector<1x1024xf32>
    %5 = vector.broadcast %3 : vector<3x1xf32> to vector<3x1024xf32>
    %6 = vector.broadcast %4 : vector<1x1024xf32> to vector<3x1024xf32>
    %7 = arith.mulf %5, %6 : vector<3x1024xf32>
    %8 = vector.extract_strided_slice %1 {offsets = [0, 1], sizes = [3, 1], strides = [1, 1]} : vector<3x4xf32> to vector<3x1xf32>
    %9 = vector.extract_strided_slice %2 {offsets = [1, 0], sizes = [1, 1024], strides = [1, 1]} : vector<4x1024xf32> to vector<1x1024xf32>
    %10 = vector.broadcast %8 : vector<3x1xf32> to vector<3x1024xf32>
    %11 = vector.broadcast %9 : vector<1x1024xf32> to vector<3x1024xf32>
    %12 = arith.mulf %10, %11 : vector<3x1024xf32>
    %13 = arith.addf %7, %12 : vector<3x1024xf32>
    %14 = vector.extract_strided_slice %1 {offsets = [0, 2], sizes = [3, 1], strides = [1, 1]} : vector<3x4xf32> to vector<3x1xf32>
    %15 = vector.extract_strided_slice %2 {offsets = [2, 0], sizes = [1, 1024], strides = [1, 1]} : vector<4x1024xf32> to vector<1x1024xf32>
    %16 = vector.broadcast %14 : vector<3x1xf32> to vector<3x1024xf32>
    %17 = vector.broadcast %15 : vector<1x1024xf32> to vector<3x1024xf32>
    %18 = arith.mulf %16, %17 : vector<3x1024xf32>
    %19 = arith.addf %13, %18 : vector<3x1024xf32>
    %20 = vector.extract_strided_slice %1 {offsets = [0, 3], sizes = [3, 1], strides = [1, 1]} : vector<3x4xf32> to vector<3x1xf32>
    %21 = vector.extract_strided_slice %2 {offsets = [3, 0], sizes = [1, 1024], strides = [1, 1]} : vector<4x1024xf32> to vector<1x1024xf32>
    %22 = vector.broadcast %20 : vector<3x1xf32> to vector<3x1024xf32>
    %23 = vector.broadcast %21 : vector<1x1024xf32> to vector<3x1024xf32>
    %24 = arith.mulf %22, %23 : vector<3x1024xf32>
    %25 = arith.addf %19, %24 : vector<3x1024xf32>
    %26 = vector.extract_strided_slice %25 {offsets = [0, 0], sizes = [1, 1024], strides = [1, 1]} : vector<3x1024xf32> to vector<1x1024xf32>
    %27 = vector.extract_strided_slice %25 {offsets = [1, 0], sizes = [1, 1024], strides = [1, 1]} : vector<3x1024xf32> to vector<1x1024xf32>
    %28 = vector.extract_strided_slice %25 {offsets = [2, 0], sizes = [1, 1024], strides = [1, 1]} : vector<3x1024xf32> to vector<1x1024xf32>
    %29 = math.absf %28 : vector<1x1024xf32>
    %cst = arith.constant 9.99999997E-7 : f32
    %30 = vector.broadcast %cst : f32 to vector<1x1024xf32>
    %31 = arith.cmpf ogt, %29, %30 : vector<1x1024xf32>
    %cst_4 = arith.constant 9.99999997E-7 : f32
    %32 = vector.broadcast %cst_4 : f32 to vector<1x1024xf32>
    %33 = arith.select %31, %28, %32 : vector<1x1024xi1>, vector<1x1024xf32>
    %34 = arith.divf %26, %33 : vector<1x1024xf32>
    %35 = arith.divf %27, %33 : vector<1x1024xf32>
    %cst_5 = arith.constant 1.000000e-01 : f32
    %36 = vector.broadcast %cst_5 : f32 to vector<1x1024xf32>
    %37 = arith.cmpf ogt, %28, %36 : vector<1x1024xf32>
    %cst_6 = arith.constant 0.000000e+00 : f32
    %38 = vector.broadcast %cst_6 : f32 to vector<1x1024xf32>
    %39 = arith.cmpf oge, %34, %38 : vector<1x1024xf32>
    %40 = arith.andi %37, %39 : vector<1x1024xi1>
    %cst_7 = arith.constant 3.000000e+00 : f32
    %41 = vector.broadcast %cst_7 : f32 to vector<1x1024xf32>
    %42 = arith.cmpf ole, %34, %41 : vector<1x1024xf32>
    %43 = arith.andi %40, %42 : vector<1x1024xi1>
    %cst_8 = arith.constant 0.000000e+00 : f32
    %44 = vector.broadcast %cst_8 : f32 to vector<1x1024xf32>
    %45 = arith.cmpf oge, %35, %44 : vector<1x1024xf32>
    %46 = arith.andi %43, %45 : vector<1x1024xi1>
    %cst_9 = arith.constant 3.000000e+00 : f32
    %47 = vector.broadcast %cst_9 : f32 to vector<1x1024xf32>
    %48 = arith.cmpf ole, %35, %47 : vector<1x1024xf32>
    %49 = arith.andi %46, %48 : vector<1x1024xi1>
    %50 = math.roundeven %34 : vector<1x1024xf32>
    %c0_i32 = arith.constant 0 : i32
    %c3_i32 = arith.constant 3 : i32
    %51 = arith.sitofp %c0_i32 : i32 to f32
    %52 = vector.broadcast %51 : f32 to vector<1x1024xf32>
    %53 = arith.maximumf %52, %50 : vector<1x1024xf32>
    %54 = arith.sitofp %c3_i32 : i32 to f32
    %55 = vector.broadcast %54 : f32 to vector<1x1024xf32>
    %56 = arith.minimumf %55, %53 : vector<1x1024xf32>
    %57 = arith.fptosi %56 : vector<1x1024xf32> to vector<1x1024xi32>
    %58 = math.roundeven %35 : vector<1x1024xf32>
    %c0_i32_10 = arith.constant 0 : i32
    %c3_i32_11 = arith.constant 3 : i32
    %59 = arith.sitofp %c0_i32_10 : i32 to f32
    %60 = vector.broadcast %59 : f32 to vector<1x1024xf32>
    %61 = arith.maximumf %60, %58 : vector<1x1024xf32>
    %62 = arith.sitofp %c3_i32_11 : i32 to f32
    %63 = vector.broadcast %62 : f32 to vector<1x1024xf32>
    %64 = arith.minimumf %63, %61 : vector<1x1024xf32>
    %65 = arith.fptosi %64 : vector<1x1024xf32> to vector<1x1024xi32>
    %c4_i32 = arith.constant 4 : i32
    %66 = vector.broadcast %c4_i32 : i32 to vector<1x1024xi32>
    %67 = arith.muli %65, %66 : vector<1x1024xi32>
    %68 = arith.addi %67, %57 : vector<1x1024xi32>
    %c-1_i32 = arith.constant -1 : i32
    %69 = vector.broadcast %c-1_i32 : i32 to vector<1x1024xi32>
    %70 = arith.select %49, %68, %69 : vector<1x1024xi1>, vector<1x1024xi32>
    %71 = vector.shape_cast %70 : vector<1x1024xi32> to vector<1x1x1024xi32>
    %c0_12 = arith.constant 0 : index
    %c0_13 = arith.constant 0 : index
    %c0_14 = arith.constant 0 : index
    %72 = vector.load %arg4[%c0_12, %c0_13, %c0_14] : memref<1x1x1024xi32, #tpu.memory_space<vmem>>, vector<1x1x1024xi32>
    tpu.vector_store %arg4[%c0_12, %c0_13, %c0_14], %71 {strides = array<i32>} : memref<1x1x1024xi32, #tpu.memory_space<vmem>>, vector<1x1x1024xi32>,
    return
  }
  func.func @transform_0(%arg0: i32, %arg1: i32) -> (i32, i32, i32) {
    %c0_i32 = arith.constant 0 : i32
    %c0_i32_0 = arith.constant 0 : i32
    %c0_i32_1 = arith.constant 0 : i32
    return %arg0, %c0_i32, %c0_i32_0 : i32, i32, i32
  }
  func.func @transform_1(%arg0: i32, %arg1: i32) -> (i32, i32) {
    %c0_i32 = arith.constant 0 : i32
    %c0_i32_0 = arith.constant 0 : i32
    return %c0_i32, %arg1 : i32, i32
  }
  func.func @transform_2(%arg0: i32, %arg1: i32) -> (i32, i32, i32) {
    %c0_i32 = arith.constant 0 : i32
    %c0_i32_0 = arith.constant 0 : i32
    return %arg0, %c0_i32, %arg1 : i32, i32, i32
  }
}

module attributes {stable_mosaic.version = 11 : i64} {
  func.func @_backneck_cf_kernel(%arg0: i32, %arg1: i32, %arg2: memref<1x48x16xbf16, #tpu.memory_space<vmem>>, %arg3: memref<32x48xbf16, #tpu.memory_space<vmem>>, %arg4: memref<32x1xf32, #tpu.memory_space<vmem>>, %arg5: memref<32x32xbf16, #tpu.memory_space<vmem>>, %arg6: memref<32x1xf32, #tpu.memory_space<vmem>>, %arg7: memref<1x32x16xbf16, #tpu.memory_space<vmem>>) attributes {dimension_semantics = [#tpu.dimension_semantics<parallel>, #tpu.dimension_semantics<parallel>], iteration_bounds = array<i64: 4, 1>, scalar_prefetch = 0 : i64, scratch_operands = 0 : i64, tpu.core_type = #tpu.core_type<tc>, window_params = [{transform_indices = @transform_0, window_bounds = array<i64: 1, 48, 16>}, {pipeline_mode = #tpu.pipeline_mode<synchronous>, transform_indices = @transform_1, window_bounds = array<i64: 32, 48>}, {pipeline_mode = #tpu.pipeline_mode<synchronous>, transform_indices = @transform_2, window_bounds = array<i64: 32, 1>}, {pipeline_mode = #tpu.pipeline_mode<synchronous>, transform_indices = @transform_3, window_bounds = array<i64: 32, 32>}, {pipeline_mode = #tpu.pipeline_mode<synchronous>, transform_indices = @transform_4, window_bounds = array<i64: 32, 1>}, {transform_indices = @transform_5, window_bounds = array<i64: 1, 32, 16>}]} {
    %c0 = arith.constant 0 : index
    %c0_0 = arith.constant 0 : index
    %c0_1 = arith.constant 0 : index
    %0 = vector.load %arg2[%c0, %c0_0, %c0_1] : memref<1x48x16xbf16, #tpu.memory_space<vmem>>, vector<1x48x16xbf16>
    %1 = vector.shape_cast %0 : vector<1x48x16xbf16> to vector<48x16xbf16>
    %c0_2 = arith.constant 0 : index
    %c0_3 = arith.constant 0 : index
    %2 = vector.load %arg3[%c0_2, %c0_3] : memref<32x48xbf16, #tpu.memory_space<vmem>>, vector<32x48xbf16>
    %cst = arith.constant dense<0.000000e+00> : vector<32x16xf32>
    %3 = tpu.matmul %2, %1, %cst {dimension_numbers = #tpu.dot_dimension_numbers<[1], [0], [0], [1], [0, 0, 1, 1], [], []>} : vector<32x48xbf16>, vector<48x16xbf16>, vector<32x16xf32> -> vector<32x16xf32>
    %c0_4 = arith.constant 0 : index
    %c0_5 = arith.constant 0 : index
    %4 = vector.load %arg4[%c0_4, %c0_5] : memref<32x1xf32, #tpu.memory_space<vmem>>, vector<32x1xf32>
    %5 = vector.broadcast %4 : vector<32x1xf32> to vector<32x16xf32>
    %6 = arith.addf %3, %5 : vector<32x16xf32>
    %cst_6 = arith.constant 0.000000e+00 : f32
    %7 = vector.broadcast %cst_6 : f32 to vector<32x16xf32>
    %8 = arith.maximumf %6, %7 : vector<32x16xf32>
    %c0_7 = arith.constant 0 : index
    %c0_8 = arith.constant 0 : index
    %9 = vector.load %arg5[%c0_7, %c0_8] : memref<32x32xbf16, #tpu.memory_space<vmem>>, vector<32x32xbf16>
    %10 = arith.truncf %8 : vector<32x16xf32> to vector<32x16xbf16>
    %cst_9 = arith.constant dense<0.000000e+00> : vector<32x16xf32>
    %11 = tpu.matmul %9, %10, %cst_9 {dimension_numbers = #tpu.dot_dimension_numbers<[1], [0], [0], [1], [0, 0, 1, 1], [], []>} : vector<32x32xbf16>, vector<32x16xbf16>, vector<32x16xf32> -> vector<32x16xf32>
    %c0_10 = arith.constant 0 : index
    %c0_11 = arith.constant 0 : index
    %12 = vector.load %arg6[%c0_10, %c0_11] : memref<32x1xf32, #tpu.memory_space<vmem>>, vector<32x1xf32>
    %13 = vector.broadcast %12 : vector<32x1xf32> to vector<32x16xf32>
    %14 = arith.addf %11, %13 : vector<32x16xf32>
    %cst_12 = arith.constant 0.000000e+00 : f32
    %15 = vector.broadcast %cst_12 : f32 to vector<32x16xf32>
    %16 = arith.maximumf %14, %15 : vector<32x16xf32>
    %17 = arith.truncf %16 : vector<32x16xf32> to vector<32x16xbf16>
    %c0_13 = arith.constant 0 : index
    %c0_14 = arith.constant 0 : index
    %c0_15 = arith.constant 0 : index
    %18 = vector.load %arg7[%c0_13, %c0_14, %c0_15] : memref<1x32x16xbf16, #tpu.memory_space<vmem>>, vector<1x32x16xbf16>
    %19 = vector.shape_cast %18 : vector<1x32x16xbf16> to vector<32x16xbf16>
    %20 = vector.shape_cast %17 : vector<32x16xbf16> to vector<1x32x16xbf16>
    tpu.vector_store %arg7[%c0_13, %c0_14, %c0_15], %20 {strides = array<i32>} : memref<1x32x16xbf16, #tpu.memory_space<vmem>>, vector<1x32x16xbf16>,
    return
  }
  func.func @transform_0(%arg0: i32, %arg1: i32) -> (i32, i32, i32) {
    %c0_i32 = arith.constant 0 : i32
    %c0_i32_0 = arith.constant 0 : i32
    return %arg0, %c0_i32, %arg1 : i32, i32, i32
  }
  func.func @transform_1(%arg0: i32, %arg1: i32) -> (i32, i32) {
    %c0_i32 = arith.constant 0 : i32
    %c0_i32_0 = arith.constant 0 : i32
    %c0_i32_1 = arith.constant 0 : i32
    return %c0_i32, %c0_i32_0 : i32, i32
  }
  func.func @transform_2(%arg0: i32, %arg1: i32) -> (i32, i32) {
    %c0_i32 = arith.constant 0 : i32
    %c0_i32_0 = arith.constant 0 : i32
    %c0_i32_1 = arith.constant 0 : i32
    return %c0_i32, %c0_i32_0 : i32, i32
  }
  func.func @transform_3(%arg0: i32, %arg1: i32) -> (i32, i32) {
    %c0_i32 = arith.constant 0 : i32
    %c0_i32_0 = arith.constant 0 : i32
    %c0_i32_1 = arith.constant 0 : i32
    return %c0_i32, %c0_i32_0 : i32, i32
  }
  func.func @transform_4(%arg0: i32, %arg1: i32) -> (i32, i32) {
    %c0_i32 = arith.constant 0 : i32
    %c0_i32_0 = arith.constant 0 : i32
    %c0_i32_1 = arith.constant 0 : i32
    return %c0_i32, %c0_i32_0 : i32, i32
  }
  func.func @transform_5(%arg0: i32, %arg1: i32) -> (i32, i32, i32) {
    %c0_i32 = arith.constant 0 : i32
    %c0_i32_0 = arith.constant 0 : i32
    return %arg0, %c0_i32, %arg1 : i32, i32, i32
  }
}

module attributes {stable_mosaic.version = 11 : i64} {
  func.func @_gather_pool_kernel(%arg0: i32, %arg1: i32, %arg2: i32, %arg3: memref<1x1x1x1024xi32, #tpu.memory_space<vmem>>, %arg4: memref<1x1x32x16xbf16, #tpu.memory_space<vmem>>, %arg5: memref<1024x256xbf16, #tpu.memory_space<vmem>>, %arg6: memref<1x32x256xf32, #tpu.memory_space<vmem>>, %arg7: memref<32x256xf32, #tpu.memory_space<vmem>>, %arg8: memref<1x256xf32, #tpu.memory_space<vmem>>) attributes {dimension_semantics = [#tpu.dimension_semantics<parallel>, #tpu.dimension_semantics<parallel>, #tpu.dimension_semantics<arbitrary>], iteration_bounds = array<i64: 2, 1, 2>, scalar_prefetch = 0 : i64, scratch_operands = 2 : i64, tpu.core_type = #tpu.core_type<tc>, window_params = [{transform_indices = @transform_0, window_bounds = array<i64: 1, 1, 1, 1024>}, {transform_indices = @transform_1, window_bounds = array<i64: 1, 1, 32, 16>}, {pipeline_mode = #tpu.pipeline_mode<synchronous>, transform_indices = @transform_2, window_bounds = array<i64: 1024, 256>}, {transform_indices = @transform_3, window_bounds = array<i64: 1, 32, 256>}]} {
    %c0_i32 = arith.constant 0 : i32
    %0 = arith.cmpi eq, %arg2, %c0_i32 : i32
    %1 = arith.extui %0 : i1 to i32
    %c0_i32_0 = arith.constant 0 : i32
    %2 = arith.cmpi ne, %1, %c0_i32_0 : i32
    scf.if %2 {
      %cst_26 = arith.constant 0.000000e+00 : f32
      %34 = vector.broadcast %cst_26 : f32 to vector<32x256xf32>
      %c0_27 = arith.constant 0 : index
      %c0_28 = arith.constant 0 : index
      %35 = vector.load %arg7[%c0_27, %c0_28] : memref<32x256xf32, #tpu.memory_space<vmem>>, vector<32x256xf32>
      tpu.vector_store %arg7[%c0_27, %c0_28], %34 {strides = array<i32>} : memref<32x256xf32, #tpu.memory_space<vmem>>, vector<32x256xf32>,
      %cst_29 = arith.constant 0.000000e+00 : f32
      %36 = vector.broadcast %cst_29 : f32 to vector<1x256xf32>
      %c0_30 = arith.constant 0 : index
      %c0_31 = arith.constant 0 : index
      %37 = vector.load %arg8[%c0_30, %c0_31] : memref<1x256xf32, #tpu.memory_space<vmem>>, vector<1x256xf32>
      tpu.vector_store %arg8[%c0_30, %c0_31], %36 {strides = array<i32>} : memref<1x256xf32, #tpu.memory_space<vmem>>, vector<1x256xf32>,
    } else {
    }
    %c0 = arith.constant 0 : index
    %c0_1 = arith.constant 0 : index
    %c0_2 = arith.constant 0 : index
    %c0_3 = arith.constant 0 : index
    %3 = vector.load %arg3[%c0, %c0_1, %c0_2, %c0_3] : memref<1x1x1x1024xi32, #tpu.memory_space<vmem>>, vector<1x1x1x1024xi32>
    %4 = vector.shape_cast %3 : vector<1x1x1x1024xi32> to vector<1x1024xi32>
    %5 = tpu.iota {dimensions = array<i32: 0>} : vector<16x1024xi32>
    %6 = vector.broadcast %4 : vector<1x1024xi32> to vector<16x1024xi32>
    %7 = arith.cmpi eq, %5, %6 : vector<16x1024xi32>
    %cst = arith.constant 1.000000e+00 : f32
    %cst_4 = arith.constant 0.000000e+00 : f32
    %8 = vector.broadcast %cst : f32 to vector<16x1024xf32>
    %9 = vector.broadcast %cst_4 : f32 to vector<16x1024xf32>
    %10 = arith.select %7, %8, %9 : vector<16x1024xi1>, vector<16x1024xf32>
    %11 = arith.truncf %10 : vector<16x1024xf32> to vector<16x1024xbf16>
    %c0_i32_5 = arith.constant 0 : i32
    %12 = vector.broadcast %c0_i32_5 : i32 to vector<1x1024xi32>
    %13 = arith.cmpi sge, %4, %12 : vector<1x1024xi32>
    %cst_6 = arith.constant 1.000000e+00 : f32
    %cst_7 = arith.constant 0.000000e+00 : f32
    %14 = vector.broadcast %cst_6 : f32 to vector<1x1024xf32>
    %15 = vector.broadcast %cst_7 : f32 to vector<1x1024xf32>
    %16 = arith.select %13, %14, %15 : vector<1x1024xi1>, vector<1x1024xf32>
    %17 = arith.truncf %16 : vector<1x1024xf32> to vector<1x1024xbf16>
    %c0_8 = arith.constant 0 : index
    %c0_9 = arith.constant 0 : index
    %c0_10 = arith.constant 0 : index
    %c0_11 = arith.constant 0 : index
    %18 = vector.load %arg4[%c0_8, %c0_9, %c0_10, %c0_11] : memref<1x1x32x16xbf16, #tpu.memory_space<vmem>>, vector<1x1x32x16xbf16>
    %19 = vector.shape_cast %18 : vector<1x1x32x16xbf16> to vector<32x16xbf16>
    %cst_12 = arith.constant dense<0.000000e+00> : vector<32x1024xf32>
    %20 = tpu.matmul %19, %11, %cst_12 {dimension_numbers = #tpu.dot_dimension_numbers<[1], [0], [0], [1], [0, 0, 1, 1], [], []>} : vector<32x16xbf16>, vector<16x1024xbf16>, vector<32x1024xf32> -> vector<32x1024xf32>
    %c0_13 = arith.constant 0 : index
    %c0_14 = arith.constant 0 : index
    %21 = vector.load %arg5[%c0_13, %c0_14] : memref<1024x256xbf16, #tpu.memory_space<vmem>>, vector<1024x256xbf16>
    %c0_15 = arith.constant 0 : index
    %c0_16 = arith.constant 0 : index
    %22 = vector.load %arg7[%c0_15, %c0_16] : memref<32x256xf32, #tpu.memory_space<vmem>>, vector<32x256xf32>
    %23 = arith.truncf %20 : vector<32x1024xf32> to vector<32x1024xbf16>
    %cst_17 = arith.constant dense<0.000000e+00> : vector<32x256xf32>
    %24 = tpu.matmul %23, %21, %cst_17 {dimension_numbers = #tpu.dot_dimension_numbers<[1], [0], [0], [1], [0, 0, 1, 1], [], []>} : vector<32x1024xbf16>, vector<1024x256xbf16>, vector<32x256xf32> -> vector<32x256xf32>
    %25 = arith.addf %22, %24 : vector<32x256xf32>
    %c0_18 = arith.constant 0 : index
    %c0_19 = arith.constant 0 : index
    %26 = vector.load %arg7[%c0_18, %c0_19] : memref<32x256xf32, #tpu.memory_space<vmem>>, vector<32x256xf32>
    tpu.vector_store %arg7[%c0_18, %c0_19], %25 {strides = array<i32>} : memref<32x256xf32, #tpu.memory_space<vmem>>, vector<32x256xf32>,
    %c0_20 = arith.constant 0 : index
    %c0_21 = arith.constant 0 : index
    %27 = vector.load %arg8[%c0_20, %c0_21] : memref<1x256xf32, #tpu.memory_space<vmem>>, vector<1x256xf32>
    %cst_22 = arith.constant dense<0.000000e+00> : vector<1x256xf32>
    %28 = tpu.matmul %17, %21, %cst_22 {dimension_numbers = #tpu.dot_dimension_numbers<[1], [0], [0], [1], [0, 0, 1, 1], [], []>} : vector<1x1024xbf16>, vector<1024x256xbf16>, vector<1x256xf32> -> vector<1x256xf32>
    %29 = arith.addf %27, %28 : vector<1x256xf32>
    %c0_23 = arith.constant 0 : index
    %c0_24 = arith.constant 0 : index
    %30 = vector.load %arg8[%c0_23, %c0_24] : memref<1x256xf32, #tpu.memory_space<vmem>>, vector<1x256xf32>
    tpu.vector_store %arg8[%c0_23, %c0_24], %29 {strides = array<i32>} : memref<1x256xf32, #tpu.memory_space<vmem>>, vector<1x256xf32>,
    %c1_i32 = arith.constant 1 : i32
    %31 = arith.cmpi eq, %arg2, %c1_i32 : i32
    %32 = arith.extui %31 : i1 to i32
    %c0_i32_25 = arith.constant 0 : i32
    %33 = arith.cmpi ne, %32, %c0_i32_25 : i32
    scf.if %33 {
      %c0_26 = arith.constant 0 : index
      %c0_27 = arith.constant 0 : index
      %34 = vector.load %arg7[%c0_26, %c0_27] : memref<32x256xf32, #tpu.memory_space<vmem>>, vector<32x256xf32>
      %c0_28 = arith.constant 0 : index
      %c0_29 = arith.constant 0 : index
      %35 = vector.load %arg8[%c0_28, %c0_29] : memref<1x256xf32, #tpu.memory_space<vmem>>, vector<1x256xf32>
      %cst_30 = arith.constant 1.000000e+00 : f32
      %36 = vector.broadcast %cst_30 : f32 to vector<1x256xf32>
      %37 = arith.maximumf %35, %36 : vector<1x256xf32>
      %38 = vector.broadcast %37 : vector<1x256xf32> to vector<32x256xf32>
      %39 = arith.divf %34, %38 : vector<32x256xf32>
      %c0_31 = arith.constant 0 : index
      %c0_32 = arith.constant 0 : index
      %c0_33 = arith.constant 0 : index
      %40 = vector.load %arg6[%c0_31, %c0_32, %c0_33] : memref<1x32x256xf32, #tpu.memory_space<vmem>>, vector<1x32x256xf32>
      %41 = vector.shape_cast %40 : vector<1x32x256xf32> to vector<32x256xf32>
      %42 = vector.shape_cast %39 : vector<32x256xf32> to vector<1x32x256xf32>
      tpu.vector_store %arg6[%c0_31, %c0_32, %c0_33], %42 {strides = array<i32>} : memref<1x32x256xf32, #tpu.memory_space<vmem>>, vector<1x32x256xf32>,
    } else {
    }
    return
  }
  func.func @transform_0(%arg0: i32, %arg1: i32, %arg2: i32) -> (i32, i32, i32, i32) {
    %c0_i32 = arith.constant 0 : i32
    %c0_i32_0 = arith.constant 0 : i32
    return %arg0, %arg2, %c0_i32, %arg1 : i32, i32, i32, i32
  }
  func.func @transform_1(%arg0: i32, %arg1: i32, %arg2: i32) -> (i32, i32, i32, i32) {
    %c0_i32 = arith.constant 0 : i32
    %c0_i32_0 = arith.constant 0 : i32
    %c0_i32_1 = arith.constant 0 : i32
    return %arg0, %arg2, %c0_i32, %c0_i32_0 : i32, i32, i32, i32
  }
  func.func @transform_2(%arg0: i32, %arg1: i32, %arg2: i32) -> (i32, i32) {
    %c0_i32 = arith.constant 0 : i32
    %c0_i32_0 = arith.constant 0 : i32
    %c0_i32_1 = arith.constant 0 : i32
    return %c0_i32, %c0_i32_0 : i32, i32
  }
  func.func @transform_3(%arg0: i32, %arg1: i32, %arg2: i32) -> (i32, i32, i32) {
    %c0_i32 = arith.constant 0 : i32
    %c0_i32_0 = arith.constant 0 : i32
    return %arg0, %c0_i32, %arg1 : i32, i32, i32
  }
}

module attributes {stable_mosaic.version = 11 : i64} {
  func.func @_dechead_cf_kernel(%arg0: i32, %arg1: i32, %arg2: memref<1x32x256xf32, #tpu.memory_space<vmem>>, %arg3: memref<32x32xbf16, #tpu.memory_space<vmem>>, %arg4: memref<32x1xf32, #tpu.memory_space<vmem>>, %arg5: memref<1x32xbf16, #tpu.memory_space<vmem>>, %arg6: memref<1x1xf32, #tpu.memory_space<vmem>>, %arg7: memref<1x1x256xf32, #tpu.memory_space<vmem>>) attributes {dimension_semantics = [#tpu.dimension_semantics<parallel>, #tpu.dimension_semantics<parallel>], iteration_bounds = array<i64: 2, 1>, scalar_prefetch = 0 : i64, scratch_operands = 0 : i64, tpu.core_type = #tpu.core_type<tc>, window_params = [{transform_indices = @transform_0, window_bounds = array<i64: 1, 32, 256>}, {pipeline_mode = #tpu.pipeline_mode<synchronous>, transform_indices = @transform_1, window_bounds = array<i64: 32, 32>}, {pipeline_mode = #tpu.pipeline_mode<synchronous>, transform_indices = @transform_2, window_bounds = array<i64: 32, 1>}, {pipeline_mode = #tpu.pipeline_mode<synchronous>, transform_indices = @transform_3, window_bounds = array<i64: 1, 32>}, {pipeline_mode = #tpu.pipeline_mode<synchronous>, transform_indices = @transform_4, window_bounds = array<i64: 1, 1>}, {transform_indices = @transform_5, window_bounds = array<i64: 1, 1, 256>}]} {
    %c0 = arith.constant 0 : index
    %c0_0 = arith.constant 0 : index
    %c0_1 = arith.constant 0 : index
    %0 = vector.load %arg2[%c0, %c0_0, %c0_1] : memref<1x32x256xf32, #tpu.memory_space<vmem>>, vector<1x32x256xf32>
    %1 = vector.shape_cast %0 : vector<1x32x256xf32> to vector<32x256xf32>
    %2 = arith.truncf %1 : vector<32x256xf32> to vector<32x256xbf16>
    %c0_2 = arith.constant 0 : index
    %c0_3 = arith.constant 0 : index
    %3 = vector.load %arg3[%c0_2, %c0_3] : memref<32x32xbf16, #tpu.memory_space<vmem>>, vector<32x32xbf16>
    %cst = arith.constant dense<0.000000e+00> : vector<32x256xf32>
    %4 = tpu.matmul %3, %2, %cst {dimension_numbers = #tpu.dot_dimension_numbers<[1], [0], [0], [1], [0, 0, 1, 1], [], []>} : vector<32x32xbf16>, vector<32x256xbf16>, vector<32x256xf32> -> vector<32x256xf32>
    %c0_4 = arith.constant 0 : index
    %c0_5 = arith.constant 0 : index
    %5 = vector.load %arg4[%c0_4, %c0_5] : memref<32x1xf32, #tpu.memory_space<vmem>>, vector<32x1xf32>
    %6 = vector.broadcast %5 : vector<32x1xf32> to vector<32x256xf32>
    %7 = arith.addf %4, %6 : vector<32x256xf32>
    %cst_6 = arith.constant 0.000000e+00 : f32
    %8 = vector.broadcast %cst_6 : f32 to vector<32x256xf32>
    %9 = arith.maximumf %7, %8 : vector<32x256xf32>
    %c0_7 = arith.constant 0 : index
    %c0_8 = arith.constant 0 : index
    %10 = vector.load %arg5[%c0_7, %c0_8] : memref<1x32xbf16, #tpu.memory_space<vmem>>, vector<1x32xbf16>
    %11 = arith.truncf %9 : vector<32x256xf32> to vector<32x256xbf16>
    %cst_9 = arith.constant dense<0.000000e+00> : vector<1x256xf32>
    %12 = tpu.matmul %10, %11, %cst_9 {dimension_numbers = #tpu.dot_dimension_numbers<[1], [0], [0], [1], [0, 0, 1, 1], [], []>} : vector<1x32xbf16>, vector<32x256xbf16>, vector<1x256xf32> -> vector<1x256xf32>
    %c0_10 = arith.constant 0 : index
    %c0_11 = arith.constant 0 : index
    %13 = vector.load %arg6[%c0_10, %c0_11] : memref<1x1xf32, #tpu.memory_space<vmem>>, vector<1x1xf32>
    %14 = vector.broadcast %13 : vector<1x1xf32> to vector<1x256xf32>
    %15 = arith.addf %12, %14 : vector<1x256xf32>
    %c0_12 = arith.constant 0 : index
    %c0_13 = arith.constant 0 : index
    %c0_14 = arith.constant 0 : index
    %16 = vector.load %arg7[%c0_12, %c0_13, %c0_14] : memref<1x1x256xf32, #tpu.memory_space<vmem>>, vector<1x1x256xf32>
    %17 = vector.shape_cast %16 : vector<1x1x256xf32> to vector<1x256xf32>
    %18 = vector.shape_cast %15 : vector<1x256xf32> to vector<1x1x256xf32>
    tpu.vector_store %arg7[%c0_12, %c0_13, %c0_14], %18 {strides = array<i32>} : memref<1x1x256xf32, #tpu.memory_space<vmem>>, vector<1x1x256xf32>,
    return
  }
  func.func @transform_0(%arg0: i32, %arg1: i32) -> (i32, i32, i32) {
    %c0_i32 = arith.constant 0 : i32
    %c0_i32_0 = arith.constant 0 : i32
    return %arg0, %c0_i32, %arg1 : i32, i32, i32
  }
  func.func @transform_1(%arg0: i32, %arg1: i32) -> (i32, i32) {
    %c0_i32 = arith.constant 0 : i32
    %c0_i32_0 = arith.constant 0 : i32
    %c0_i32_1 = arith.constant 0 : i32
    return %c0_i32, %c0_i32_0 : i32, i32
  }
  func.func @transform_2(%arg0: i32, %arg1: i32) -> (i32, i32) {
    %c0_i32 = arith.constant 0 : i32
    %c0_i32_0 = arith.constant 0 : i32
    %c0_i32_1 = arith.constant 0 : i32
    return %c0_i32, %c0_i32_0 : i32, i32
  }
  func.func @transform_3(%arg0: i32, %arg1: i32) -> (i32, i32) {
    %c0_i32 = arith.constant 0 : i32
    %c0_i32_0 = arith.constant 0 : i32
    %c0_i32_1 = arith.constant 0 : i32
    return %c0_i32, %c0_i32_0 : i32, i32
  }
  func.func @transform_4(%arg0: i32, %arg1: i32) -> (i32, i32) {
    %c0_i32 = arith.constant 0 : i32
    %c0_i32_0 = arith.constant 0 : i32
    %c0_i32_1 = arith.constant 0 : i32
    return %c0_i32, %c0_i32_0 : i32, i32
  }
  func.func @transform_5(%arg0: i32, %arg1: i32) -> (i32, i32, i32) {
    %c0_i32 = arith.constant 0 : i32
    %c0_i32_0 = arith.constant 0 : i32
    return %arg0, %c0_i32, %arg1 : i32, i32, i32
  }
}

</mosaic_0001>

<bundles_post_ra>
// kernel: forward.4
= control target key start
LH: loop header
LB: loop body
LE: loop exit
PB: predicated region body
PF: predicated region fallthrough
CT: control target
= control target key end

     0   :  { %s730_s18 = smov 0   ;;  %s732_s19 = smov 0   ;;  %s807_s0 = inlined_call_operand.vmem [shape: bf16[4,48,16], index: 0, kind: input, shape index: {}]   ;;  %s808_s1 = inlined_call_operand.vmem [shape: bf16[32,48], index: 1, kind: input, shape index: {}]   ;;  %s809_s2 = inlined_call_operand.vmem [shape: f32[32,1], index: 2, kind: input, shape index: {}]   ;;  %s810_s3 = inlined_call_operand.vmem [shape: bf16[32,32], index: 3, kind: input, shape index: {}]   ;;  %s811_s4 = inlined_call_operand.vmem [shape: f32[32,1], index: 4, kind: input, shape index: {}]   ;;  %s812_s5 = inlined_call_operand.vmem [shape: bf16[4,32,16], index: 5, kind: output, shape index: {}]  }
   0x1   :  { %s734_s20 = smov 0  }
   0x2 LB: > { %s27_s21 = sadd.s32 1, %s693_s19  ;;  %p587_p0 = scmp.ge.s32.totalorder %s697_s20, 1  ;;  %s697_s20 = sphi %s734_s20, %s15_s20   ;;  %s693_s19 = sphi %s732_s19, %s814_s19   ;;  %s689_s18 = sphi %s730_s18, %s813_s18  }
   0x3   : > { %p29_p1 = scmp.ge.s32.totalorder %s27_s21, 4  ;;  %p206_p2 = scmp.lt.s32.totalorder %s697_s20, 5 }
   0x5   : > { %s816_s21 = smov (%p29_p1, %s27_s21), 0  ;;  %p207_p3 = pnand %p587_p0, %p206_p2 }
   0x6   : > { %p240_p4 = scmp.lt.s32.totalorder (!%p207_p3), %s689_s18, 3  ;;  %v671_v0 = vld [vmem:[%s808_s1] sm:$0xff] (!%p207_p3)   ;;  %vm319_vm0 = vcmask (!%p207_p3), 392192   ;;  %v269_v2 = vld [vmem:[%s809_s2 + $0x10] sm:$0xff] (!%p207_p3)  ;;  %v699_v3 = vmov (!%p207_p3), 0   ;;  %v268_v4 = vld [vmem:[%s809_s2 + $0x8] sm:$0xff] (!%p207_p3) }
   0x7   : > { %210 = sbr.rel (%p207_p3) target bundleno = 482 (0x1e2), region = 40  ;;  %628 = vmatprep.mubr.msk.bf16.mxu0 (!%p207_p3), %vm319_vm0, %v671_v0  ;;  %v267_v1 = vld [vmem:[%s809_s2] sm:$0xff] (!%p207_p3)  ;;  %666 = vset.pattern.permute.xlu0 (!%p207_p3), %v699_v3  ;;  %v270_v5 = vld [vmem:[%s809_s2 + $0x18] sm:$0xff] (!%p207_p3)  ;;  %v386_v9 = vld [vmem:[%s811_s4 + $0x8] sm:$0xff] (!%p207_p3)  ;;  %vm419_vm1 = vcmask (!%p207_p3), 261120   ;;  %vm495_vm2 = vcmask (!%p207_p3), 125952  }
   0x8   : > { %667 = vset.pattern.permute.xlu1 (!%p207_p3), %v699_v3  ;;  %273 = vperm.xlu0 (!%p207_p3), %666, %v267_v1   ;;  %v385_v7 = vld [vmem:[%s811_s4] sm:$0xff] (!%p207_p3)  ;;  %v387_v11 = vld [vmem:[%s811_s4 + $0x10] sm:$0xff] (!%p207_p3)  ;;  %v388_v12 = vld [vmem:[%s811_s4 + $0x18] sm:$0xff] (!%p207_p3) }
   0x9   : > { %283 = vperm.xlu1 (!%p207_p3), %667, %v269_v2   ;;  %v672_v13 = vld [vmem:[%s808_s1 + $0x8] sm:$0xff] (!%p207_p3)   ;;  %v673_v14 = vld [vmem:[%s810_s3] sm:$0xff] (!%p207_p3)  }
   0xa   : > { %636 = vmatprep.mubr.msk.bf16.mxu1 (!%p207_p3), %vm419_vm1, %v673_v14  ;;  %v674_v33 = vld [vmem:[%s810_s3 + $0x8] sm:$0xff] (!%p207_p3)  }
   0xc   : > { %278 = vperm.xlu0 (!%p207_p3), %666, %v268_v4  }
   0xd   : > { %288 = vperm.xlu1 (!%p207_p3), %667, %v270_v5  }
   0xe   : > { %s818_s18 = smov (!%p240_p4, %s689_s18), 3 }
   0xf   : > { %s640_s28 = smul.u32 24, %s818_s18  ;;  %s608_s29 = sshll.u32 %s818_s18, 4 }
  0x10   : > { %391 = vperm.xlu0 %666, %v385_v7   ;;  %s255_s7 = scalar_lea.vmem %s812_s5, %s608_s29 }
  0x11   : > { %s247_s10 = scalar_lea.vmem %s807_s0, %s640_s28  ;;  %396 = vperm.xlu1 %667, %v386_v9  }
  0x12   : > { %v668_v6 = vld [vmem:[%s247_s10] sm:$0xff]   ;;  %v669_v8 = vld [vmem:[%s247_s10 + $0x8] sm:$0xff]   ;;  %v670_v10 = vld [vmem:[%s247_s10 + $0x10] sm:$0xff]  }
  0x13   : > { %622 = vmatprep.subr.bf16.mxu0 %v668_v6 }
  0x14   : > { %623 = vmatpush3.bf16.msra.mxu0 %v668_v6  ;;  %401 = vperm.xlu0 %666, %v387_v11  }
  0x15   : > { %624 = vmatprep.subr.bf16.mxu0 %v669_v8  ;;  %406 = vperm.xlu1 %667, %v388_v12  }
  0x18   : > { %625 = vmatpush3.bf16.msra.mxu0 %v669_v8 }
  0x19   : > { %626 = vmatprep.subr.bf16.mxu0 %v670_v10 }
  0x1c   : > { %627 = vmatpush3.bf16.msra.mxu0 %v670_v10 }
  0x1f   : > { %629 = vmatmul.mubr.msk.bf16.vlgmr.msra.gmra.mrb[0].mxu0 %vm319_vm0, %v672_v13 }
  0x87   : > { %v274_v16 = vpop.permute.xlu0 %273 }
  0x88   : > { %v284_v15 = vpop.permute.xlu1 %283 }
  0x8b   : > { %v279_v23 = vpop.permute.xlu0 %278 }
  0x8c   : > { %v289_v20 = vpop.permute.xlu1 %288 }
  0x8f   : > { %v392_v34 = vpop.permute.xlu0 %391 }
  0x90   : > { %v397_v35 = vpop.permute.xlu1 %396 }
  0x93   : > { %v402_v36 = vpop.permute.xlu0 %401 }
  0x94   : > { %v407_v40 = vpop.permute.xlu1 %406 }
  0xf2   : > { %v630_v17 = vpop.f32.mrb[0].mxu0 }
  0xf3   : > { %v369_v18 = vadd.f32 %v630_v17, %v284_v15  ;;  %v360_v19 = vpop.f32.mrb[1].mxu0 }
  0xf4   : > { %v361_v21 = vadd.f32 %v360_v19, %v274_v16  ;;  %v631_v22 = vpop.f32.mrb[2].mxu0 }
  0xf5   : > { %v372_v24 = vadd.f32 %v631_v22, %v289_v20  ;;  %v363_v25 = vpop.f32.mrb[3].mxu0  ;;  %v377_v27 = vmax.f32 %v369_v18, 0.0 }
  0xf6   : > { %v364_v26 = vadd.f32 %v363_v25, %v279_v23  ;;  %v375_v29 = vmax.f32 %v361_v21, 0.0 }
  0xf7   : > { %v378_v28 = vmax.f32 %v372_v24, 0.0 }
  0xf8   : > { %v376_v30 = vmax.f32 %v364_v26, 0.0 }
  0xf9   : > { %v384_v31 = vpack.c.bf16 %v378_v28, %v377_v27 }
  0xfa   : > { %v383_v32 = vpack.c.bf16 %v376_v30, %v375_v29 }
  0xfc   : > { %632 = vmatprep.subr.bf16.mxu1 %v383_v32 }
  0xfd   : > { %633 = vmatpush3.bf16.msra.mxu1 %v383_v32 }
  0xfe   : > { %634 = vmatprep.subr.bf16.mxu1 %v384_v31 }
 0x101   : > { %635 = vmatpush3.bf16.msra.mxu1 %v384_v31 }
 0x104   : > { %637 = vmatmul.mubr.msk.bf16.vlgmr.msra.gmra.mrb[0].mxu1 %vm419_vm1, %v674_v33 }
 0x1d7   : > { %v638_v37 = vpop.f32.mrb[0].mxu1 }
 0x1d8   : > { %v469_v38 = vadd.f32 %v638_v37, %v402_v36  ;;  %v460_v39 = vpop.f32.mrb[1].mxu1 }
 0x1d9   : > { %v461_v41 = vadd.f32 %v460_v39, %v392_v34  ;;  %v639_v42 = vpop.f32.mrb[2].mxu1 }
 0x1da   : > { %v477_v43 = vmax.f32 %v469_v38, 0.0  ;;  %v472_v44 = vadd.f32 %v639_v42, %v407_v40  ;;  %v463_v45 = vpop.f32.mrb[3].mxu1 }
 0x1db   : > { %v475_v46 = vmax.f32 %v461_v41, 0.0  ;;  %v464_v47 = vadd.f32 %v463_v45, %v397_v35 }
 0x1dc   : > { %v611_v48 = vpack.c.bf16 %v477_v43, %v477_v43  ;;  %v478_v49 = vmax.f32 %v472_v44, 0.0 }
 0x1dd   : > { %v609_v50 = vpack.c.bf16 %v475_v46, %v475_v46  ;;  %v476_v51 = vmax.f32 %v464_v47, 0.0 }
 0x1de   : > { %498 = vst.msk [vmem:[%s255_s7 + $0x8] sm:$0xf] %vm495_vm2, %v611_v48  ;;  %v612_v52 = vpack.c.bf16 %v478_v49, %v478_v49 }
 0x1df   : > { %496 = vst.msk [vmem:[%s255_s7] sm:$0xf] %vm495_vm2, %v609_v50  ;;  %v610_v53 = vpack.c.bf16 %v476_v51, %v476_v51 }
 0x1e0   : > { %499 = vst.msk [vmem:[%s255_s7 + $0xc] sm:$0xf] %vm495_vm2, %v612_v52 }
 0x1e1   : > { %497 = vst.msk [vmem:[%s255_s7 + $0x4] sm:$0xf] %vm495_vm2, %v610_v53 }
 0x1e2 PF: > { %s15_s20 = sadd.s32 1, %s697_s20   ;;  %s813_s18 = smov %s693_s19 }
 0x1e3   : > { %p12_p5 = scmp.ge.s32.totalorder %s15_s20, 6   ;;  %s814_s19 = smov %s816_s21 }
 0x1e5   :  { %14 = sbr.rel (!%p12_p5) target bundleno = 2 (0x2), region = 70 }

// kernel: forward.5
= control target key start
LH: loop header
LB: loop body
LE: loop exit
PB: predicated region body
PF: predicated region fallthrough
CT: control target
= control target key end

     0   :  { %s1278_s9 = smov 0   ;;  %s1280_s10 = smov 0   ;;  %s2008_s0 = inlined_call_operand.vmem [shape: f32[4,3,4], index: 0, kind: input, shape index: {}]   ;;  %s2009_s1 = inlined_call_operand.vmem [shape: f32[4,1024], index: 1, kind: input, shape index: {}]   ;;  %s2010_s2 = inlined_call_operand.vmem [shape: s32[4,1,1024], index: 2, kind: output, shape index: {}]  }
   0x1   :  { %s1282_s11 = smov 0  }
   0x2 LB: > { %s24_s12 = sadd.s32 1, %s1252_s10  ;;  %p1067_p0 = scmp.ge.s32.totalorder %s1256_s11, 1  ;;  %s1256_s11 = sphi %s1282_s11, %s12_s11   ;;  %s1252_s10 = sphi %s1280_s10, %s2188_s10   ;;  %s1248_s9 = sphi %s1278_s9, %s2187_s9  }
   0x3   : > { %p26_p1 = scmp.ge.s32.totalorder %s24_s12, 4  ;;  %p136_p2 = scmp.lt.s32.totalorder %s1256_s11, 5 }
   0x5   : > { %s2190_s12 = smov (%p26_p1, %s24_s12), 0  ;;  %p137_p3 = pnand %p1067_p0, %p136_p2 }
   0x6   : > { %p165_p4 = scmp.lt.s32.totalorder (!%p137_p3), %s1248_s9, 3  ;;  %v1258_v0 = vmov (!%p137_p3), 0   ;;  %v1259_v1 = vmov (!%p137_p3), 2   ;;  %v1260_v3 = vmov (!%p137_p3), 1   ;;  %v1261_v4 = vmov (!%p137_p3), 3   ;;  %v1310_v9 = vld [vmem:[%s2009_s1] sm:$0xff] (!%p137_p3) }
   0x7   : > { %140 = sbr.rel (%p137_p3) target bundleno = 277 (0x115), region = 28  ;;  %1197 = vset.pattern.permute.xlu0 (!%p137_p3), %v1258_v0  ;;  %1199 = vset.pattern.permute.xlu1 (!%p137_p3), %v1259_v1  ;;  %v198_v5 = vlaneseq (!%p137_p3)  ;;  %v1315_v10 = vld [vmem:[%s2009_s1 + $0x8] sm:$0xff] (!%p137_p3)  ;;  %v1325_v16 = vld [vmem:[%s2009_s1 + $0x10] sm:$0xff] (!%p137_p3)  ;;  %v1330_v17 = vld [vmem:[%s2009_s1 + $0x18] sm:$0xff] (!%p137_p3) }
   0x9   : > { %v1303_v6 = vshrl.u32 (!%p137_p3), %v198_v5, 7 }
   0xb   : > { %v376_v7 = vsub.s32 (!%p137_p3), 2, %v1303_v6  ;;  %v380_v8 = vsub.s32 (!%p137_p3), 6, %v1303_v6  ;;  %v200_v13 = vsub.s32 (!%p137_p3), 0, %v1303_v6  ;;  %v204_v14 = vsub.s32 (!%p137_p3), 4, %v1303_v6 }
   0xc   : > { %v284_v37 = vsub.s32 (!%p137_p3), 1, %v1303_v6  ;;  %v288_v38 = vsub.s32 (!%p137_p3), 5, %v1303_v6  ;;  %v468_v46 = vsub.s32 (!%p137_p3), 3, %v1303_v6  ;;  %v472_v50 = vsub.s32 (!%p137_p3), 7, %v1303_v6 }
   0xd   : > { %v377_v11 = vrot.slane (!%p137_p3), %v1310_v9, %v376_v7  ;;  %v381_v12 = vrot.slane (!%p137_p3), %v1310_v9, %v380_v8  ;;  %v385_v15 = vrot.slane (!%p137_p3), %v1315_v10, %v376_v7  ;;  %v389_v18 = vrot.slane (!%p137_p3), %v1315_v10, %v380_v8 }
   0xe   : > { %s2192_s9 = smov (!%p165_p4, %s1248_s9), 3  ;;  %v393_v19 = vrot.slane %v1325_v16, %v376_v7  ;;  %v397_v20 = vrot.slane %v1325_v16, %v380_v8  ;;  %v401_v21 = vrot.slane %v1330_v17, %v376_v7  ;;  %v405_v22 = vrot.slane %v1330_v17, %v380_v8 }
   0xf   : > { %s1068_s13 = sshll.u32 %s2192_s9, 2  ;;  %v417_v23 = vrot.slane %v377_v11, %v376_v7  ;;  %v421_v24 = vrot.slane %v381_v12, %v376_v7  ;;  %v201_v25 = vrot.slane %v1310_v9, %v200_v13  ;;  %v205_v26 = vrot.slane %v1310_v9, %v204_v14  ;;  %s1069_s25 = sshll.u32 %s2192_s9, 3 }
  0x10   : > { %s168_s16 = scalar_lea.vmem %s2008_s0, %s1068_s13  ;;  %v425_v27 = vrot.slane %v385_v15, %v376_v7  ;;  %v209_v28 = vrot.slane %v1315_v10, %v200_v13  ;;  %v213_v29 = vrot.slane %v1315_v10, %v204_v14  ;;  %v217_v30 = vrot.slane %v1325_v16, %v200_v13  ;;  %s182_s28 = scalar_lea.vmem %s2010_s2, %s1069_s25 }
  0x11   : > { %v184_v2 = vld [vmem:[%s168_s16] sm:$0x7]  ;;  %v429_v31 = vrot.slane %v389_v18, %v376_v7  ;;  %v221_v32 = vrot.slane %v1325_v16, %v204_v14  ;;  %v225_v33 = vrot.slane %v1330_v17, %v200_v13  ;;  %v229_v34 = vrot.slane %v1330_v17, %v204_v14 }
  0x12   : > { %191 = vperm.xlu0 %1197, %v184_v2   ;;  %371 = vperm.xlu1 %1199, %v184_v2   ;;  %v433_v35 = vrot.slane %v393_v19, %v376_v7  ;;  %v437_v36 = vrot.slane %v397_v20, %v376_v7  ;;  %v441_v39 = vrot.slane %v401_v21, %v376_v7 }
  0x13   : > { %v445_v40 = vrot.slane %v405_v22, %v376_v7  ;;  %v241_v41 = vrot.slane %v201_v25, %v200_v13  ;;  %v245_v42 = vrot.slane %v205_v26, %v200_v13  ;;  %v249_v43 = vrot.slane %v209_v28, %v200_v13 }
  0x14   : > { %v253_v44 = vrot.slane %v213_v29, %v200_v13  ;;  %v257_v45 = vrot.slane %v217_v30, %v200_v13  ;;  %v261_v47 = vrot.slane %v221_v32, %v200_v13  ;;  %v265_v48 = vrot.slane %v225_v33, %v200_v13 }
  0x15   : > { %v269_v49 = vrot.slane %v229_v34, %v200_v13  ;;  %v285_v51 = vrot.slane %v1310_v9, %v284_v37  ;;  %v289_v52 = vrot.slane %v1310_v9, %v288_v38  ;;  %v293_v53 = vrot.slane %v1315_v10, %v284_v37 }
  0x16   : > { %1198 = vset.pattern.permute.xlu0 %v1260_v3  ;;  %1200 = vset.pattern.permute.xlu1 %v1261_v4  ;;  %v297_v54 = vrot.slane %v1315_v10, %v288_v38  ;;  %v301_v55 = vrot.slane %v1325_v16, %v284_v37  ;;  %v305_v56 = vrot.slane %v1325_v16, %v288_v38 }
  0x17   : > { %279 = vperm.xlu0 %1198, %v184_v2   ;;  %463 = vperm.xlu1 %1200, %v184_v2   ;;  %v309_v57 = vrot.slane %v1330_v17, %v284_v37  ;;  %v313_v58 = vrot.slane %v1330_v17, %v288_v38  ;;  %v469_v59 = vrot.slane %v1310_v9, %v468_v46 }
  0x18   : > { %v477_v60 = vrot.slane %v1315_v10, %v468_v46  ;;  %v485_v61 = vrot.slane %v1325_v16, %v468_v46  ;;  %v493_v62 = vrot.slane %v1330_v17, %v468_v46  ;;  %v473_v63 = vrot.slane %v1310_v9, %v472_v50 }
  0x19   : > { %v481_v1 = vrot.slane %v1315_v10, %v472_v50  ;;  %v489_v2 = vrot.slane %v1325_v16, %v472_v50  ;;  %v497_v3 = vrot.slane %v1330_v17, %v472_v50  ;;  %v329_v5 = vrot.slane %v289_v52, %v284_v37 }
  0x1a   : > { %v333_v7 = vrot.slane %v293_v53, %v284_v37  ;;  %v337_v8 = vrot.slane %v297_v54, %v284_v37  ;;  %v341_v11 = vrot.slane %v301_v55, %v284_v37  ;;  %v345_v12 = vrot.slane %v305_v56, %v284_v37 }
  0x1b   : > { %1201 = vset.pattern.permute.xlu0 %v1261_v4  ;;  %v325_v4 = vrot.slane %v285_v51, %v284_v37  ;;  %v349_v13 = vrot.slane %v309_v57, %v284_v37  ;;  %v353_v14 = vrot.slane %v313_v58, %v284_v37  ;;  %v509_v19 = vrot.slane %v469_v59, %v468_v46 }
  0x1c   : > { %v517_v20 = vrot.slane %v477_v60, %v468_v46  ;;  %v525_v21 = vrot.slane %v485_v61, %v468_v46  ;;  %v533_v9 = vrot.slane %v493_v62, %v468_v46  ;;  %v513_v22 = vrot.slane %v473_v63, %v468_v46 }
  0x1d   : > { %v521_v10 = vrot.slane %v481_v1, %v468_v46  ;;  %v529_v25 = vrot.slane %v489_v2, %v468_v46  ;;  %v537_v16 = vrot.slane %v497_v3, %v468_v46 }
  0x91   : > { %v192_v15 = vpop.permute.xlu0 %191  ;;  %v372_v18 = vpop.permute.xlu1 %371 }
  0x92   : > { %v446_v26 = vmul.f32 %v417_v23, %v372_v18  ;;  %v447_v17 = vmul.f32 %v421_v24, %v372_v18  ;;  %v448_v28 = vmul.f32 %v425_v27, %v372_v18  ;;  %v449_v29 = vmul.f32 %v429_v31, %v372_v18 }
  0x93   : > { %v450_v30 = vmul.f32 %v433_v35, %v372_v18  ;;  %v451_v32 = vmul.f32 %v437_v36, %v372_v18  ;;  %v452_v33 = vmul.f32 %v441_v39, %v372_v18  ;;  %v453_v34 = vmul.f32 %v445_v40, %v372_v18 }
  0x94   : > { %v270_v38 = vmul.f32 %v241_v41, %v192_v15  ;;  %v271_v37 = vmul.f32 %v245_v42, %v192_v15  ;;  %v272_v50 = vmul.f32 %v249_v43, %v192_v15  ;;  %v273_v51 = vmul.f32 %v253_v44, %v192_v15 }
  0x95   : > { %v274_v52 = vmul.f32 %v257_v45, %v192_v15  ;;  %v275_v53 = vmul.f32 %v261_v47, %v192_v15  ;;  %v276_v54 = vmul.f32 %v265_v48, %v192_v15  ;;  %v277_v55 = vmul.f32 %v269_v49, %v192_v15 }
  0x96   : > { %v280_v56 = vpop.permute.xlu0 %279  ;;  %v464_v47 = vpop.permute.xlu1 %463 }
  0x97   : > { %v354_v57 = vmul.f32 %v325_v4, %v280_v56  ;;  %v355_v58 = vmul.f32 %v329_v5, %v280_v56  ;;  %v356_v46 = vmul.f32 %v333_v7, %v280_v56  ;;  %v357_v23 = vmul.f32 %v337_v8, %v280_v56 }
  0x98   : > { %v358_v24 = vmul.f32 %v341_v11, %v280_v56  ;;  %v359_v27 = vmul.f32 %v345_v12, %v280_v56  ;;  %v360_v31 = vmul.f32 %v349_v13, %v280_v56  ;;  %v361_v35 = vmul.f32 %v353_v14, %v280_v56 }
  0x99   : > { %v362_v36 = vadd.f32 %v354_v57, %v270_v38  ;;  %v363_v39 = vadd.f32 %v355_v58, %v271_v37  ;;  %v364_v40 = vadd.f32 %v356_v46, %v272_v50  ;;  %v365_v41 = vadd.f32 %v357_v23, %v273_v51 }
  0x9a   : > { %v366_v42 = vadd.f32 %v358_v24, %v274_v52  ;;  %v367_v43 = vadd.f32 %v359_v27, %v275_v53  ;;  %v368_v44 = vadd.f32 %v360_v31, %v276_v54  ;;  %v369_v45 = vadd.f32 %v361_v35, %v277_v55 }
  0x9b   : > { %v454_v48 = vadd.f32 %v446_v26, %v362_v36  ;;  %v455_v49 = vadd.f32 %v447_v17, %v363_v39  ;;  %v456_v59 = vadd.f32 %v448_v28, %v364_v40  ;;  %v457_v60 = vadd.f32 %v449_v29, %v365_v41 }
  0x9c   : > { %v458_v61 = vadd.f32 %v450_v30, %v366_v42  ;;  %v459_v62 = vadd.f32 %v451_v32, %v367_v43  ;;  %v460_v63 = vadd.f32 %v452_v33, %v368_v44  ;;  %v461_v1 = vadd.f32 %v453_v34, %v369_v45 }
  0x9d   : > { %v538_v2 = vmul.f32 %v509_v19, %v464_v47  ;;  %v539_v3 = vmul.f32 %v513_v22, %v464_v47  ;;  %v540_v4 = vmul.f32 %v517_v20, %v464_v47  ;;  %v541_v5 = vmul.f32 %v521_v10, %v464_v47 }
  0x9e   : > { %v542_v7 = vmul.f32 %v525_v21, %v464_v47  ;;  %v543_v8 = vmul.f32 %v529_v25, %v464_v47  ;;  %v544_v11 = vmul.f32 %v533_v9, %v464_v47  ;;  %v545_v12 = vmul.f32 %v537_v16, %v464_v47 }
  0x9f   : > { %v1365_v13 = vadd.f32 %v538_v2, %v454_v48  ;;  %v1367_v14 = vadd.f32 %v539_v3, %v455_v49  ;;  %v1369_v15 = vadd.f32 %v540_v4, %v456_v59  ;;  %v1371_v18 = vadd.f32 %v541_v5, %v457_v60 }
  0xa0   : > { %v1373_v26 = vadd.f32 %v542_v7, %v458_v61  ;;  %v1375_v17 = vadd.f32 %v543_v8, %v459_v62  ;;  %v1377_v19 = vadd.f32 %v544_v11, %v460_v63  ;;  %v1379_v20 = vadd.f32 %v545_v12, %v461_v1 }
  0xa1   : > { %v554_v21 = vand.u32 2147483647, %v1365_v13  ;;  %v555_v9 = vand.u32 2147483647, %v1367_v14  ;;  %v556_v22 = vand.u32 2147483647, %v1369_v15 }
  0xa2   : > { %v557_v10 = vand.u32 2147483647, %v1371_v18  ;;  %v558_v25 = vand.u32 2147483647, %v1373_v26  ;;  %v559_v16 = vand.u32 2147483647, %v1375_v17 }
  0xa3   : > { %v560_v28 = vand.u32 2147483647, %v1377_v19  ;;  %v561_v29 = vand.u32 2147483647, %v1379_v20  ;;  %vm562_vm0 = vcmp.gt.f32.partialorder %v554_v21, 1e-06 }
  0xa4   : > { %vm563_vm1 = vcmp.gt.f32.partialorder %v555_v9, 1e-06  ;;  %vm564_vm2 = vcmp.gt.f32.partialorder %v556_v22, 1e-06  ;;  %vm565_vm3 = vcmp.gt.f32.partialorder %v557_v10, 1e-06 }
  0xa5   : > { %vm566_vm4 = vcmp.gt.f32.partialorder %v558_v25, 1e-06  ;;  %vm567_vm5 = vcmp.gt.f32.partialorder %v559_v16, 1e-06  ;;  %v570_v30 = vsel %vm562_vm0, %v1365_v13, 1e-06 }
  0xa6   : > { %v571_v32 = vsel %vm563_vm1, %v1367_v14, 1e-06  ;;  %vm568_vm6 = vcmp.gt.f32.partialorder %v560_v28, 1e-06  ;;  %v572_v33 = vsel %vm564_vm2, %v1369_v15, 1e-06 }
  0xa7   : > { %v573_v34 = vsel %vm565_vm3, %v1371_v18, 1e-06  ;;  %vm569_vm7 = vcmp.gt.f32.partialorder %v561_v29, 1e-06  ;;  %v574_v38 = vsel %vm566_vm4, %v1373_v26, 1e-06 }
  0xa8   : > { %v575_v37 = vsel %vm567_vm5, %v1375_v17, 1e-06  ;;  %v586_v50 = vrot.slane %v570_v30, 2  ;;  %v587_v51 = vrot.slane %v571_v32, 2  ;;  %v588_v52 = vrot.slane %v572_v33, 2 }
  0xa9   : > { %v576_v53 = vsel %vm568_vm6, %v1377_v19, 1e-06  ;;  %v589_v54 = vrot.slane %v573_v34, 2  ;;  %v577_v55 = vsel %vm569_vm7, %v1379_v20, 1e-06  ;;  %v590_v56 = vrot.slane %v574_v38, 2 }
  0xaa   : > { %1202 = vrcp.f32 %v586_v50  ;;  %v591_v57 = vrot.slane %v575_v37, 2  ;;  %v592_v58 = vrot.slane %v576_v53, 2  ;;  %v593_v46 = vrot.slane %v577_v55, 2 }
  0xab   : > { %1204 = vrcp.f32 %v587_v51  ;;  %v618_v23 = vrot.slane %v570_v30, 1  ;;  %v619_v24 = vrot.slane %v571_v32, 1  ;;  %v620_v27 = vrot.slane %v572_v33, 1 }
  0xac   : > { %1206 = vrcp.f32 %v588_v52  ;;  %v621_v35 = vrot.slane %v573_v34, 1  ;;  %v622_v41 = vrot.slane %v574_v38, 1  ;;  %v623_v44 = vrot.slane %v575_v37, 1 }
  0xad   : > { %1208 = vrcp.f32 %v589_v54  ;;  %v1262_v47 = vmov 1966171168   ;;  %v624_v60 = vrot.slane %v576_v53, 1  ;;  %v625_v1 = vrot.slane %v577_v55, 1 }
  0xae   : > { %1210 = vrcp.f32 %v590_v56  ;;  %v927_v48 = vunpack.c.l.s4 %v1262_v47 }
  0xaf   : > { %1212 = vrcp.f32 %v591_v57 }
  0xb0   : > { %1214 = vrcp.f32 %v592_v58  ;;  %v928_v7 = vunpack.c.0.s8 %v927_v48 }
  0xb1   : > { %1216 = vrcp.f32 %v593_v46 }
  0xb2   : > { %1218 = vrcp.f32 %v618_v23  ;;  %v1433_v10 = vsub.s32 %v928_v7, %v1303_v6 }
  0xb3   : > { %1220 = vrcp.f32 %v619_v24  ;;  %v2063_v24 = vmov 0 }
  0xb4   : > { %v1203_v31 = vpop.eup %1202  ;;  %1222 = vrcp.f32 %v620_v27 }
  0xb5   : > { %v1205_v36 = vpop.eup %1204  ;;  %v1398_v43 = vmul.f32 %v1203_v31, %v1365_v13  ;;  %1224 = vrcp.f32 %v621_v35  ;;  %v2069_v35 = vmov 0 }
  0xb6   : > { %v1207_v39 = vpop.eup %1206  ;;  %v1401_v49 = vmul.f32 %v1205_v36, %v1367_v14  ;;  %1226 = vrcp.f32 %v622_v41 }
  0xb7   : > { %v1209_v40 = vpop.eup %1208  ;;  %v1404_v59 = vmul.f32 %v1207_v39, %v1369_v15  ;;  %1228 = vrcp.f32 %v623_v44  ;;  %vm658_vm8 = vcmp.ge.f32.partialorder %v1398_v43, 0.0  ;;  %vm698_vm0 = vcmp.le.f32.partialorder %v1398_v43, 3.0 }
  0xb8   : > { %v1211_v42 = vpop.eup %1210  ;;  %v1407_v62 = vmul.f32 %v1209_v40, %v1371_v18  ;;  %1230 = vrcp.f32 %v624_v60  ;;  %vm659_vm9 = vcmp.ge.f32.partialorder %v1401_v49, 0.0  ;;  %v666_v11 = vsel %vm658_vm8, 1, %v1258_v0 }
  0xb9   : > { %v1213_v45 = vpop.eup %1212  ;;  %v1410_v63 = vmul.f32 %v1211_v42, %v1373_v26  ;;  %vm660_vm10 = vcmp.ge.f32.partialorder %v1404_v59, 0.0  ;;  %1232 = vrcp.f32 %v625_v1  ;;  %v667_v21 = vsel %vm659_vm9, 1, %v1258_v0 }
  0xba   : > { %v1215_v61 = vpop.eup %1214  ;;  %v1413_v3 = vmul.f32 %v1213_v45, %v1375_v17  ;;  %vm661_vm11 = vcmp.ge.f32.partialorder %v1407_v62, 0.0  ;;  %v668_v9 = vsel %vm660_vm10, 1, %v1258_v0  ;;  %v674_v33 = vrot.slane %v666_v11, 6 }
  0xbb   : > { %v1217_v2 = vpop.eup %1216  ;;  %v1416_v4 = vmul.f32 %v1215_v61, %v1377_v19  ;;  %vm662_vm12 = vcmp.ge.f32.partialorder %v1410_v63, 0.0  ;;  %v669_v25 = vsel %vm661_vm11, 1, %v1258_v0  ;;  %v675_v38 = vrot.slane %v667_v21, 6 }
  0xbc   : > { %v1419_v5 = vmul.f32 %v1217_v2, %v1379_v20  ;;  %v1219_v8 = vpop.eup %1218  ;;  %vm663_vm13 = vcmp.ge.f32.partialorder %v1413_v3, 0.0  ;;  %v670_v16 = vsel %vm662_vm12, 1, %v1258_v0  ;;  %v676_v37 = vrot.slane %v668_v9, 6 }
  0xbd   : > { %vm664_vm14 = vcmp.ge.f32.partialorder %v1416_v4, 0.0  ;;  %v1221_v12 = vpop.eup %1220  ;;  %v671_v29 = vsel %vm663_vm13, 1, %v1258_v0  ;;  %v1441_v34 = vmul.f32 %v1219_v8, %v1365_v13  ;;  %v677_v51 = vrot.slane %v669_v25, 6 }
  0xbe   : > { %vm665_vm15 = vcmp.ge.f32.partialorder %v1419_v5, 0.0  ;;  %v1223_v22 = vpop.eup %1222  ;;  %v672_v30 = vsel %vm664_vm14, 1, %v1258_v0  ;;  %v1445_v6 = vmul.f32 %v1221_v12, %v1367_v14  ;;  %v678_v52 = vrot.slane %v670_v16, 6 }
  0xbf   : > { %v1225_v28 = vpop.eup %1224  ;;  %v673_v32 = vsel %vm665_vm15, 1, %v1258_v0  ;;  %v1448_v50 = vmul.f32 %v1223_v22, %v1369_v15  ;;  %v679_v55 = vrot.slane %v671_v29, 6  ;;  %v680_v56 = vrot.slane %v672_v30, 6 }
  0xc0   : > { %v1227_v53 = vpop.eup %1226  ;;  %v1451_v54 = vmul.f32 %v1225_v28, %v1371_v18  ;;  %v681_v57 = vrot.slane %v673_v32, 6  ;;  %vm1453_vm1 = vcmp.ne.s32.totalorder %v674_v33, 0  ;;  %vm699_vm2 = vcmp.le.f32.partialorder %v1401_v49, 3.0 }
  0xc1   : > { %v1229_v58 = vpop.eup %1228  ;;  %vm700_vm3 = vcmp.le.f32.partialorder %v1404_v59, 3.0  ;;  %vm701_vm4 = vcmp.le.f32.partialorder %v1407_v62, 3.0  ;;  %vm1460_vm5 = vcmp.ne.s32.totalorder %v675_v38, 0  ;;  %vm702_vm6 = vcmp.le.f32.partialorder %v1410_v63, 3.0 }
  0xc2   : > { %v1231_v23 = vpop.eup %1230  ;;  %vm703_vm7 = vcmp.le.f32.partialorder %v1413_v3, 3.0  ;;  %vm704_vm8 = vcmp.le.f32.partialorder %v1416_v4, 3.0  ;;  %v1468_v31 = vmul.f32 %v1227_v53, %v1373_v26  ;;  %vm1471_vm10 = vcmp.ne.s32.totalorder %v676_v37, 0 }
  0xc3   : > { %v1233_v27 = vpop.eup %1232  ;;  %vm705_vm11 = vcmp.le.f32.partialorder %v1419_v5, 3.0  ;;  %v706_v36 = vsel %vm698_vm0, 1, %v1258_v0  ;;  %vm1480_vm13 = vcmp.ne.s32.totalorder %v677_v51, 0  ;;  %v2033_v39 = vmov 0 }
  0xc4   : > { %v2034_v39 = vsel %vm1480_vm13, 4294967295, %v2033_v39  ;;  %v707_v40 = vsel %vm699_vm2, 1, %v1258_v0  ;;  %v708_v41 = vsel %vm700_vm3, 1, %v1258_v0  ;;  %v709_v42 = vsel %vm701_vm4, 1, %v1258_v0 }
  0xc5   : > { %v1494_v44 = vmul.f32 %v1229_v58, %v1375_v17  ;;  %vm1497_vm15 = vcmp.ne.s32.totalorder %v678_v52, 0  ;;  %v2035_v45 = vmov 0  ;;  %v710_v47 = vsel %vm702_vm6, 1, %v1258_v0 }
  0xc6   : > { %v2036_v45 = vsel %vm1497_vm15, 4294967295, %v2035_v45  ;;  %v711_v48 = vsel %vm703_vm7, 1, %v1258_v0  ;;  %v712_v60 = vsel %vm704_vm8, 1, %v1258_v0  ;;  %v1511_v61 = vmul.f32 %v1231_v23, %v1377_v19 }
  0xc7   : > { %v1514_v1 = vmul.f32 %v1233_v27, %v1379_v20  ;;  %vm1517_vm2 = vcmp.ne.s32.totalorder %v679_v55, 0  ;;  %v2037_v2 = vmov 0  ;;  %v713_v7 = vsel %vm705_vm11, 1, %v1258_v0 }
  0xc8   : > { %v2038_v2 = vsel %vm1517_vm2, 4294967295, %v2037_v2  ;;  %v714_v8 = vrot.slane %v706_v36, 6  ;;  %vm1525_vm4 = vcmp.ne.s32.totalorder %v680_v56, 0  ;;  %v2039_v11 = vmov 0 }
  0xc9   : > { %v2040_v11 = vsel %vm1525_vm4, 4294967295, %v2039_v11  ;;  %v715_v12 = vrot.slane %v707_v40, 6  ;;  %v716_v21 = vrot.slane %v708_v41, 6  ;;  %v717_v9 = vrot.slane %v709_v42, 6 }
  0xca   : > { %vm1531_vm8 = vcmp.ne.s32.totalorder %v681_v57, 0  ;;  %v2041_v22 = vmov 0  ;;  %v718_v25 = vrot.slane %v710_v47, 6  ;;  %v719_v16 = vrot.slane %v711_v48, 6 }
  0xcb   : > { %v2042_v22 = vsel %vm1531_vm8, 4294967295, %v2041_v22  ;;  %v720_v28 = vrot.slane %v712_v60, 6  ;;  %vm739_vm11 = vcmp.ge.f32.partialorder %v1445_v6, 0.0  ;;  %v721_v29 = vrot.slane %v713_v7, 6 }
  0xcc   : > { %vm740_vm0 = vcmp.ge.f32.partialorder %v1448_v50, 0.0  ;;  %vm741_vm14 = vcmp.ge.f32.partialorder %v1451_v54, 0.0  ;;  %vm742_vm12 = vcmp.ge.f32.partialorder %v1468_v31, 0.0  ;;  %vm743_vm9 = vcmp.ge.f32.partialorder %v1494_v44, 0.0 }
  0xcd   : > { %vm744_vm6 = vcmp.ge.f32.partialorder %v1511_v61, 0.0  ;;  %vm745_vm8 = vcmp.ge.f32.partialorder %v1514_v1, 0.0  ;;  %vm2043_vm4 = vcmp.ge.f32.partialorder %v1441_v34, 0.0  ;;  %vm1547_vm3 = vcmp.ne.s32.totalorder %v714_v8, 0 }
  0xce   : > { %v746_v30 = vsel %vm2043_vm4, 1, %v1258_v0  ;;  %vm1551_vm2 = vcmp.ne.s32.totalorder %v715_v12, 0  ;;  %vm1555_vm15 = vcmp.ne.s32.totalorder %v716_v21, 0  ;;  %v2048_v38 = vmov 0 }
  0xcf   : > { %v2049_v38 = vsel %vm1555_vm15, 4294967295, %v2048_v38  ;;  %v747_v37 = vsel %vm739_vm11, 1, %v1258_v0  ;;  %vm2050_vm7 = vcmp.gt.f32.partialorder %v1365_v13, 0.1  ;;  %vm1568_vm4 = vcmp.ne.s32.totalorder %v717_v9, 0 }
  0xd0   : > { %vm1564_vm13 = vmand %vm2050_vm7, %vm1453_vm1  ;;  %v2053_v52 = vmov 0  ;;  %v748_v53 = vsel %vm740_vm0, 1, %v1258_v0  ;;  %v749_v55 = vsel %vm741_vm14, 1, %v1258_v0  ;;  %v750_v56 = vsel %vm742_vm12, 1, %v1258_v0 }
  0xd1   : > { %v2054_v52 = vsel %vm1568_vm4, 4294967295, %v2053_v52  ;;  %vm2055_vm11 = vcmp.gt.f32.partialorder %v1367_v14, 0.1  ;;  %vm1583_vm1 = vcmp.ne.s32.totalorder %v718_v25, 0  ;;  %v2058_v57 = vmov 0 }
  0xd2   : > { %vm1579_vm15 = vmand %vm2055_vm11, %vm1460_vm5  ;;  %v2059_v57 = vsel %vm1583_vm1, 4294967295, %v2058_v57  ;;  %v751_v58 = vsel %vm743_vm9, 1, %v1258_v0  ;;  %v1589_v46 = vsel %vm744_vm6, 1, %v1258_v0  ;;  %v1592_v23 = vsel %vm745_vm8, 1, %v1258_v0 }
  0xd3   : > { %v754_v27 = vrot.slane %v746_v30, 7  ;;  %vm2060_vm5 = vcmp.gt.f32.partialorder %v1369_v15, 0.1  ;;  %vm1602_vm14 = vcmp.ne.s32.totalorder %v719_v16, 0  ;;  %v755_v36 = vrot.slane %v747_v37, 7 }
  0xd4   : > { %vm1598_vm12 = vmand %vm2060_vm5, %vm1471_vm10  ;;  %v2064_v24 = vsel %vm1602_vm14, 4294967295, %v2063_v24  ;;  %vm2065_vm7 = vnez %v2034_v39  ;;  %vm2066_vm8 = vcmp.gt.f32.partialorder %v1371_v18, 0.1  ;;  %vm1617_vm10 = vcmp.ne.s32.totalorder %v720_v28, 0 }
  0xd5   : > { %vm1613_vm11 = vmand %vm2066_vm8, %vm2065_vm7  ;;  %v2070_v35 = vsel %vm1617_vm10, 4294967295, %v2069_v35  ;;  %vm2071_vm14 = vnez %v2036_v45  ;;  %vm2072_vm1 = vcmp.gt.f32.partialorder %v1373_v26, 0.1  ;;  %v2073_v18 = vmov 0 }
  0xd6   : > { %vm1629_vm7 = vmand %vm2072_vm1, %vm2071_vm14  ;;  %vm1633_vm8 = vcmp.ne.s32.totalorder %v721_v29, 0  ;;  %v2075_v39 = vmov 0  ;;  %v756_v40 = vrot.slane %v748_v53, 7  ;;  %v757_v41 = vrot.slane %v749_v55, 7 }
  0xd7   : > { %v2074_v18 = vsel %vm1629_vm7, 4294967295, %v2073_v18  ;;  %v2076_v39 = vsel %vm1633_vm8, 4294967295, %v2075_v39  ;;  %v758_v42 = vrot.slane %v750_v56, 7  ;;  %vm785_vm9 = vcmp.le.f32.partialorder %v1514_v1, 3.0 }
  0xd8   : > { %vm2077_vm0 = vnez %v2038_v2  ;;  %vm2078_vm6 = vcmp.gt.f32.partialorder %v1375_v17, 0.1  ;;  %v759_v26 = vrot.slane %v751_v58, 7  ;;  %vm2081_vm1 = vcmp.le.f32.partialorder %v1441_v34, 3.0 }
  0xd9   : > { %vm1642_vm5 = vmand %vm2078_vm6, %vm2077_vm0  ;;  %v786_v47 = vsel %vm2081_vm1, 1, %v1258_v0  ;;  %vm2082_vm14 = vcmp.le.f32.partialorder %v1445_v6, 3.0  ;;  %vm2083_vm8 = vcmp.le.f32.partialorder %v1448_v50, 3.0  ;;  %vm2084_vm10 = vnez %v2040_v11 }
  0xda   : > { %v787_v48 = vsel %vm2082_vm14, 1, %v1258_v0  ;;  %v1655_v60 = vsel %vm2083_vm8, 1, %v1258_v0  ;;  %vm2085_vm0 = vcmp.gt.f32.partialorder %v1377_v19, 0.1  ;;  %v2086_v17 = vmov 0 }
  0xdb   : > { %vm1661_vm6 = vmand %vm2085_vm0, %vm2084_vm10  ;;  %vm2088_vm1 = vcmp.le.f32.partialorder %v1451_v54, 3.0  ;;  %vm2089_vm14 = vcmp.le.f32.partialorder %v1468_v31, 3.0  ;;  %vm2090_vm8 = vcmp.le.f32.partialorder %v1494_v44, 3.0  ;;  %vm2091_vm10 = vcmp.le.f32.partialorder %v1511_v61, 3.0 }
  0xdc   : > { %v2087_v17 = vsel %vm1661_vm6, 4294967295, %v2086_v17  ;;  %v1668_v2 = vsel %vm2088_vm1, 1, %v1258_v0  ;;  %v1673_v7 = vsel %vm2089_vm14, 1, %v1258_v0  ;;  %v1678_v8 = vsel %vm2090_vm8, 1, %v1258_v0  ;;  %vm2120_vm8 = vmand %vm1564_vm13, %vm1547_vm3 }
  0xdd   : > { %v1683_v19 = vsel %vm2091_vm10, 1, %v1258_v0  ;;  %vm2092_vm0 = vnez %v2042_v22  ;;  %vm2093_vm1 = vcmp.gt.f32.partialorder %v1379_v20, 0.1  ;;  %v760_v12 = vrot.slane %v1589_v46, 7  ;;  %vm2126_vm13 = vmand %vm1579_vm15, %vm1551_vm2 }
  0xde   : > { %vm1689_vm6 = vmand %vm2093_vm1, %vm2092_vm0  ;;  %v761_v21 = vrot.slane %v1592_v23, 7  ;;  %vm1695_vm14 = vcmp.ne.s32.totalorder %v754_v27, 0  ;;  %v1700_v25 = vsel %vm785_vm9, 1, %v1258_v0  ;;  %vm1706_vm10 = vcmp.ne.s32.totalorder %v755_v36, 0 }
  0xdf   : > { %v2098_v20 = vmov 0  ;;  %v794_v22 = vrot.slane %v786_v47, 7  ;;  %v795_v16 = vrot.slane %v787_v48, 7  ;;  %v796_v28 = vrot.slane %v1655_v60, 7 }
  0xe0   : > { %v2099_v20 = vsel %vm1706_vm10, 4294967295, %v2098_v20  ;;  %vm1715_vm9 = vcmp.ne.s32.totalorder %v756_v40, 0  ;;  %v2100_v0 = vmov 0  ;;  %v797_v29 = vrot.slane %v1668_v2, 7 }
  0xe1   : > { %v2101_v0 = vsel %vm1715_vm9, 4294967295, %v2100_v0  ;;  %v798_v30 = vrot.slane %v1673_v7, 7  ;;  %v799_v37 = vrot.slane %v1678_v8, 7  ;;  %v800_v53 = vrot.slane %v1683_v19, 7 }
  0xe2   : > { %vm1727_vm10 = vcmp.ne.s32.totalorder %v757_v41, 0  ;;  %v2103_v55 = vmov 0  ;;  %v801_v56 = vrot.slane %v1700_v25, 7  ;;  %v1070_v58 = vmax.f32 %v1398_v43, 0.0 }
  0xe3   : > { %v2104_v55 = vsel %vm1727_vm10, 4294967295, %v2103_v55  ;;  %v1073_v46 = vmax.f32 %v1401_v49, 0.0  ;;  %v1076_v23 = vmax.f32 %v1404_v59, 0.0  ;;  %vm1739_vm9 = vcmp.ne.s32.totalorder %v758_v42, 0 }
  0xe4   : > { %v2105_v27 = vmov 0  ;;  %v1079_v36 = vmax.f32 %v1407_v62, 0.0  ;;  %v1082_v40 = vmax.f32 %v1410_v63, 0.0  ;;  %v1085_v41 = vmax.f32 %v1413_v3, 0.0 }
  0xe5   : > { %v2106_v27 = vsel %vm1739_vm9, 4294967295, %v2105_v27  ;;  %v1088_v43 = vmax.f32 %v1416_v4, 0.0  ;;  %vm1751_vm1 = vcmp.ne.s32.totalorder %v759_v26, 0  ;;  %v2108_v49 = vmov 0 }
  0xe6   : > { %v2109_v49 = vsel %vm1751_vm1, 4294967295, %v2108_v49  ;;  %v1755_v59 = vmin.f32 %v1070_v58, 3.0  ;;  %v1757_v42 = vmin.f32 %v1073_v46, 3.0  ;;  %v1759_v62 = vmin.f32 %v1076_v23, 3.0 }
  0xe7   : > { %v1091_v63 = vmax.f32 %v1419_v5, 0.0  ;;  %vm1766_vm4 = vcmp.ne.s32.totalorder %v760_v12, 0  ;;  %v2111_v3 = vmov 0  ;;  %v1770_v4 = vmin.f32 %v1079_v36, 3.0 }
  0xe8   : > { %v2112_v3 = vsel %vm1766_vm4, 4294967295, %v2111_v3  ;;  %v1772_v26 = vmin.f32 %v1082_v40, 3.0  ;;  %v1774_v47 = vmin.f32 %v1085_v41, 3.0  ;;  %v1776_v48 = vmin.f32 %v1088_v43, 3.0  ;;  %vm1810_vm4 = vmand %vm2120_vm8, %vm1695_vm14 }
  0xe9   : > { %vm2113_vm10 = vnez %v2070_v35  ;;  %vm2114_vm1 = vnez %v2087_v17  ;;  %vm1782_vm7 = vcmp.ne.s32.totalorder %v761_v21, 0  ;;  %v1122_v60 = vcvt.f32.s32 %v1755_v59 }
  0xea   : > { %v1125_v2 = vcvt.f32.s32 %v1757_v42  ;;  %v1128_v7 = vcvt.f32.s32 %v1759_v62  ;;  %v1789_v8 = vmin.f32 %v1091_v63, 3.0  ;;  %vm1795_vm0 = vcmp.ne.s32.totalorder %v794_v22, 0 }
  0xeb   : > { %v2118_v12 = vmov 0  ;;  %v1131_v21 = vcvt.f32.s32 %v1770_v4  ;;  %v1134_v58 = vcvt.f32.s32 %v1772_v26  ;;  %v1137_v46 = vcvt.f32.s32 %v1774_v47 }
  0xec   : > { %v2119_v12 = vsel %vm1795_vm0, 4294967295, %v2118_v12  ;;  %v1140_v23 = vcvt.f32.s32 %v1776_v48  ;;  %vm1814_vm0 = vcmp.ne.s32.totalorder %v795_v16, 0  ;;  %v2123_v36 = vmov 0 }
  0xed   : > { %v2124_v36 = vsel %vm1814_vm0, 4294967295, %v2123_v36  ;;  %v1143_v40 = vcvt.f32.s32 %v1789_v8  ;;  %v1094_v41 = vmax.f32 %v1441_v34, 0.0  ;;  %v1097_v43 = vmax.f32 %v1445_v6, 0.0 }
  0xee   : > { %v1100_v9 = vmax.f32 %v1448_v50, 0.0  ;;  %vm2125_vm9 = vnez %v2099_v20  ;;  %v2127_v32 = vmov 0  ;;  %vm1833_vm14 = vcmp.ne.s32.totalorder %v796_v28, 0 }
  0xef   : > { %vm1829_vm3 = vmand %vm2126_vm13, %vm2125_vm9  ;;  %v2129_v51 = vmov 0  ;;  %v1103_v34 = vmax.f32 %v1451_v54, 0.0  ;;  %v1106_v6 = vmax.f32 %v1468_v31, 0.0  ;;  %v1109_v50 = vmax.f32 %v1494_v44, 0.0 }
  0xf0   : > { %v2128_v32 = vsel %vm1829_vm3, 4294967295, %v2127_v32  ;;  %v2130_v51 = vsel %vm1833_vm14, 4294967295, %v2129_v51  ;;  %v1112_v20 = vmax.f32 %v1511_v61, 0.0  ;;  %vm2131_vm8 = vnez %v2101_v0 }
  0xf1   : > { %vm2132_vm15 = vnez %v2049_v38  ;;  %v2134_v33 = vmov 0  ;;  %vm1852_vm13 = vcmp.ne.s32.totalorder %v797_v29, 0  ;;  %v2136_v13 = vmov 0 }
  0xf2   : > { %vm2133_vm2 = vmand %vm1598_vm12, %vm2132_vm15  ;;  %v2137_v13 = vsel %vm1852_vm13, 4294967295, %v2136_v13  ;;  %v1095_v54 = vmin.f32 %v1094_v41, 3.0  ;;  %v1098_v31 = vmin.f32 %v1097_v43, 3.0  ;;  %v1101_v44 = vmin.f32 %v1100_v9, 3.0 }
  0xf3   : > { %vm1848_vm9 = vmand %vm2133_vm2, %vm2131_vm8  ;;  %v1115_v61 = vmax.f32 %v1514_v1, 0.0  ;;  %vm2138_vm14 = vnez %v2104_v55  ;;  %vm2139_vm3 = vnez %v2054_v52  ;;  %vm1868_vm15 = vcmp.ne.s32.totalorder %v798_v30, 0 }
  0xf4   : > { %v2135_v33 = vsel %vm1848_vm9, 4294967295, %v2134_v33  ;;  %vm2140_vm12 = vmand %vm1613_vm11, %vm2139_vm3  ;;  %v2143_v14 = vmov 0  ;;  %v1104_v16 = vmin.f32 %v1103_v34, 3.0  ;;  %v1107_v28 = vmin.f32 %v1106_v6, 3.0 }
  0xf5   : > { %vm1864_vm8 = vmand %vm2140_vm12, %vm2138_vm14  ;;  %v2144_v14 = vsel %vm1868_vm15, 4294967295, %v2143_v14  ;;  %v1110_v0 = vmin.f32 %v1109_v50, 3.0  ;;  %v1113_v29 = vmin.f32 %v1112_v20, 3.0  ;;  %vm2145_vm2 = vnez %v2106_v27 }
  0xf6   : > { %vm2146_vm13 = vnez %v2074_v18  ;;  %vm2147_vm9 = vnez %v2059_v57  ;;  %v2149_v1 = vmov 0  ;;  %vm1883_vm3 = vcmp.ne.s32.totalorder %v799_v37, 0 }
  0xf7   : > { %vm2148_vm0 = vmand %vm2146_vm13, %vm2147_vm9  ;;  %v1146_v15 = vcvt.f32.s32 %v1095_v54  ;;  %v1149_v30 = vcvt.f32.s32 %v1098_v31  ;;  %v1152_v55 = vcvt.f32.s32 %v1101_v44  ;;  %v1116_v59 = vmin.f32 %v1115_v61, 3.0 }
  0xf8   : > { %vm1879_vm11 = vmand %vm2148_vm0, %vm2145_vm2  ;;  %vm2153_vm14 = vnez %v2109_v49  ;;  %vm2154_vm12 = vnez %v2064_v24  ;;  %vm1900_vm0 = vcmp.ne.s32.totalorder %v800_v53, 0  ;;  %v1155_v37 = vcvt.f32.s32 %v1104_v16 }
  0xf9   : > { %v2150_v1 = vsel %vm1879_vm11, 4294967295, %v2149_v1  ;;  %vm2155_vm15 = vmand %vm1642_vm5, %vm2154_vm12  ;;  %v1158_v27 = vcvt.f32.s32 %v1107_v28  ;;  %v1161_v42 = vcvt.f32.s32 %v1110_v0  ;;  %v1164_v62 = vcvt.f32.s32 %v1113_v29 }
  0xfa   : > { %vm1894_vm9 = vmand %vm2155_vm15, %vm2153_vm14  ;;  %vm2160_vm13 = vnez %v2112_v3  ;;  %vm1917_vm2 = vcmp.ne.s32.totalorder %v801_v56, 0  ;;  %v2164_v45 = vmov 0  ;;  %v1167_v19 = vcvt.f32.s32 %v1116_v59 }
  0xfb   : > { %vm2161_vm5 = vmand %vm2114_vm1, %vm2113_vm10  ;;  %v2165_v45 = vsel %vm1917_vm2, 4294967295, %v2164_v45  ;;  %v882_v53 = vmul.u32 4, %v1146_v15  ;;  %v883_v49 = vmul.u32 4, %v1149_v30  ;;  %v890_v63 = vrot.slane %v1122_v60, 7 }
  0xfc   : > { %vm1911_vm15 = vmand %vm2161_vm5, %vm2160_vm13  ;;  %vm2166_vm10 = vnez %v2076_v39  ;;  %v2168_v35 = vmov 0  ;;  %v884_v17 = vmul.u32 4, %v1152_v55  ;;  %v885_v25 = vmul.u32 4, %v1155_v37 }
  0xfd   : > { %vm2167_vm1 = vmand %vm1689_vm6, %vm2166_vm10  ;;  %v891_v56 = vrot.slane %v1125_v2, 7  ;;  %v892_v3 = vrot.slane %v1128_v7, 7  ;;  %vm2170_vm12 = vnez %v2119_v12  ;;  %v886_v4 = vmul.u32 4, %v1158_v27 }
  0xfe   : > { %vm1928_vm14 = vmand %vm2167_vm1, %vm1782_vm7  ;;  %v887_v26 = vmul.u32 4, %v1161_v42  ;;  %v893_v47 = vrot.slane %v1131_v21, 7  ;;  %v894_v11 = vrot.slane %v1134_v58, 7  ;;  %vm2172_vm7 = vnez %v2128_v32 }
  0xff   : > { %v2169_v35 = vsel %vm1928_vm14, 4294967295, %v2168_v35  ;;  %v888_v39 = vmul.u32 4, %v1164_v62  ;;  %v889_v48 = vmul.u32 4, %v1167_v19  ;;  %v895_v5 = vrot.slane %v1137_v46, 7  ;;  %vm815_vm14 = vmand %vm1894_vm9, %vm1883_vm3 }
 0x100   : > { %v896_v60 = vrot.slane %v1140_v23, 7  ;;  %vm2173_vm10 = vnez %v2130_v51  ;;  %vm2174_vm1 = vnez %v2135_v33  ;;  %v897_v2 = vrot.slane %v1143_v40, 7  ;;  %vm816_vm2 = vmand %vm1911_vm15, %vm1900_vm0 }
 0x101   : > { %v898_v7 = vadd.s32 %v890_v63, %v882_v53  ;;  %v899_v8 = vadd.s32 %v891_v56, %v883_v49  ;;  %v900_v41 = vadd.s32 %v892_v3, %v884_v17  ;;  %vm2175_vm13 = vnez %v2137_v13  ;;  %vm2177_vm5 = vmand %vm1810_vm4, %vm2170_vm12 }
 0x102   : > { %v901_v21 = vadd.s32 %v893_v47, %v885_v25  ;;  %v902_v58 = vadd.s32 %v894_v11, %v886_v4  ;;  %v903_v43 = vadd.s32 %v895_v5, %v887_v26  ;;  %v904_v9 = vadd.s32 %v896_v60, %v888_v39  ;;  %vm2180_vm6 = vmand %vm2174_vm1, %vm2173_vm10 }
 0x103   : > { %v905_v46 = vadd.s32 %v897_v2, %v889_v48  ;;  %v906_v23 = vrot.slane %v898_v7, 7  ;;  %v907_v40 = vrot.slane %v899_v8, 7  ;;  %v908_v34 = vrot.slane %v900_v41, 7  ;;  %vm2183_vm4 = vmand %vm1864_vm8, %vm2175_vm13 }
 0x104   : > { %v909_v6 = vrot.slane %v901_v21, 7  ;;  %v910_v50 = vrot.slane %v902_v58, 7  ;;  %v911_v20 = vrot.slane %v903_v43, 7  ;;  %v912_v54 = vrot.slane %v904_v9, 7 }
 0x105   : > { %v913_v31 = vrot.slane %v905_v46, 7  ;;  %v914_v44 = vsel %vm2177_vm5, %v906_v23, 4294967295  ;;  %vm2178_vm3 = vnez %v2124_v36  ;;  %v916_v16 = vsel %vm2180_vm6, %v908_v34, 4294967295 }
 0x106   : > { %vm2179_vm9 = vmand %vm2172_vm7, %vm2178_vm3  ;;  %vm2181_vm0 = vnez %v2165_v45  ;;  %vm2182_vm15 = vnez %v2169_v35  ;;  %v917_v12 = vsel %vm2183_vm4, %v909_v6, 4294967295  ;;  %vm2184_vm12 = vnez %v2150_v1 }
 0x107   : > { %v915_v61 = vsel %vm2179_vm9, %v907_v40, 4294967295  ;;  %vm817_vm11 = vmand %vm2182_vm15, %vm2181_vm0  ;;  %vm2185_vm5 = vnez %v2144_v14  ;;  %v919_v36 = vsel %vm815_vm14, %v911_v20, 4294967295  ;;  %v920_v32 = vsel %vm816_vm2, %v912_v54, 4294967295 }
 0x108   : > { %vm2186_vm7 = vmand %vm2184_vm12, %vm2185_vm5  ;;  %v921_v51 = vsel %vm817_vm11, %v913_v31, 4294967295  ;;  %v922_v33 = vcombine.low %v914_v44, %v915_v61  ;;  %v923_v28 = vcombine.low %v916_v16, %v917_v12 }
 0x109   : > { %v918_v22 = vsel %vm2186_vm7, %v910_v50, 4294967295  ;;  %v925_v29 = vcombine.low %v920_v32, %v921_v51 }
 0x10a   : > { %v924_v0 = vcombine.low %v918_v22, %v919_v36  ;;  %v932_v52 = vrot.slane %v922_v33, %v1433_v10  ;;  %v939_v38 = vrot.slane %v923_v28, %v1433_v10 }
 0x10b   : > { %v953_v15 = vrot.slane %v925_v29, %v1433_v10 }
 0x10c   : > { %v946_v13 = vrot.slane %v924_v0, %v1433_v10  ;;  %v954_v1 = vcombine.low %v932_v52, %v939_v38 }
 0x10e   : > { %v955_v14 = vcombine.low %v946_v13, %v953_v15  ;;  %v962_v30 = vrot.slane %v954_v1, %v1433_v10 }
 0x110   : > { %v969_v55 = vrot.slane %v955_v14, %v1433_v10 }
 0x112   : > { %v970_v59 = vcombine.high %v962_v30, %v969_v55 }
 0x114   : > { %971 = vst [vmem:[%s182_s28] sm:$0xff] %v970_v59 }
 0x115 PF: > { %s12_s11 = sadd.s32 1, %s1256_s11   ;;  %s2187_s9 = smov %s1252_s10 }
 0x116   : > { %p9_p5 = scmp.ge.s32.totalorder %s12_s11, 6   ;;  %s2188_s10 = smov %s2190_s12 }
 0x118   :  { %11 = sbr.rel (!%p9_p5) target bundleno = 2 (0x2), region = 61 }

// kernel: forward.7
= control target key start
LH: loop header
LB: loop body
LE: loop exit
PB: predicated region body
PF: predicated region fallthrough
CT: control target
= control target key end

     0   :  { %s651_s20 = smov 0   ;;  %s653_s21 = smov 0   ;;  %s712_s0 = inlined_call_operand.vmem [shape: f32[2,32,256], index: 0, kind: input, shape index: {}]   ;;  %s713_s1 = inlined_call_operand.vmem [shape: bf16[32,32], index: 1, kind: input, shape index: {}]   ;;  %s714_s2 = inlined_call_operand.vmem [shape: f32[32,1], index: 2, kind: input, shape index: {}]   ;;  %s715_s3 = inlined_call_operand.vmem [shape: bf16[1,32], index: 3, kind: input, shape index: {}]   ;;  %s716_s4 = inlined_call_operand.<no memory space> [shape: f32[1,1], index: 4, kind: input, shape index: {}]   ;;  %s717_s5 = inlined_call_operand.vmem [shape: f32[2,1,256], index: 5, kind: output, shape index: {}]  }
   0x1   :  { %v10_v0 = vstv %s716_s4  ;;  %s655_s22 = smov 0  }
   0x2   :  { %11 = vst [vmem:[#allocation2] sm:$0x1] %v10_v0 }
   0x3 LB: > { %s29_s4 = sadd.s32 1, %s610_s21  ;;  %p550_p0 = scmp.ge.s32.totalorder %s614_s22, 1  ;;  %s614_s22 = sphi %s655_s22, %s17_s22   ;;  %s610_s21 = sphi %s653_s21, %s719_s21   ;;  %s606_s20 = sphi %s651_s20, %s718_s20  }
   0x4   : > { %p31_p1 = scmp.ge.s32.totalorder %s29_s4, 2  ;;  %p210_p2 = scmp.lt.s32.totalorder %s614_s22, 3 }
   0x6   : > { %s721_s4 = smov (%p31_p1, %s29_s4), 0  ;;  %p211_p3 = pnand %p550_p0, %p210_p2 }
   0x7   : > { %p246_p4 = scmp.lt.s32.totalorder (!%p211_p3), %s606_s20, 1  ;;  %v616_v1 = vmov (!%p211_p3), 0   ;;  %v281_v2 = vld [vmem:[%s714_s2] sm:$0xff] (!%p211_p3)  ;;  %v283_v3 = vld [vmem:[%s714_s2 + $0x10] sm:$0xff] (!%p211_p3)  ;;  %v282_v4 = vld [vmem:[%s714_s2 + $0x8] sm:$0xff] (!%p211_p3)  ;;  %vm315_vm0 = vcmask (!%p211_p3), 261120   ;;  %v394_v54 = vlaneseq (!%p211_p3) }
   0x8   : > { %214 = sbr.rel (%p211_p3) target bundleno = 484 (0x1e4), region = 40  ;;  %354 = vmatprep.mubr.bf16.mxu0 (!%p211_p3), %v616_v1  ;;  %588 = vset.pattern.permute.xlu0 (!%p211_p3), %v616_v1  ;;  %v284_v5 = vld [vmem:[%s714_s2 + $0x18] sm:$0xff] (!%p211_p3)  ;;  %v590_v19 = vld [vmem:[%s713_s1] sm:$0xff] (!%p211_p3)   ;;  %v591_v20 = vld [vmem:[%s713_s1 + $0x8] sm:$0xff] (!%p211_p3)   ;;  %v617_v56 = vmov (!%p211_p3), 1966171168  }
   0x9   : > { %589 = vset.pattern.permute.xlu1 (!%p211_p3), %v616_v1  ;;  %433 = vmatprep.mubr.bf16.mxu1 (!%p211_p3), %v616_v1  ;;  %v388_v17 = vld [vmem:[#allocation2] sm:$0x1] (!%p211_p3)  ;;  %v395_v55 = vshrl.u32 (!%p211_p3), %v394_v54, 7  ;;  %v446_v57 = vunpack.c.l.s4 (!%p211_p3), %v617_v56  ;;  %vm462_vm1 = vcmp.lt.s32.totalorder (!%p211_p3), %v394_v54, 256 }
   0xa   : > { %287 = vperm.xlu0 (!%p211_p3), %588, %v281_v2   ;;  %297 = vperm.xlu1 (!%p211_p3), %589, %v283_v3   ;;  %v383_v53 = vld [vmem:[%s715_s3] sm:$0x1] (!%p211_p3) }
   0xb   : > { %v396_v58 = vsub.s32 (!%p211_p3), 0, %v395_v55  ;;  %v447_v60 = vunpack.c.0.s8 (!%p211_p3), %v446_v57 }
   0xd   : > { %v450_v2 = vsub.s32 (!%p211_p3), %v447_v60, %v395_v55 }
   0xe   : > { %292 = vperm.xlu0 (!%p211_p3), %588, %v282_v4   ;;  %302 = vperm.xlu1 (!%p211_p3), %589, %v284_v5  }
   0xf   : > { %s723_s20 = smov (!%p246_p4, %s606_s20), 1 }
  0x10   : > { %s561_s27 = sshll.u32 %s723_s20, 6  ;;  %s553_s16 = sshll.u32 %s723_s20, 1 }
  0x11   : > { %s253_s7 = scalar_lea.vmem %s712_s0, %s561_s27  ;;  %s262_s19 = scalar_lea.vmem %s717_s5, %s553_s16 }
  0x12   : > { %v266_v6 = vld [vmem:[%s253_s7 + $0x8] sm:$0xff]  ;;  %v268_v7 = vld [vmem:[%s253_s7 + $0x18] sm:$0xff]  ;;  %v265_v8 = vld [vmem:[%s253_s7] sm:$0xff]  ;;  %391 = vperm.xlu0 %588, %v388_v17  }
  0x13   : > { %v274_v9 = vpack.c.bf16 %v268_v7, %v266_v6  ;;  %v267_v10 = vld [vmem:[%s253_s7 + $0x10] sm:$0xff]  ;;  %v270_v11 = vld [vmem:[%s253_s7 + $0x28] sm:$0xff]  ;;  %v272_v12 = vld [vmem:[%s253_s7 + $0x38] sm:$0xff] }
  0x14   : > { %v273_v13 = vpack.c.bf16 %v267_v10, %v265_v8  ;;  %v276_v14 = vpack.c.bf16 %v272_v12, %v270_v11  ;;  %v269_v15 = vld [vmem:[%s253_s7 + $0x20] sm:$0xff]  ;;  %v271_v16 = vld [vmem:[%s253_s7 + $0x30] sm:$0xff] }
  0x15   : > { %322 = vmatprep.subr.bf16.mxu0 %v274_v9  ;;  %v275_v18 = vpack.c.bf16 %v271_v16, %v269_v15 }
  0x16   : > { %323 = vmatpush1.bf16.msra.mxu0 %v273_v13 }
  0x17   : > { %324 = vmatprep.subr.bf16.mxu0 %v276_v14 }
  0x1a   : > { %325 = vmatpush1.bf16.msra.mxu0 %v275_v18 }
  0x1d   : > { %556 = vmatmul.mubr.msk.bf16.vlgmr.msra.gmra.mrb[0].mxu0 %vm315_vm0, %v590_v19 }
  0x1e   : > { %364 = vmatprep.mubr.bf16.mxu0 %v616_v1 }
  0x25   : > { %557 = vmatmul.mubr.msk.bf16.gmra.mrb[4].mxu0 %vm315_vm0, %v591_v20 }
  0x89   : > { %v288_v21 = vpop.permute.xlu0 %287  ;;  %v298_v30 = vpop.permute.xlu1 %297 }
  0x8d   : > { %v293_v25 = vpop.permute.xlu0 %292  ;;  %v303_v41 = vpop.permute.xlu1 %302 }
  0x91   : > { %v392_v59 = vpop.permute.xlu0 %391 }
  0x92   : > { %v397_v61 = vrot.slane %v392_v59, %v396_v58 }
  0xf0   : > { %v356_v22 = vpop.f32.mrb[0].mxu0 }
  0xf1   : > { %v357_v23 = vadd.f32 %v356_v22, %v288_v21  ;;  %v358_v24 = vpop.f32.mrb[1].mxu0 }
  0xf2   : > { %v359_v26 = vadd.f32 %v358_v24, %v288_v21  ;;  %v360_v27 = vpop.f32.mrb[2].mxu0 }
  0xf3   : > { %v361_v28 = vadd.f32 %v360_v27, %v293_v25  ;;  %v362_v29 = vpop.f32.mrb[3].mxu0  ;;  %v375_v32 = vmax.f32 %v357_v23, 0.0 }
  0xf4   : > { %v363_v31 = vadd.f32 %v362_v29, %v293_v25  ;;  %v376_v34 = vmax.f32 %v359_v26, 0.0 }
  0xf5   : > { %v377_v33 = vmax.f32 %v361_v28, 0.0 }
  0xf6   : > { %v378_v35 = vmax.f32 %v363_v31, 0.0 }
  0xf7   : > { %v384_v36 = vpack.c.bf16 %v377_v33, %v375_v32 }
  0xf8   : > { %v366_v37 = vpop.f32.mrb[4].mxu0  ;;  %v385_v38 = vpack.c.bf16 %v378_v35, %v376_v34 }
  0xf9   : > { %v367_v39 = vadd.f32 %v366_v37, %v298_v30  ;;  %v368_v40 = vpop.f32.mrb[5].mxu0 }
  0xfa   : > { %v369_v42 = vadd.f32 %v368_v40, %v298_v30  ;;  %v370_v43 = vpop.f32.mrb[6].mxu0  ;;  %401 = vmatprep.subr.bf16.mxu1 %v385_v38 }
  0xfb   : > { %v371_v44 = vadd.f32 %v370_v43, %v303_v41  ;;  %v372_v45 = vpop.f32.mrb[7].mxu0  ;;  %402 = vmatpush1.bf16.msra.mxu1 %v384_v36  ;;  %v379_v47 = vmax.f32 %v367_v39, 0.0 }
  0xfc   : > { %v373_v46 = vadd.f32 %v372_v45, %v303_v41  ;;  %v380_v49 = vmax.f32 %v369_v42, 0.0 }
  0xfd   : > { %v381_v48 = vmax.f32 %v371_v44, 0.0 }
  0xfe   : > { %v382_v50 = vmax.f32 %v373_v46, 0.0 }
  0xff   : > { %v386_v51 = vpack.c.bf16 %v381_v48, %v379_v47 }
 0x100   : > { %v387_v52 = vpack.c.bf16 %v382_v50, %v380_v49 }
 0x102   : > { %403 = vmatprep.subr.bf16.mxu1 %v387_v52 }
 0x103   : > { %404 = vmatpush1.bf16.msra.mxu1 %v386_v51 }
 0x106   : > { %558 = vmatmul.mubr.msk.bf16.vlgmr.msra.gmra.mrb[0].mxu1 %vm315_vm0, %v383_v53 }
 0x1d9   : > { %v435_v62 = vpop.f32.mrb[0].mxu1 }
 0x1da   : > { %v436_v63 = vadd.f32 %v435_v62, %v397_v61  ;;  %v437_v0 = vpop.f32.mrb[1].mxu1 }
 0x1db   : > { %v438_v1 = vadd.f32 %v437_v0, %v397_v61  ;;  %v439_v3 = vpop.f32.mrb[2].mxu1 }
 0x1dc   : > { %v440_v4 = vpop.f32.mrb[3].mxu1 }
 0x1dd   : > { %v444_v5 = vcombine.low %v436_v63, %v438_v1 }
 0x1df   : > { %v451_v6 = vrot.slane %v444_v5, %v450_v2 }
 0x1e1   : > { %v458_v7 = vrot.slane %v451_v6, %v450_v2 }
 0x1e3   : > { %464 = vst.msk [vmem:[%s262_s19] sm:$0x3] %vm462_vm1, %v458_v7 }
 0x1e4 PF: > { %s17_s22 = sadd.s32 1, %s614_s22   ;;  %s718_s20 = smov %s610_s21 }
 0x1e5   : > { %p14_p5 = scmp.ge.s32.totalorder %s17_s22, 4   ;;  %s719_s21 = smov %s721_s4 }
 0x1e7   :  { %16 = sbr.rel (!%p14_p5) target bundleno = 3 (0x3), region = 70 }

// kernel: forward.6
= control target key start
LH: loop header
LB: loop body
LE: loop exit
PB: predicated region body
PF: predicated region fallthrough
CT: control target
= control target key end

     0   :  { %s2524_s12 = smov 0   ;;  %s2526_s13 = smov 0   ;;  %s3572_s0 = inlined_call_operand.vmem [shape: s32[2,2,1,1024], index: 0, kind: input, shape index: {}]   ;;  %s3573_s1 = inlined_call_operand.vmem [shape: bf16[2,2,32,16], index: 1, kind: input, shape index: {}]   ;;  %s3574_s2 = inlined_call_operand.vmem [shape: bf16[1024,256], index: 2, kind: input, shape index: {}]   ;;  %s3575_s3 = inlined_call_operand.vmem [shape: f32[2,32,256], index: 3, kind: output, shape index: {}]  }
   0x1   :  { %s2528_s14 = smov 0   ;;  %s2530_s15 = smov 0  }
   0x2   :  { %s2532_s16 = smov 0  }
   0x3 LB: > { %s25_s17 = sadd.s32 1, %s2489_s14  ;;  %s32_s18 = sadd.s32 1, %s2493_s15  ;;  %s2497_s16 = sphi %s2532_s16, %s13_s16   ;;  %s2493_s15 = sphi %s2530_s15, %s3695_s15   ;;  %s2489_s14 = sphi %s2528_s14, %s3694_s14   ;;  %s2485_s13 = sphi %s2526_s13, %s3693_s13   ;;  %s2481_s12 = sphi %s2524_s12, %s3692_s12  }
   0x4   : > { %p26_p0 = scmp.ge.s32.totalorder %s25_s17, 2  ;;  %p2013_p1 = scmp.ge.s32.totalorder %s2497_s16, 1 }
   0x5   : > { %p186_p2 = scmp.lt.s32.totalorder %s2497_s16, 5 }
   0x6   : > { %s3697_s17 = smov (%p26_p0, %s25_s17), 0  ;;  %s3699_s18 = smov (!%p26_p0, %s32_s18), %s2493_s15 }
   0x7   : > { %p187_p3 = pnand %p2013_p1, %p186_p2  ;;  %p34_p4 = scmp.ge.s32.totalorder %s3699_s18, 2 }
   0x9   : > { %s3701_s18 = smov (%p34_p4, %s3699_s18), 0  ;;  %190 = sbr.rel (%p187_p3) target bundleno = 693 (0x2b5), region = 32 }
  0x10   : > { %p231_p5 = scmp.lt.s32.totalorder %s2485_s13, 1  ;;  %p233_p6 = scmp.lt.s32.totalorder %s2481_s12, 1 }
  0x11   : > { %p2021_p7 = scmp.ne.s32.totalorder %s2481_s12, 0 }
  0x12   : > { %s3703_s13 = smov (!%p231_p5, %s2485_s13), 1  ;;  %v275_v0 = vlaneseq (!%p2021_p7)  ;;  %v2499_v1 = vmov (!%p2021_p7), 0.0  }
  0x13   : > { %s234_s19 = scalar_select %p233_p6, %s2481_s12, 1 }
  0x14   : > { %s2015_s20 = sshll.u32 %s3703_s13, 4  ;;  %s2017_s21 = sshll.u32 %s3703_s13, 3  ;;  %267 = vst [vmem:[#allocation2] sm:$0xff] (!%p2021_p7), %v2499_v1  ;;  %268 = vst [vmem:[#allocation2 + $0x8] sm:$0xff] (!%p2021_p7), %v2499_v1  ;;  %vm277_vm0 = vcmp.lt.s32.totalorder (!%p2021_p7), %v275_v0, 256 }
  0x15   : > { %s2014_s22 = sshll.u32 %s234_s19, 3  ;;  %s2016_s23 = sshll.u32 %s234_s19, 2  ;;  %269 = vst [vmem:[#allocation2 + $0x10] sm:$0xff] (!%p2021_p7), %v2499_v1  ;;  %270 = vst [vmem:[#allocation2 + $0x18] sm:$0xff] (!%p2021_p7), %v2499_v1 }
  0x16   : > { %s240_s24 = sadd.s32 %s2015_s20, %s2014_s22  ;;  %s249_s25 = sadd.s32 %s2017_s21, %s2016_s23  ;;  %271 = vst [vmem:[#allocation2 + $0x20] sm:$0xff] (!%p2021_p7), %v2499_v1  ;;  %272 = vst [vmem:[#allocation2 + $0x28] sm:$0xff] (!%p2021_p7), %v2499_v1 }
  0x17   : > { %s241_s28 = scalar_lea.vmem %s3572_s0, %s240_s24  ;;  %s2018_s29 = sshll.u32 %s249_s25, 2  ;;  %273 = vst [vmem:[#allocation2 + $0x30] sm:$0xff] (!%p2021_p7), %v2499_v1  ;;  %274 = vst [vmem:[#allocation2 + $0x38] sm:$0xff] (!%p2021_p7), %v2499_v1 }
  0x18   : > { %s2564_s5 = scalar_lea.vmem %s3573_s1, %s2018_s29  ;;  %s2179_s6 = sshll.u32 %s3703_s13, 6  ;;  %279 = vst.msk [vmem:[#allocation3] sm:$0x3] (!%p2021_p7), %vm277_vm0, %v2499_v1 }
  0x19   : > { %s2569_s9 = scalar_lea.vmem %s3575_s3, %s2179_s6  ;;  %266 = sbr.rel (%p2021_p7) target bundleno = 32 (0x20), region = 36 }
  0x20 PF: > { %v3576_v2 = vlaneseq  ;;  %v2500_v3 = vmov 0   ;;  %v2577_v5 = vld [vmem:[%s241_s28] sm:$0xff]  ;;  %v2501_v19 = vmov 1.0|1.0   ;;  %v2262_v22 = vld [vmem:[%s2564_s5 + $0x8] sm:$0xff]   ;;  %v2502_v26 = vmov 0.0  }
  0x21   : > { %460 = vmatprep.mubr.bf16.mxu0 %v2500_v3  ;;  %513 = vmatprep.mubr.bf16.mxu1 %v2500_v3  ;;  %v2261_v20 = vld [vmem:[%s2564_s5] sm:$0xff]   ;;  %v2268_v28 = vld [vmem:[%s3574_s2 + $0x14] ss:$8 sps:$4 sm:$0xff]   ;;  %v2266_v30 = vld [vmem:[%s3574_s2 + $0x10] ss:$8 sps:$4 sm:$0xff]   ;;  %p2176_p8 = scmp.ne.s32.totalorder %s2481_s12, 1 }
  0x22   : > { %v2575_v4 = vshrl.u32 %v3576_v2, 7  ;;  %v2265_v21 = vld [vmem:[%s3574_s2 + $0x4] ss:$8 sps:$4 sm:$0xff]   ;;  %v2263_v24 = vld [vmem:[%s3574_s2] ss:$8 sps:$4 sm:$0xff]  }
  0x23   : > { %v2271_v33 = vld [vmem:[%s3574_s2 + $0x24] ss:$8 sps:$4 sm:$0xff]   ;;  %v2269_v34 = vld [vmem:[%s3574_s2 + $0x20] ss:$8 sps:$4 sm:$0xff]   ;;  %v2274_v36 = vld [vmem:[%s3574_s2 + $0x34] ss:$8 sps:$4 sm:$0xff]  }
  0x24   : > { %v2580_v6 = vadd.s32 8, %v2575_v4  ;;  %v2583_v7 = vsub.s32 1, %v2575_v4  ;;  %v298_v8 = vsub.s32 3, %v2575_v4  ;;  %v2587_v9 = vsub.s32 0, %v2575_v4  ;;  %v2272_v37 = vld [vmem:[%s3574_s2 + $0x30] ss:$8 sps:$4 sm:$0xff]  }
  0x25   : > { %v294_v10 = vsub.s32 2, %v2575_v4  ;;  %v3578_v11 = vsub.s32 7, %v2575_v4  ;;  %v3577_v12 = vsub.s32 6, %v2575_v4  ;;  %v306_v23 = vsub.s32 5, %v2575_v4  ;;  %v2277_v38 = vld [vmem:[%s3574_s2 + $0x44] ss:$8 sps:$4 sm:$0xff]  }
  0x26   : > { %3613 = vst [vmem:[#allocation4_spill] sm:$0xff] %v2583_v7  ;;  %3614 = vst [vmem:[#allocation5_spill] sm:$0xff] %v2587_v9  ;;  %v291_v13 = vrot.slane %v2577_v5, %v2583_v7  ;;  %v299_v14 = vrot.slane %v2577_v5, %v298_v8  ;;  %v287_v15 = vrot.slane %v2577_v5, %v2587_v9  ;;  %v3579_v25 = vsub.s32 4, %v2575_v4  ;;  %v2275_v39 = vld [vmem:[%s3574_s2 + $0x40] ss:$8 sps:$4 sm:$0xff]  }
  0x27   : > { %v295_v16 = vrot.slane %v2577_v5, %v294_v10  ;;  %v315_v17 = vrot.slane %v2577_v5, %v3578_v11  ;;  %v311_v18 = vrot.slane %v2577_v5, %v3577_v12  ;;  %v307_v29 = vrot.slane %v2577_v5, %v306_v23  ;;  %v2280_v40 = vld [vmem:[%s3574_s2 + $0x54] ss:$8 sps:$4 sm:$0xff]   ;;  %v2278_v41 = vld [vmem:[%s3574_s2 + $0x50] ss:$8 sps:$4 sm:$0xff]   ;;  %v2283_v42 = vld [vmem:[%s3574_s2 + $0x64] ss:$8 sps:$4 sm:$0xff]  }
  0x28   : > { %vm317_vm1 = vcmp.eq.s32.totalorder %v2575_v4, %v291_v13  ;;  %vm325_vm2 = vcmp.eq.s32.totalorder %v2580_v6, %v291_v13  ;;  %vm319_vm3 = vcmp.eq.s32.totalorder %v2575_v4, %v299_v14  ;;  %vm327_vm4 = vcmp.eq.s32.totalorder %v2580_v6, %v299_v14  ;;  %v2281_v43 = vld [vmem:[%s3574_s2 + $0x60] ss:$8 sps:$4 sm:$0xff]   ;;  %v2286_v44 = vld [vmem:[%s3574_s2 + $0x74] ss:$8 sps:$4 sm:$0xff]   ;;  %v2284_v45 = vld [vmem:[%s3574_s2 + $0x70] ss:$8 sps:$4 sm:$0xff]  }
  0x29   : > { %vm2024_vm5 = vmpackc.low %vm325_vm2, %vm317_vm1  ;;  %vm316_vm6 = vcmp.eq.s32.totalorder %v2575_v4, %v287_v15  ;;  %vm324_vm7 = vcmp.eq.s32.totalorder %v2580_v6, %v287_v15  ;;  %vm318_vm8 = vcmp.eq.s32.totalorder %v2575_v4, %v295_v16  ;;  %vm326_vm10 = vcmp.eq.s32.totalorder %v2580_v6, %v295_v16  ;;  %v2289_v46 = vld [vmem:[%s3574_s2 + $0x84] ss:$8 sps:$4 sm:$0xff]   ;;  %v2287_v47 = vld [vmem:[%s3574_s2 + $0x80] ss:$8 sps:$4 sm:$0xff]  }
  0x2a   : > { %2025 = vmatprep.subr.msk.bf16.mxu0 %vm2024_vm5, %v2501_v19  ;;  %vm2030_vm9 = vmpackc.low %vm327_vm4, %vm319_vm3  ;;  %vm323_vm11 = vcmp.eq.s32.totalorder %v2575_v4, %v315_v17  ;;  %vm331_vm12 = vcmp.eq.s32.totalorder %v2580_v6, %v315_v17  ;;  %vm322_vm14 = vcmp.eq.s32.totalorder %v2575_v4, %v311_v18  ;;  %vm330_vm15 = vcmp.eq.s32.totalorder %v2580_v6, %v311_v18  ;;  %v2292_v48 = vld [vmem:[%s3574_s2 + $0x94] ss:$8 sps:$4 sm:$0xff]   ;;  %v2290_v49 = vld [vmem:[%s3574_s2 + $0x90] ss:$8 sps:$4 sm:$0xff]  }
  0x2b   : > { %2031 = vmatprep.subr.msk.bf16.mxu1 %vm2030_vm9, %v2501_v19  ;;  %vm2026_vm13 = vmpackc.low %vm324_vm7, %vm316_vm6  ;;  %vm421_vm1 = vcmask 130048   ;;  %vm356_vm4 = vcmp.ge.s32.totalorder %v2577_v5, 0  ;;  %v303_v32 = vrot.slane %v2577_v5, %v3579_v25  ;;  %vm321_vm5 = vcmp.eq.s32.totalorder %v2575_v4, %v307_v29  ;;  %v2295_v50 = vld [vmem:[%s3574_s2 + $0xa4] ss:$8 sps:$4 sm:$0xff]   ;;  %v2293_v51 = vld [vmem:[%s3574_s2 + $0xa0] ss:$8 sps:$4 sm:$0xff]  }
  0x2c   : > { %2027 = vmatpush1.bf16.msk.msra.mxu0 %vm2026_vm13, %v2501_v19  ;;  %vm2032_vm0 = vmpackc.low %vm326_vm10, %vm318_vm8  ;;  %v2645_v27 = vsel %vm356_vm4, 1.0, %v2502_v26  ;;  %vm329_vm6 = vcmp.eq.s32.totalorder %v2580_v6, %v307_v29  ;;  %v2298_v52 = vld [vmem:[%s3574_s2 + $0xb4] ss:$8 sps:$4 sm:$0xff]   ;;  %v2296_v53 = vld [vmem:[%s3574_s2 + $0xb0] ss:$8 sps:$4 sm:$0xff]  }
  0x2d   : > { %2033 = vmatpush1.bf16.msk.msra.mxu1 %vm2032_vm0, %v2501_v19  ;;  %vm2042_vm2 = vmpackc.low %vm331_vm12, %vm323_vm11  ;;  %v366_v31 = vrot.slane %v2645_v27, %v2583_v7  ;;  %vm320_vm7 = vcmp.eq.s32.totalorder %v2575_v4, %v303_v32  ;;  %vm328_vm8 = vcmp.eq.s32.totalorder %v2580_v6, %v303_v32  ;;  %v2301_v54 = vld [vmem:[%s3574_s2 + $0xc4] ss:$8 sps:$4 sm:$0xff]   ;;  %v2299_v55 = vld [vmem:[%s3574_s2 + $0xc0] ss:$8 sps:$4 sm:$0xff]   ;;  %v362_v61 = vrot.slane %v2645_v27, %v2587_v9 }
  0x2e   : > { %2043 = vmatprep.subr.msk.bf16.mxu1 %vm2042_vm2, %v2501_v19  ;;  %vm2044_vm3 = vmpackc.low %vm330_vm15, %vm322_vm14  ;;  %v2304_v56 = vld [vmem:[%s3574_s2 + $0xd4] ss:$8 sps:$4 sm:$0xff]   ;;  %v2302_v57 = vld [vmem:[%s3574_s2 + $0xd0] ss:$8 sps:$4 sm:$0xff]   ;;  %v374_v63 = vrot.slane %v2645_v27, %v298_v8 }
  0x2f   : > { %2028 = vmatmul.mubr.msk.bf16.vlgmr.msra.gmra.mrb[0].mxu0 %vm421_vm1, %v2261_v20  ;;  %v400_v35 = vpack.c.bf16 %v366_v31, %v366_v31  ;;  %vm2036_vm9 = vmpackc.low %vm329_vm6, %vm321_vm5  ;;  %v2307_v58 = vld [vmem:[%s3574_s2 + $0xe4] ss:$8 sps:$4 sm:$0xff]   ;;  %v2305_v59 = vld [vmem:[%s3574_s2 + $0xe0] ss:$8 sps:$4 sm:$0xff]   ;;  %v399_v1 = vpack.c.bf16 %v362_v61, %v362_v61 }
  0x30   : > { %2034 = vmatmul.mubr.msk.bf16.vlgmr.msra.gmra.mrb[0].mxu1 %vm421_vm1, %v2261_v20  ;;  %470 = vmatprep.mubr.bf16.mxu0 %v2500_v3  ;;  %vm2038_vm10 = vmpackc.low %vm328_vm8, %vm320_vm7  ;;  %v2310_v60 = vld [vmem:[%s3574_s2 + $0xf4] ss:$8 sps:$4 sm:$0xff]   ;;  %v2308_v62 = vld [vmem:[%s3574_s2 + $0xf0] ss:$8 sps:$4 sm:$0xff]   ;;  %v402_v5 = vpack.c.bf16 %v374_v63, %v374_v63 }
  0x31   : > { %523 = vmatprep.mubr.bf16.mxu1 %v2500_v3  ;;  %2045 = vmatpush1.bf16.msk.msra.mxu1 %vm2044_vm3, %v2501_v19  ;;  %v2313_v0 = vld [vmem:[%s3574_s2 + $0x104] ss:$8 sps:$4 sm:$0xff]   ;;  %v2773_v6 = vld [vmem:[%s3574_s2 + $0x114] ss:$8 sps:$4 sm:$0xff]   ;;  %v2779_v8 = vld [vmem:[%s3574_s2 + $0x110] ss:$8 sps:$4 sm:$0xff]  }
  0x32   : > { %1661 = vmatprep.subr.bf16.mxu1 %v2265_v21  ;;  %2037 = vmatprep.subr.msk.bf16.mxu0 %vm2036_vm9, %v2501_v19  ;;  %v2785_v13 = vld [vmem:[%s3574_s2 + $0x124] ss:$8 sps:$4 sm:$0xff]   ;;  %v2791_v14 = vld [vmem:[%s3574_s2 + $0x120] ss:$8 sps:$4 sm:$0xff]   ;;  %v2797_v15 = vld [vmem:[%s3574_s2 + $0x134] ss:$8 sps:$4 sm:$0xff]  }
  0x33   : > { %2039 = vmatpush1.bf16.msk.msra.mxu0 %vm2038_vm10, %v2501_v19  ;;  %v2803_v16 = vld [vmem:[%s3574_s2 + $0x130] ss:$8 sps:$4 sm:$0xff]   ;;  %v2809_v17 = vld [vmem:[%s3574_s2 + $0x144] ss:$8 sps:$4 sm:$0xff]   ;;  %v2815_v18 = vld [vmem:[%s3574_s2 + $0x140] ss:$8 sps:$4 sm:$0xff]  }
  0x34   : > { %1432 = vmatprep.subr.bf16.mxu0 %v2265_v21  ;;  %v2821_v19 = vld [vmem:[%s3574_s2 + $0x154] ss:$8 sps:$4 sm:$0xff]   ;;  %v2833_v21 = vld [vmem:[%s3574_s2 + $0x164] ss:$8 sps:$4 sm:$0xff]   ;;  %v2851_v26 = vld [vmem:[%s3574_s2 + $0x170] ss:$8 sps:$4 sm:$0xff]  }
  0x35   : > { %v2863_v29 = vld [vmem:[%s3574_s2 + $0x180] ss:$8 sps:$4 sm:$0xff]   ;;  %v2875_v31 = vld [vmem:[%s3574_s2 + $0x190] ss:$8 sps:$4 sm:$0xff]   ;;  %v2881_v32 = vld [vmem:[%s3574_s2 + $0x1a4] ss:$8 sps:$4 sm:$0xff]  }
  0x36   : > { %v3049_v61 = vld [vmem:[%s3574_s2 + $0x270] ss:$8 sps:$4 sm:$0xff]   ;;  %v3061_v63 = vld [vmem:[%s3574_s2 + $0x280] ss:$8 sps:$4 sm:$0xff]   ;;  %v3115_v12 = vld [vmem:[%s3574_s2 + $0x2d4] ss:$8 sps:$4 sm:$0xff]  }
  0x37   : > { %2029 = vmatmul.mubr.msk.bf16.gmra.mrb[4].mxu0 %vm421_vm1, %v2262_v22  ;;  %3616 = vst [vmem:[#allocation7_spill] sm:$0xff] %v3061_v63  ;;  %v3109_v2 = vld [vmem:[%s3574_s2 + $0x2c0] ss:$8 sps:$4 sm:$0xff]   ;;  %3625 = vst [vmem:[#allocation16_spill] sm:$0xff] %v3115_v12  ;;  %v3121_v11 = vld [vmem:[%s3574_s2 + $0x2d0] ss:$8 sps:$4 sm:$0xff]  }
  0x38   : > { %2035 = vmatmul.mubr.msk.bf16.gmra.mrb[4].mxu1 %vm421_vm1, %v2262_v22  ;;  %566 = vmatprep.mubr.bf16.mxu0 %v2500_v3  ;;  %3624 = vst [vmem:[#allocation15_spill] sm:$0xff] %v3109_v2  ;;  %3626 = vst [vmem:[#allocation17_spill] sm:$0xff] %v3121_v11  ;;  %v3127_v25 = vld [vmem:[%s3574_s2 + $0x2e4] ss:$8 sps:$4 sm:$0xff]   ;;  %v3133_v7 = vld [vmem:[%s3574_s2 + $0x2e0] ss:$8 sps:$4 sm:$0xff]  }
  0x39   : > { %619 = vmatprep.mubr.bf16.mxu1 %v2500_v3  ;;  %3627 = vst [vmem:[#allocation18_spill] sm:$0xff] %v3127_v25  ;;  %3628 = vst [vmem:[#allocation19_spill] sm:$0xff] %v3133_v7  ;;  %v3139_v9 = vld [vmem:[%s3574_s2 + $0x2f4] ss:$8 sps:$4 sm:$0xff]  }
  0x3a   : > { %3629 = vst [vmem:[#allocation20_spill] sm:$0xff] %v3139_v9 }
  0x3f   : > { %2040 = vmatmul.mubr.msk.bf16.vlgmr.msra.gmra.mrb[8].mxu0 %vm421_vm1, %v2261_v20 }
  0x40   : > { %2046 = vmatmul.mubr.msk.bf16.vlgmr.msra.gmra.mrb[8].mxu1 %vm421_vm1, %v2261_v20  ;;  %576 = vmatprep.mubr.bf16.mxu0 %v2500_v3  ;;  %v2827_v20 = vld [vmem:[%s3574_s2 + $0x150] ss:$8 sps:$4 sm:$0xff]  }
  0x41   : > { %1662 = vmatpush1.bf16.msra.mxu1 %v2263_v24  ;;  %629 = vmatprep.mubr.bf16.mxu1 %v2500_v3  ;;  %v2768_v3 = vld [vmem:[%s3574_s2 + $0x100] ss:$8 sps:$4 sm:$0xff]  }
  0x42   : > { %1663 = vmatprep.subr.bf16.mxu1 %v2268_v28  ;;  %1433 = vmatpush1.bf16.msra.mxu0 %v2263_v24  ;;  %v2845_v24 = vld [vmem:[%s3574_s2 + $0x174] ss:$8 sps:$4 sm:$0xff]  }
  0x43   : > { %1434 = vmatprep.subr.bf16.mxu0 %v2268_v28  ;;  %v2857_v28 = vld [vmem:[%s3574_s2 + $0x184] ss:$8 sps:$4 sm:$0xff]  }
  0x45   : > { %1664 = vmatpush1.bf16.msra.mxu1 %v2266_v30 }
  0x46   : > { %1665 = vmatprep.subr.bf16.mxu1 %v2271_v33  ;;  %1435 = vmatpush1.bf16.msra.mxu0 %v2266_v30  ;;  %v2869_v30 = vld [vmem:[%s3574_s2 + $0x194] ss:$8 sps:$4 sm:$0xff]  }
  0x47   : > { %1436 = vmatprep.subr.bf16.mxu0 %v2271_v33  ;;  %2041 = vmatmul.mubr.msk.bf16.gmra.mrb[12].mxu0 %vm421_vm1, %v2262_v22  ;;  %v2887_v33 = vld [vmem:[%s3574_s2 + $0x1a0] ss:$8 sps:$4 sm:$0xff]  }
  0x48   : > { %2047 = vmatmul.mubr.msk.bf16.gmra.mrb[12].mxu1 %vm421_vm1, %v2262_v22  ;;  %v2839_v22 = vld [vmem:[%s3574_s2 + $0x160] ss:$8 sps:$4 sm:$0xff]  }
  0x49   : > { %1666 = vmatpush1.bf16.msra.mxu1 %v2269_v34  ;;  %1693 = vmatprep.mubr.bf16.mxu1 %v400_v35  ;;  %v2899_v35 = vld [vmem:[%s3574_s2 + $0x1b0] ss:$8 sps:$4 sm:$0xff]  }
  0x4a   : > { %1667 = vmatprep.subr.bf16.mxu1 %v2274_v36  ;;  %1437 = vmatpush1.bf16.msra.mxu0 %v2269_v34  ;;  %v2893_v34 = vld [vmem:[%s3574_s2 + $0x1b4] ss:$8 sps:$4 sm:$0xff]  }
  0x4b   : > { %1438 = vmatprep.subr.bf16.mxu0 %v2274_v36  ;;  %v2905_v36 = vld [vmem:[%s3574_s2 + $0x1c4] ss:$8 sps:$4 sm:$0xff]  }
  0x4d   : > { %1668 = vmatpush1.bf16.msra.mxu1 %v2272_v37 }
  0x4e   : > { %1669 = vmatprep.subr.bf16.mxu1 %v2277_v38  ;;  %1439 = vmatpush1.bf16.msra.mxu0 %v2272_v37  ;;  %v2911_v37 = vld [vmem:[%s3574_s2 + $0x1c0] ss:$8 sps:$4 sm:$0xff]  }
  0x4f   : > { %1440 = vmatprep.subr.bf16.mxu0 %v2277_v38  ;;  %v2917_v38 = vld [vmem:[%s3574_s2 + $0x1d4] ss:$8 sps:$4 sm:$0xff]  }
  0x51   : > { %1670 = vmatpush1.bf16.msra.mxu1 %v2275_v39 }
  0x52   : > { %1671 = vmatprep.subr.bf16.mxu1 %v2280_v40  ;;  %1441 = vmatpush1.bf16.msra.mxu0 %v2275_v39  ;;  %v2923_v39 = vld [vmem:[%s3574_s2 + $0x1d0] ss:$8 sps:$4 sm:$0xff]  }
  0x53   : > { %1442 = vmatprep.subr.bf16.mxu0 %v2280_v40  ;;  %v2929_v40 = vld [vmem:[%s3574_s2 + $0x1e4] ss:$8 sps:$4 sm:$0xff]  }
  0x55   : > { %1672 = vmatpush1.bf16.msra.mxu1 %v2278_v41 }
  0x56   : > { %1673 = vmatprep.subr.bf16.mxu1 %v2283_v42  ;;  %1443 = vmatpush1.bf16.msra.mxu0 %v2278_v41  ;;  %v2935_v41 = vld [vmem:[%s3574_s2 + $0x1e0] ss:$8 sps:$4 sm:$0xff]  }
  0x57   : > { %1444 = vmatprep.subr.bf16.mxu0 %v2283_v42  ;;  %v2941_v42 = vld [vmem:[%s3574_s2 + $0x1f4] ss:$8 sps:$4 sm:$0xff]  }
  0x59   : > { %1674 = vmatpush1.bf16.msra.mxu1 %v2281_v43 }
  0x5a   : > { %1675 = vmatprep.subr.bf16.mxu1 %v2286_v44  ;;  %1445 = vmatpush1.bf16.msra.mxu0 %v2281_v43  ;;  %v370_v43 = vrot.slane %v2645_v27, %v294_v10  ;;  %v2965_v10 = vld [vmem:[%s3574_s2 + $0x200] ss:$8 sps:$4 sm:$0xff]  }
  0x5b   : > { %1446 = vmatprep.subr.bf16.mxu0 %v2286_v44  ;;  %v2950_v44 = vld [vmem:[%s3574_s2 + $0x1f0] ss:$8 sps:$4 sm:$0xff]  }
  0x5d   : > { %1676 = vmatpush1.bf16.msra.mxu1 %v2284_v45 }
  0x5e   : > { %1677 = vmatprep.subr.bf16.mxu1 %v2289_v46  ;;  %1447 = vmatpush1.bf16.msra.mxu0 %v2284_v45  ;;  %v382_v45 = vrot.slane %v2645_v27, %v306_v23  ;;  %v2971_v23 = vld [vmem:[%s3574_s2 + $0x214] ss:$8 sps:$4 sm:$0xff]  }
  0x5f   : > { %1448 = vmatprep.subr.bf16.mxu0 %v2289_v46  ;;  %v2959_v46 = vld [vmem:[%s3574_s2 + $0x204] ss:$8 sps:$4 sm:$0xff]  }
  0x61   : > { %1678 = vmatpush1.bf16.msra.mxu1 %v2287_v47 }
  0x62   : > { %1679 = vmatprep.subr.bf16.mxu1 %v2292_v48  ;;  %1449 = vmatpush1.bf16.msra.mxu0 %v2287_v47  ;;  %v401_v47 = vpack.c.bf16 %v370_v43, %v370_v43  ;;  %v3085_v43 = vld [vmem:[%s3574_s2 + $0x2a0] ss:$8 sps:$4 sm:$0xff]  }
  0x63   : > { %1450 = vmatprep.subr.bf16.mxu0 %v2292_v48  ;;  %v404_v48 = vpack.c.bf16 %v382_v45, %v382_v45  ;;  %3620 = vst [vmem:[#allocation11_spill] sm:$0xff] %v3085_v43  ;;  %v3091_v45 = vld [vmem:[%s3574_s2 + $0x2b4] ss:$8 sps:$4 sm:$0xff]  }
  0x64   : > { %3621 = vst [vmem:[#allocation12_spill] sm:$0xff] %v3091_v45 }
  0x65   : > { %1680 = vmatpush1.bf16.msra.mxu1 %v2290_v49 }
  0x66   : > { %1681 = vmatprep.subr.bf16.mxu1 %v2295_v50  ;;  %1451 = vmatpush1.bf16.msra.mxu0 %v2290_v49  ;;  %v2977_v49 = vld [vmem:[%s3574_s2 + $0x210] ss:$8 sps:$4 sm:$0xff]  }
  0x67   : > { %1452 = vmatprep.subr.bf16.mxu0 %v2295_v50  ;;  %v2983_v50 = vld [vmem:[%s3574_s2 + $0x224] ss:$8 sps:$4 sm:$0xff]  }
  0x69   : > { %1682 = vmatpush1.bf16.msra.mxu1 %v2293_v51 }
  0x6a   : > { %1683 = vmatprep.subr.bf16.mxu1 %v2298_v52  ;;  %1453 = vmatpush1.bf16.msra.mxu0 %v2293_v51  ;;  %v2989_v51 = vld [vmem:[%s3574_s2 + $0x220] ss:$8 sps:$4 sm:$0xff]  }
  0x6b   : > { %1454 = vmatprep.subr.bf16.mxu0 %v2298_v52  ;;  %v2995_v52 = vld [vmem:[%s3574_s2 + $0x234] ss:$8 sps:$4 sm:$0xff]  }
  0x6d   : > { %1684 = vmatpush1.bf16.msra.mxu1 %v2296_v53 }
  0x6e   : > { %1685 = vmatprep.subr.bf16.mxu1 %v2301_v54  ;;  %1455 = vmatpush1.bf16.msra.mxu0 %v2296_v53  ;;  %v3001_v53 = vld [vmem:[%s3574_s2 + $0x230] ss:$8 sps:$4 sm:$0xff]  }
  0x6f   : > { %1456 = vmatprep.subr.bf16.mxu0 %v2301_v54  ;;  %v3007_v54 = vld [vmem:[%s3574_s2 + $0x244] ss:$8 sps:$4 sm:$0xff]  }
  0x71   : > { %1686 = vmatpush1.bf16.msra.mxu1 %v2299_v55 }
  0x72   : > { %1687 = vmatprep.subr.bf16.mxu1 %v2304_v56  ;;  %1457 = vmatpush1.bf16.msra.mxu0 %v2299_v55  ;;  %v3013_v55 = vld [vmem:[%s3574_s2 + $0x240] ss:$8 sps:$4 sm:$0xff]  }
  0x73   : > { %1458 = vmatprep.subr.bf16.mxu0 %v2304_v56  ;;  %v3019_v56 = vld [vmem:[%s3574_s2 + $0x254] ss:$8 sps:$4 sm:$0xff]  }
  0x75   : > { %1688 = vmatpush1.bf16.msra.mxu1 %v2302_v57 }
  0x76   : > { %1689 = vmatprep.subr.bf16.mxu1 %v2307_v58  ;;  %1459 = vmatpush1.bf16.msra.mxu0 %v2302_v57  ;;  %v3025_v57 = vld [vmem:[%s3574_s2 + $0x250] ss:$8 sps:$4 sm:$0xff]  }
  0x77   : > { %1460 = vmatprep.subr.bf16.mxu0 %v2307_v58  ;;  %v3031_v58 = vld [vmem:[%s3574_s2 + $0x264] ss:$8 sps:$4 sm:$0xff]  }
  0x79   : > { %1690 = vmatpush1.bf16.msra.mxu1 %v2305_v59 }
  0x7a   : > { %1691 = vmatprep.subr.bf16.mxu1 %v2310_v60  ;;  %1461 = vmatpush1.bf16.msra.mxu0 %v2305_v59  ;;  %v3037_v59 = vld [vmem:[%s3574_s2 + $0x260] ss:$8 sps:$4 sm:$0xff]  }
  0x7b   : > { %1462 = vmatprep.subr.bf16.mxu0 %v2310_v60  ;;  %v3043_v60 = vld [vmem:[%s3574_s2 + $0x274] ss:$8 sps:$4 sm:$0xff]  }
  0x7d   : > { %1692 = vmatpush1.bf16.msra.mxu1 %v2308_v62 }
  0x7e   : > { %1702 = vmatprep.subr.bf16.mxu1 %v2313_v0  ;;  %1463 = vmatpush1.bf16.msra.mxu0 %v2308_v62  ;;  %v3055_v62 = vld [vmem:[%s3574_s2 + $0x284] ss:$8 sps:$4 sm:$0xff]  }
  0x7f   : > { %1485 = vmatprep.subr.bf16.mxu0 %v2313_v0  ;;  %3615 = vst [vmem:[#allocation6_spill] sm:$0xff] %v3055_v62  ;;  %v3067_v0 = vld [vmem:[%s3574_s2 + $0x294] ss:$8 sps:$4 sm:$0xff]  }
  0x80   : > { %1694 = vmatmul.mubr.bf16.vlgmr.msra.gmra.mrb[16].mxu1 %v399_v1  ;;  %3617 = vst [vmem:[#allocation8_spill] sm:$0xff] %v3067_v0  ;;  %v3073_v1 = vld [vmem:[%s3574_s2 + $0x290] ss:$8 sps:$4 sm:$0xff]  }
  0x81   : > { %1703 = vmatpush1.bf16.msra.mxu1 %v2768_v3  ;;  %1734 = vmatprep.mubr.bf16.mxu1 %v402_v5  ;;  %3618 = vst [vmem:[#allocation9_spill] sm:$0xff] %v3073_v1  ;;  %v3079_v5 = vld [vmem:[%s3574_s2 + $0x2a4] ss:$8 sps:$4 sm:$0xff]  }
  0x82   : > { %1704 = vmatprep.subr.bf16.mxu1 %v2773_v6  ;;  %3619 = vst [vmem:[#allocation10_spill] sm:$0xff] %v3079_v5 }
  0x85   : > { %1705 = vmatpush1.bf16.msra.mxu1 %v2779_v8 }
  0x86   : > { %1706 = vmatprep.subr.bf16.mxu1 %v2785_v13 }
  0x89   : > { %1707 = vmatpush1.bf16.msra.mxu1 %v2791_v14 }
  0x8a   : > { %1708 = vmatprep.subr.bf16.mxu1 %v2797_v15 }
  0x8d   : > { %1709 = vmatpush1.bf16.msra.mxu1 %v2803_v16 }
  0x8e   : > { %1710 = vmatprep.subr.bf16.mxu1 %v2809_v17 }
  0x91   : > { %1711 = vmatpush1.bf16.msra.mxu1 %v2815_v18 }
  0x92   : > { %1712 = vmatprep.subr.bf16.mxu1 %v2821_v19 }
  0x95   : > { %1713 = vmatpush1.bf16.msra.mxu1 %v2827_v20 }
  0x96   : > { %1714 = vmatprep.subr.bf16.mxu1 %v2833_v21 }
  0x99   : > { %1715 = vmatpush1.bf16.msra.mxu1 %v2839_v22 }
  0x9a   : > { %1716 = vmatprep.subr.bf16.mxu1 %v2845_v24 }
  0x9d   : > { %1717 = vmatpush1.bf16.msra.mxu1 %v2851_v26 }
  0x9e   : > { %1718 = vmatprep.subr.bf16.mxu1 %v2857_v28 }
  0xa1   : > { %1719 = vmatpush1.bf16.msra.mxu1 %v2863_v29 }
  0xa2   : > { %1720 = vmatprep.subr.bf16.mxu1 %v2869_v30 }
  0xa5   : > { %1721 = vmatpush1.bf16.msra.mxu1 %v2875_v31 }
  0xa6   : > { %1722 = vmatprep.subr.bf16.mxu1 %v2881_v32 }
  0xa9   : > { %1723 = vmatpush1.bf16.msra.mxu1 %v2887_v33 }
  0xaa   : > { %1724 = vmatprep.subr.bf16.mxu1 %v2893_v34 }
  0xad   : > { %1725 = vmatpush1.bf16.msra.mxu1 %v2899_v35 }
  0xae   : > { %1726 = vmatprep.subr.bf16.mxu1 %v2905_v36 }
  0xb1   : > { %1727 = vmatpush1.bf16.msra.mxu1 %v2911_v37 }
  0xb2   : > { %1728 = vmatprep.subr.bf16.mxu1 %v2917_v38 }
  0xb5   : > { %1729 = vmatpush1.bf16.msra.mxu1 %v2923_v39 }
  0xb6   : > { %1730 = vmatprep.subr.bf16.mxu1 %v2929_v40 }
  0xb9   : > { %1731 = vmatpush1.bf16.msra.mxu1 %v2935_v41 }
  0xba   : > { %1732 = vmatprep.subr.bf16.mxu1 %v2941_v42 }
  0xbd   : > { %1733 = vmatpush1.bf16.msra.mxu1 %v2950_v44 }
  0xbe   : > { %1743 = vmatprep.subr.bf16.mxu1 %v2959_v46 }
  0xc0   : > { %1735 = vmatmul.mubr.bf16.vlgmr.msra.gmra.mrb[16].mxu1 %v401_v47  ;;  %v3097_v47 = vld [vmem:[%s3574_s2 + $0x2b0] ss:$8 sps:$4 sm:$0xff]  }
  0xc1   : > { %1744 = vmatpush1.bf16.msra.mxu1 %v2965_v10  ;;  %1775 = vmatprep.mubr.bf16.mxu1 %v404_v48  ;;  %3622 = vst [vmem:[#allocation13_spill] sm:$0xff] %v3097_v47  ;;  %v3103_v48 = vld [vmem:[%s3574_s2 + $0x2c4] ss:$8 sps:$4 sm:$0xff]  }
  0xc2   : > { %1745 = vmatprep.subr.bf16.mxu1 %v2971_v23  ;;  %3623 = vst [vmem:[#allocation14_spill] sm:$0xff] %v3103_v48 }
  0xc5   : > { %1746 = vmatpush1.bf16.msra.mxu1 %v2977_v49 }
  0xc6   : > { %1747 = vmatprep.subr.bf16.mxu1 %v2983_v50 }
  0xc9   : > { %1748 = vmatpush1.bf16.msra.mxu1 %v2989_v51 }
  0xca   : > { %1749 = vmatprep.subr.bf16.mxu1 %v2995_v52 }
  0xcd   : > { %1750 = vmatpush1.bf16.msra.mxu1 %v3001_v53 }
  0xce   : > { %1751 = vmatprep.subr.bf16.mxu1 %v3007_v54 }
  0xd1   : > { %1752 = vmatpush1.bf16.msra.mxu1 %v3013_v55 }
  0xd2   : > { %1753 = vmatprep.subr.bf16.mxu1 %v3019_v56 }
  0xd5   : > { %1754 = vmatpush1.bf16.msra.mxu1 %v3025_v57 }
  0xd6   : > { %1755 = vmatprep.subr.bf16.mxu1 %v3031_v58 }
  0xd9   : > { %1756 = vmatpush1.bf16.msra.mxu1 %v3037_v59 }
  0xda   : > { %1757 = vmatprep.subr.bf16.mxu1 %v3043_v60 }
  0xdd   : > { %1758 = vmatpush1.bf16.msra.mxu1 %v3049_v61 }
  0xde   : > { %1759 = vmatprep.subr.bf16.mxu1 %v3055_v62 }
  0xe1   : > { %1760 = vmatpush1.bf16.msra.mxu1 %v3061_v63 }
  0xe2   : > { %1761 = vmatprep.subr.bf16.mxu1 %v3067_v0  ;;  %v3197_v0 = vld [vmem:[%s3574_s2 + $0x334] ss:$8 sps:$4 sm:$0xff]  }
  0xe3   : > { %3639 = vst [vmem:[#allocation28_spill] sm:$0xff] %v3197_v0 }
  0xe5   : > { %1762 = vmatpush1.bf16.msra.mxu1 %v3073_v1 }
  0xe6   : > { %1763 = vmatprep.subr.bf16.mxu1 %v3079_v5 }
  0xe9   : > { %1764 = vmatpush1.bf16.msra.mxu1 %v3085_v43 }
  0xea   : > { %1765 = vmatprep.subr.bf16.mxu1 %v3091_v45 }
  0xed   : > { %1766 = vmatpush1.bf16.msra.mxu1 %v3097_v47  ;;  %v3157_v47 = vld [vmem:[%s3574_s2 + $0x304] ss:$8 sps:$4 sm:$0xff]  }
  0xee   : > { %1767 = vmatprep.subr.bf16.mxu1 %v3103_v48  ;;  %v3632_v48 = vsub.s32 7, %v2575_v4  ;;  %3633 = vst [vmem:[#allocation22_spill] sm:$0xff] %v3157_v47 }
  0xf1   : > { %1768 = vmatpush1.bf16.msra.mxu1 %v3109_v2 }
  0xf2   : > { %1769 = vmatprep.subr.bf16.mxu1 %v3115_v12  ;;  %v3630_v12 = vsub.s32 4, %v2575_v4 }
  0xf4   : > { %v378_v2 = vrot.slane %v2645_v27, %v3630_v12  ;;  %v3163_v12 = vld [vmem:[%s3574_s2 + $0x300] ss:$8 sps:$4 sm:$0xff]  }
  0xf5   : > { %1770 = vmatpush1.bf16.msra.mxu1 %v3121_v11  ;;  %v3148_v11 = vld [vmem:[%s3574_s2 + $0x2f0] ss:$8 sps:$4 sm:$0xff]   ;;  %3634 = vst [vmem:[#allocation23_spill] sm:$0xff] %v3163_v12 }
  0xf6   : > { %1771 = vmatprep.subr.bf16.mxu1 %v3127_v25  ;;  %3631 = vst [vmem:[#allocation21_spill] sm:$0xff] %v3148_v11  ;;  %v390_v25 = vrot.slane %v2645_v27, %v3632_v48  ;;  %v403_v45 = vpack.c.bf16 %v378_v2, %v378_v2  ;;  %v3169_v48 = vld [vmem:[%s3574_s2 + $0x314] ss:$8 sps:$4 sm:$0xff]   ;;  %v3175_v2 = vld [vmem:[%s3574_s2 + $0x310] ss:$8 sps:$4 sm:$0xff]  }
  0xf7   : > { %3635 = vst [vmem:[#allocation24_spill] sm:$0xff] %v3169_v48  ;;  %3636 = vst [vmem:[#allocation25_spill] sm:$0xff] %v3175_v2 }
  0xf9   : > { %1772 = vmatpush1.bf16.msra.mxu1 %v3133_v7  ;;  %v406_v7 = vpack.c.bf16 %v390_v25, %v390_v25  ;;  %v3181_v25 = vld [vmem:[%s3574_s2 + $0x324] ss:$8 sps:$4 sm:$0xff]  }
  0xfa   : > { %1773 = vmatprep.subr.bf16.mxu1 %v3139_v9  ;;  %3637 = vst [vmem:[#allocation26_spill] sm:$0xff] %v3181_v25 }
  0xfd   : > { %1774 = vmatpush1.bf16.msra.mxu1 %v3148_v11 }
  0xfe   : > { %1784 = vmatprep.subr.bf16.mxu1 %v3157_v47 }
 0x100   : > { %1776 = vmatmul.mubr.bf16.vlgmr.msra.gmra.mrb[16].mxu1 %v403_v45 }
 0x101   : > { %1785 = vmatpush1.bf16.msra.mxu1 %v3163_v12  ;;  %1816 = vmatprep.mubr.bf16.mxu1 %v406_v7  ;;  %v3189_v7 = vld [vmem:[%s3574_s2 + $0x320] ss:$8 sps:$4 sm:$0xff]  }
 0x102   : > { %v462_v11 = vpop.f32.mrb[0].mxu0  ;;  %1786 = vmatprep.subr.bf16.mxu1 %v3169_v48  ;;  %3638 = vst [vmem:[#allocation27_spill] sm:$0xff] %v3189_v7 }
 0x103   : > { %v464_v47 = vpop.f32.mrb[1].mxu0  ;;  %v3183_v9 = vpop.f32.mrb[0].mxu1 }
 0x104   : > { %v466_v45 = vpop.f32.mrb[2].mxu0  ;;  %v517_v43 = vpop.f32.mrb[1].mxu1 }
 0x105   : > { %1787 = vmatpush1.bf16.msra.mxu1 %v3175_v2  ;;  %v776_v12 = vpack.c.bf16 %v466_v45, %v462_v11  ;;  %v468_v5 = vpop.f32.mrb[3].mxu0  ;;  %v3191_v48 = vpop.f32.mrb[2].mxu1 }
 0x106   : > { %v777_v1 = vpack.c.bf16 %v468_v5, %v464_v47  ;;  %1788 = vmatprep.subr.bf16.mxu1 %v3181_v25  ;;  %v521_v11 = vpop.f32.mrb[3].mxu1  ;;  %v3205_v5 = vld [vmem:[%s3574_s2 + $0x330] ss:$8 sps:$4 sm:$0xff]   ;;  %v3212_v47 = vld [vmem:[%s3574_s2 + $0x344] ss:$8 sps:$4 sm:$0xff]  }
 0x107   : > { %v779_v45 = vpack.c.bf16 %v521_v11, %v517_v43  ;;  %3640 = vst [vmem:[#allocation29_spill] sm:$0xff] %v3205_v5 }
 0x108   : > { %1464 = vmatprep.mubr.bf16.mxu0 %v777_v1 }
 0x109   : > { %1789 = vmatpush1.bf16.msra.mxu1 %v3189_v7  ;;  %1465 = vmatmul.mubr.bf16.vlgmr.msra.gmra.mrb[16].mxu0 %v776_v12 }
 0x10a   : > { %1486 = vmatpush1.bf16.msra.mxu0 %v2768_v3  ;;  %1790 = vmatprep.subr.bf16.mxu1 %v3197_v0  ;;  %v472_v2 = vpop.f32.mrb[4].mxu0  ;;  %v3223_v3 = vld [vmem:[%s3574_s2 + $0x340] ss:$8 sps:$4 sm:$0xff]  }
 0x10b   : > { %1487 = vmatprep.subr.bf16.mxu0 %v2773_v6  ;;  %v474_v1 = vpop.f32.mrb[5].mxu0  ;;  %v3215_v43 = vpop.f32.mrb[4].mxu1  ;;  %v3232_v6 = vld [vmem:[%s3574_s2 + $0x354] ss:$8 sps:$4 sm:$0xff]  }
 0x10c   : > { %v476_v12 = vpop.f32.mrb[6].mxu0  ;;  %v3217_v11 = vpop.f32.mrb[5].mxu1 }
 0x10d   : > { %1791 = vmatpush1.bf16.msra.mxu1 %v3205_v5  ;;  %v784_v0 = vpack.c.bf16 %v476_v12, %v472_v2  ;;  %v478_v7 = vpop.f32.mrb[7].mxu0  ;;  %v3225_v25 = vpop.f32.mrb[6].mxu1 }
 0x10e   : > { %1488 = vmatpush1.bf16.msra.mxu0 %v2779_v8  ;;  %1792 = vmatprep.subr.bf16.mxu1 %v3212_v47  ;;  %v785_v63 = vpack.c.bf16 %v478_v7, %v474_v1  ;;  %v3236_v62 = vpop.f32.mrb[7].mxu1  ;;  %v3245_v8 = vld [vmem:[%s3574_s2 + $0x350] ss:$8 sps:$4 sm:$0xff]   ;;  %v3324_v1 = vld [vmem:[%s3574_s2 + $0x3a4] ss:$8 sps:$4 sm:$0xff]  }
 0x10f   : > { %1489 = vmatprep.subr.bf16.mxu0 %v2785_v13  ;;  %v3252_v13 = vld [vmem:[%s3574_s2 + $0x364] ss:$8 sps:$4 sm:$0xff]   ;;  %3645 = vst [vmem:[#allocation34_spill] sm:$0xff] %v3324_v1 }
 0x110   : > { %1474 = vmatprep.mubr.bf16.mxu0 %v785_v63  ;;  %v3259_v63 = vld [vmem:[%s3574_s2 + $0x360] ss:$8 sps:$4 sm:$0xff]  }
 0x111   : > { %1793 = vmatpush1.bf16.msra.mxu1 %v3223_v3  ;;  %1475 = vmatmul.mubr.bf16.gmra.mrb[20].mxu0 %v784_v0 }
 0x112   : > { %1490 = vmatpush1.bf16.msra.mxu0 %v2791_v14  ;;  %1794 = vmatprep.subr.bf16.mxu1 %v3232_v6  ;;  %v3266_v14 = vld [vmem:[%s3574_s2 + $0x374] ss:$8 sps:$4 sm:$0xff]  }
 0x113   : > { %1491 = vmatprep.subr.bf16.mxu0 %v2797_v15  ;;  %1517 = vmatprep.mubr.bf16.mxu0 %v779_v45  ;;  %v3273_v15 = vld [vmem:[%s3574_s2 + $0x370] ss:$8 sps:$4 sm:$0xff]   ;;  %v3283_v0 = vpop.f32.mrb[8].mxu1  ;;  %v3303_v45 = vpop.f32.mrb[8].mxu0 }
 0x114   : > { %3641 = vst [vmem:[#allocation30_spill] sm:$0xff] %v3283_v0  ;;  %v3298_v7 = vpop.f32.mrb[9].mxu1  ;;  %v3315_v5 = vpop.f32.mrb[9].mxu0 }
 0x115   : > { %1795 = vmatpush1.bf16.msra.mxu1 %v3245_v8  ;;  %v3326_v2 = vpop.f32.mrb[10].mxu0 }
 0x116   : > { %1492 = vmatpush1.bf16.msra.mxu0 %v2803_v16  ;;  %1796 = vmatprep.subr.bf16.mxu1 %v3252_v13  ;;  %v3280_v16 = vld [vmem:[%s3574_s2 + $0x384] ss:$8 sps:$4 sm:$0xff]  }
 0x117   : > { %1493 = vmatprep.subr.bf16.mxu0 %v2809_v17  ;;  %v3289_v17 = vld [vmem:[%s3574_s2 + $0x380] ss:$8 sps:$4 sm:$0xff]  }
 0x119   : > { %1797 = vmatpush1.bf16.msra.mxu1 %v3259_v63 }
 0x11a   : > { %1494 = vmatpush1.bf16.msra.mxu0 %v2815_v18  ;;  %1798 = vmatprep.subr.bf16.mxu1 %v3266_v14  ;;  %v3296_v18 = vld [vmem:[%s3574_s2 + $0x394] ss:$8 sps:$4 sm:$0xff]  }
 0x11b   : > { %1495 = vmatprep.subr.bf16.mxu0 %v2821_v19  ;;  %3642 = vst [vmem:[#allocation31_spill] sm:$0xff] %v3296_v18  ;;  %v3301_v19 = vpop.f32.mrb[10].mxu1 }
 0x11c   : > { %3643 = vst [vmem:[#allocation32_spill] sm:$0xff] %v3301_v19  ;;  %v3307_v12 = vpop.f32.mrb[11].mxu1  ;;  %v3331_v19 = vpop.f32.mrb[11].mxu0 }
 0x11d   : > { %1799 = vmatpush1.bf16.msra.mxu1 %v3273_v15  ;;  %v3349_v0 = vpop.f32.mrb[12].mxu0 }
 0x11e   : > { %1496 = vmatpush1.bf16.msra.mxu0 %v2827_v20  ;;  %1800 = vmatprep.subr.bf16.mxu1 %v3280_v16  ;;  %v3313_v20 = vld [vmem:[%s3574_s2 + $0x390] ss:$8 sps:$4 sm:$0xff]  }
 0x11f   : > { %1497 = vmatprep.subr.bf16.mxu0 %v2833_v21  ;;  %3644 = vst [vmem:[#allocation33_spill] sm:$0xff] %v3313_v20  ;;  %v3355_v21 = vld [vmem:[%s3574_s2 + $0x3b0] ss:$8 sps:$4 sm:$0xff]  }
 0x121   : > { %1801 = vmatpush1.bf16.msra.mxu1 %v3289_v17 }
 0x122   : > { %1498 = vmatpush1.bf16.msra.mxu0 %v2839_v22  ;;  %1802 = vmatprep.subr.bf16.mxu1 %v3296_v18  ;;  %v3339_v22 = vld [vmem:[%s3574_s2 + $0x3a0] ss:$8 sps:$4 sm:$0xff]  }
 0x123   : > { %1499 = vmatprep.subr.bf16.mxu0 %v2845_v24  ;;  %3646 = vst [vmem:[#allocation35_spill] sm:$0xff] %v3339_v22  ;;  %v3346_v24 = vld [vmem:[%s3574_s2 + $0x3b4] ss:$8 sps:$4 sm:$0xff]  }
 0x125   : > { %1803 = vmatpush1.bf16.msra.mxu1 %v3313_v20  ;;  %v3357_v20 = vpop.f32.mrb[13].mxu0 }
 0x126   : > { %1500 = vmatpush1.bf16.msra.mxu0 %v2851_v26  ;;  %1804 = vmatprep.subr.bf16.mxu1 %v3324_v1  ;;  %v3364_v26 = vld [vmem:[%s3574_s2 + $0x3c4] ss:$8 sps:$4 sm:$0xff]  }
 0x127   : > { %1501 = vmatprep.subr.bf16.mxu0 %v2857_v28  ;;  %v3366_v28 = vpop.f32.mrb[14].mxu0 }
 0x128   : > { %v3371_v1 = vpop.f32.mrb[15].mxu0 }
 0x129   : > { %1805 = vmatpush1.bf16.msra.mxu1 %v3339_v22  ;;  %v3393_v22 = vld [vmem:[%s3574_s2 + $0x3d0] ss:$8 sps:$4 sm:$0xff]  }
 0x12a   : > { %1502 = vmatpush1.bf16.msra.mxu0 %v2863_v29  ;;  %1806 = vmatprep.subr.bf16.mxu1 %v3346_v24  ;;  %v3379_v29 = vld [vmem:[%s3574_s2 + $0x3c0] ss:$8 sps:$4 sm:$0xff]   ;;  %3647 = vst [vmem:[#allocation36_spill] sm:$0xff] %v3393_v22 }
 0x12b   : > { %1503 = vmatprep.subr.bf16.mxu0 %v2869_v30  ;;  %v3386_v30 = vld [vmem:[%s3574_s2 + $0x3d4] ss:$8 sps:$4 sm:$0xff]  }
 0x12d   : > { %1807 = vmatpush1.bf16.msra.mxu1 %v3355_v21 }
 0x12e   : > { %1504 = vmatpush1.bf16.msra.mxu0 %v2875_v31  ;;  %1808 = vmatprep.subr.bf16.mxu1 %v3364_v26  ;;  %v3400_v31 = vld [vmem:[%s3574_s2 + $0x3e4] ss:$8 sps:$4 sm:$0xff]  }
 0x12f   : > { %1505 = vmatprep.subr.bf16.mxu0 %v2881_v32  ;;  %v3407_v32 = vld [vmem:[%s3574_s2 + $0x3e0] ss:$8 sps:$4 sm:$0xff]  }
 0x131   : > { %1809 = vmatpush1.bf16.msra.mxu1 %v3379_v29 }
 0x132   : > { %1506 = vmatpush1.bf16.msra.mxu0 %v2887_v33  ;;  %1810 = vmatprep.subr.bf16.mxu1 %v3386_v30  ;;  %v3414_v33 = vld [vmem:[%s3574_s2 + $0x3f4] ss:$8 sps:$4 sm:$0xff]  }
 0x133   : > { %1507 = vmatprep.subr.bf16.mxu0 %v2893_v34  ;;  %v3648_v34 = vsub.s32 6, %v2575_v4 }
 0x135   : > { %1811 = vmatpush1.bf16.msra.mxu1 %v3393_v22  ;;  %v386_v18 = vrot.slane %v2645_v27, %v3648_v34  ;;  %v3424_v22 = vld [vmem:[%s3574_s2 + $0x3f0] ss:$8 sps:$4 sm:$0xff]   ;;  %v3435_v27 = vpop.f32.mrb[12].mxu1 }
 0x136   : > { %1508 = vmatpush1.bf16.msra.mxu0 %v2899_v35  ;;  %1812 = vmatprep.subr.bf16.mxu1 %v3400_v31  ;;  %v3677_v34 = vld [vmem:[#allocation27_spill] sm:$0xff] }
 0x137   : > { %1509 = vmatprep.subr.bf16.mxu0 %v2905_v36  ;;  %v405_v35 = vpack.c.bf16 %v386_v18, %v386_v18  ;;  %v3438_v36 = vpop.f32.mrb[13].mxu1  ;;  %v3675_v18 = vld [vmem:[#allocation26_spill] sm:$0xff] }
 0x139   : > { %1813 = vmatpush1.bf16.msra.mxu1 %v3407_v32 }
 0x13a   : > { %1510 = vmatpush1.bf16.msra.mxu0 %v2911_v37  ;;  %1814 = vmatprep.subr.bf16.mxu1 %v3414_v33  ;;  %v3440_v37 = vpop.f32.mrb[14].mxu1 }
 0x13b   : > { %1511 = vmatprep.subr.bf16.mxu0 %v2917_v38  ;;  %v3649_v38 = vpack.c.bf16 %v3191_v48, %v3183_v9  ;;  %v3651_v9 = vpack.c.bf16 %v3225_v25, %v3215_v43  ;;  %v3670_v48 = vpack.c.bf16 %v3326_v2, %v3303_v45  ;;  %v3671_v25 = vld [vmem:[#allocation23_spill] sm:$0xff]  ;;  %v3673_v43 = vld [vmem:[#allocation24_spill] sm:$0xff]  ;;  %v3678_v2 = vpack.c.bf16 %v3307_v12, %v3298_v7 }
 0x13c   : > { %v3679_v45 = vld [vmem:[#allocation28_spill] sm:$0xff] }
 0x13d   : > { %1815 = vmatpush1.bf16.msra.mxu1 %v3424_v22 }
 0x13e   : > { %1512 = vmatpush1.bf16.msra.mxu0 %v2923_v39  ;;  %v790_v39 = vpack.c.bf16 %v3440_v37, %v3435_v27  ;;  %v770_v27 = vld [vmem:[#allocation2 + $0x10] sm:$0xff] }
 0x13f   : > { %1513 = vmatprep.subr.bf16.mxu0 %v2929_v40  ;;  %v3447_v40 = vpop.f32.mrb[15].mxu1 }
 0x140   : > { %1817 = vmatmul.mubr.bf16.vlgmr.msra.gmra.mrb[16].mxu1 %v405_v35 }
 0x142   : > { %1514 = vmatpush1.bf16.msra.mxu0 %v2935_v41  ;;  %v3650_v41 = vpack.c.bf16 %v3236_v62, %v3217_v11  ;;  %v3669_v62 = vld [vmem:[#allocation22_spill] sm:$0xff]  ;;  %v3674_v11 = vld [vmem:[#allocation25_spill] sm:$0xff] }
 0x143   : > { %1515 = vmatprep.subr.bf16.mxu0 %v2941_v42  ;;  %v791_v42 = vpack.c.bf16 %v3447_v40, %v3438_v36 }
 0x146   : > { %1516 = vmatpush1.bf16.msra.mxu0 %v2950_v44  ;;  %v3652_v44 = vpack.c.bf16 %v3331_v19, %v3315_v5  ;;  %v3672_v5 = vpack.c.bf16 %v3371_v1, %v3357_v20  ;;  %v3676_v19 = vpack.c.bf16 %v3366_v28, %v3349_v0  ;;  %v3680_v1 = vld [vmem:[#allocation29_spill] sm:$0xff]  ;;  %v3681_v0 = vld [vmem:[#allocation31_spill] sm:$0xff] }
 0x147   : > { %1538 = vmatprep.subr.bf16.mxu0 %v2959_v46  ;;  %v3653_v46 = vld [vmem:[#allocation6_spill] sm:$0xff]  ;;  %v1660_v28 = vld [vmem:[#allocation3] sm:$0x3] }
 0x149   : > { %1518 = vmatmul.mubr.bf16.vlgmr.msra.gmra.mrb[16].mxu0 %v3649_v38  ;;  %v771_v38 = vld [vmem:[#allocation2 + $0x18] sm:$0xff] }
 0x14a   : > { %1539 = vmatpush1.bf16.msra.mxu0 %v2965_v10  ;;  %1527 = vmatprep.mubr.bf16.mxu0 %v3650_v41  ;;  %v3654_v10 = vld [vmem:[#allocation7_spill] sm:$0xff] }
 0x14b   : > { %1540 = vmatprep.subr.bf16.mxu0 %v2971_v23  ;;  %v3655_v23 = vld [vmem:[#allocation8_spill] sm:$0xff] }
 0x14e   : > { %1541 = vmatpush1.bf16.msra.mxu0 %v2977_v49  ;;  %v3656_v49 = vld [vmem:[#allocation9_spill] sm:$0xff] }
 0x14f   : > { %1542 = vmatprep.subr.bf16.mxu0 %v2983_v50  ;;  %v3657_v50 = vld [vmem:[#allocation10_spill] sm:$0xff] }
 0x151   : > { %1528 = vmatmul.mubr.bf16.gmra.mrb[20].mxu0 %v3651_v9  ;;  %v772_v9 = vld [vmem:[#allocation2 + $0x20] sm:$0xff] }
 0x152   : > { %1543 = vmatpush1.bf16.msra.mxu0 %v2989_v51  ;;  %1570 = vmatprep.mubr.bf16.mxu0 %v3652_v44  ;;  %v3658_v51 = vld [vmem:[#allocation11_spill] sm:$0xff]  ;;  %v773_v44 = vld [vmem:[#allocation2 + $0x28] sm:$0xff] }
 0x153   : > { %1544 = vmatprep.subr.bf16.mxu0 %v2995_v52  ;;  %v3659_v52 = vld [vmem:[#allocation12_spill] sm:$0xff] }
 0x156   : > { %1545 = vmatpush1.bf16.msra.mxu0 %v3001_v53  ;;  %v3660_v53 = vld [vmem:[#allocation13_spill] sm:$0xff] }
 0x157   : > { %1546 = vmatprep.subr.bf16.mxu0 %v3007_v54  ;;  %v3661_v54 = vld [vmem:[#allocation14_spill] sm:$0xff] }
 0x15a   : > { %1547 = vmatpush1.bf16.msra.mxu0 %v3013_v55  ;;  %v3662_v55 = vld [vmem:[#allocation15_spill] sm:$0xff] }
 0x15b   : > { %1548 = vmatprep.subr.bf16.mxu0 %v3019_v56  ;;  %v3663_v56 = vld [vmem:[#allocation16_spill] sm:$0xff] }
 0x15e   : > { %1549 = vmatpush1.bf16.msra.mxu0 %v3025_v57  ;;  %v3664_v57 = vld [vmem:[#allocation17_spill] sm:$0xff] }
 0x15f   : > { %1550 = vmatprep.subr.bf16.mxu0 %v3031_v58  ;;  %v3665_v58 = vld [vmem:[#allocation18_spill] sm:$0xff] }
 0x162   : > { %1551 = vmatpush1.bf16.msra.mxu0 %v3037_v59  ;;  %v3666_v59 = vld [vmem:[#allocation19_spill] sm:$0xff] }
 0x163   : > { %1552 = vmatprep.subr.bf16.mxu0 %v3043_v60  ;;  %v3667_v60 = vld [vmem:[#allocation20_spill] sm:$0xff] }
 0x166   : > { %1553 = vmatpush1.bf16.msra.mxu0 %v3049_v61  ;;  %v3668_v61 = vld [vmem:[#allocation21_spill] sm:$0xff] }
 0x167   : > { %1554 = vmatprep.subr.bf16.mxu0 %v3653_v46 }
 0x16a   : > { %1555 = vmatpush1.bf16.msra.mxu0 %v3654_v10  ;;  %v774_v10 = vld [vmem:[#allocation2 + $0x30] sm:$0xff] }
 0x16b   : > { %1556 = vmatprep.subr.bf16.mxu0 %v3655_v23 }
 0x16e   : > { %1557 = vmatpush1.bf16.msra.mxu0 %v3656_v49 }
 0x16f   : > { %1558 = vmatprep.subr.bf16.mxu0 %v3657_v50  ;;  %v775_v50 = vld [vmem:[#allocation2 + $0x38] sm:$0xff] }
 0x172   : > { %1559 = vmatpush1.bf16.msra.mxu0 %v3658_v51 }
 0x173   : > { %1560 = vmatprep.subr.bf16.mxu0 %v3659_v52 }
 0x176   : > { %1561 = vmatpush1.bf16.msra.mxu0 %v3660_v53 }
 0x177   : > { %1562 = vmatprep.subr.bf16.mxu0 %v3661_v54 }
 0x17a   : > { %1563 = vmatpush1.bf16.msra.mxu0 %v3662_v55 }
 0x17b   : > { %1564 = vmatprep.subr.bf16.mxu0 %v3663_v56 }
 0x17e   : > { %1565 = vmatpush1.bf16.msra.mxu0 %v3664_v57 }
 0x17f   : > { %1566 = vmatprep.subr.bf16.mxu0 %v3665_v58  ;;  %v3690_v58 = vld [vmem:[#allocation5_spill] sm:$0xff] (!%p2176_p8) }
 0x182   : > { %1567 = vmatpush1.bf16.msra.mxu0 %v3666_v59 }
 0x183   : > { %1568 = vmatprep.subr.bf16.mxu0 %v3667_v60  ;;  %v3691_v60 = vld [vmem:[#allocation4_spill] sm:$0xff] (!%p2176_p8) }
 0x186   : > { %1569 = vmatpush1.bf16.msra.mxu0 %v3668_v61 }
 0x187   : > { %1591 = vmatprep.subr.bf16.mxu0 %v3669_v62 }
 0x189   : > { %1571 = vmatmul.mubr.bf16.vlgmr.msra.gmra.mrb[16].mxu0 %v3670_v48 }
 0x18a   : > { %1592 = vmatpush1.bf16.msra.mxu0 %v3671_v25  ;;  %1580 = vmatprep.mubr.bf16.mxu0 %v3672_v5 }
 0x18b   : > { %1593 = vmatprep.subr.bf16.mxu0 %v3673_v43 }
 0x18e   : > { %1594 = vmatpush1.bf16.msra.mxu0 %v3674_v11 }
 0x18f   : > { %1595 = vmatprep.subr.bf16.mxu0 %v3675_v18 }
 0x191   : > { %1581 = vmatmul.mubr.bf16.gmra.mrb[20].mxu0 %v3676_v19 }
 0x192   : > { %1596 = vmatpush1.bf16.msra.mxu0 %v3677_v34  ;;  %1623 = vmatprep.mubr.bf16.mxu0 %v3678_v2 }
 0x193   : > { %1597 = vmatprep.subr.bf16.mxu0 %v3679_v45 }
 0x196   : > { %1598 = vmatpush1.bf16.msra.mxu0 %v3680_v1 }
 0x197   : > { %1599 = vmatprep.subr.bf16.mxu0 %v3212_v47  ;;  %v3682_v47 = vld [vmem:[#allocation33_spill] sm:$0xff] }
 0x19a   : > { %1600 = vmatpush1.bf16.msra.mxu0 %v3223_v3  ;;  %v3683_v3 = vld [vmem:[#allocation34_spill] sm:$0xff] }
 0x19b   : > { %1601 = vmatprep.subr.bf16.mxu0 %v3232_v6  ;;  %v3684_v6 = vld [vmem:[#allocation35_spill] sm:$0xff] }
 0x19e   : > { %1602 = vmatpush1.bf16.msra.mxu0 %v3245_v8  ;;  %v3685_v8 = vld [vmem:[#allocation36_spill] sm:$0xff] }
 0x19f   : > { %1603 = vmatprep.subr.bf16.mxu0 %v3252_v13  ;;  %v3686_v13 = vld [vmem:[#allocation32_spill] sm:$0xff] }
 0x1a2   : > { %1604 = vmatpush1.bf16.msra.mxu0 %v3259_v63  ;;  %v3687_v63 = vld [vmem:[#allocation30_spill] sm:$0xff] }
 0x1a3   : > { %1605 = vmatprep.subr.bf16.mxu0 %v3266_v14  ;;  %v3688_v14 = vpack.c.bf16 %v3686_v13, %v3687_v63 }
 0x1a6   : > { %1606 = vmatpush1.bf16.msra.mxu0 %v3273_v15  ;;  %v2503_v15 = vmov 1966171168  }
 0x1a7   : > { %1607 = vmatprep.subr.bf16.mxu0 %v3280_v16  ;;  %v1829_v16 = vunpack.c.l.s4 %v2503_v15 }
 0x1aa   : > { %1608 = vmatpush1.bf16.msra.mxu0 %v3289_v17  ;;  %v1830_v17 = vunpack.c.0.s8 %v1829_v16 }
 0x1ab   : > { %1609 = vmatprep.subr.bf16.mxu0 %v3681_v0 }
 0x1ac   : > { %v1833_v12 = vsub.s32 %v1830_v17, %v2575_v4 }
 0x1ae   : > { %1610 = vmatpush1.bf16.msra.mxu0 %v3682_v47 }
 0x1af   : > { %1611 = vmatprep.subr.bf16.mxu0 %v3683_v3 }
 0x1b2   : > { %1612 = vmatpush1.bf16.msra.mxu0 %v3684_v6 }
 0x1b3   : > { %1613 = vmatprep.subr.bf16.mxu0 %v3346_v24 }
 0x1b6   : > { %1614 = vmatpush1.bf16.msra.mxu0 %v3355_v21 }
 0x1b7   : > { %1615 = vmatprep.subr.bf16.mxu0 %v3364_v26 }
 0x1ba   : > { %1616 = vmatpush1.bf16.msra.mxu0 %v3379_v29 }
 0x1bb   : > { %1617 = vmatprep.subr.bf16.mxu0 %v3386_v30  ;;  %v3689_v30 = vlaneseq }
 0x1bd   : > { %vm1846_vm11 = vcmp.lt.s32.totalorder %v3689_v30, 256 }
 0x1be   : > { %1618 = vmatpush1.bf16.msra.mxu0 %v3685_v8 }
 0x1bf   : > { %1619 = vmatprep.subr.bf16.mxu0 %v3400_v31 }
 0x1c2   : > { %1620 = vmatpush1.bf16.msra.mxu0 %v3407_v32  ;;  %v768_v32 = vld [vmem:[#allocation2] sm:$0xff] }
 0x1c3   : > { %1621 = vmatprep.subr.bf16.mxu0 %v3414_v33  ;;  %v769_v33 = vld [vmem:[#allocation2 + $0x8] sm:$0xff] }
 0x1c6   : > { %1622 = vmatpush1.bf16.msra.mxu0 %v3424_v22 }
 0x1c9   : > { %1624 = vmatmul.mubr.bf16.vlgmr.msra.gmra.mrb[16].mxu0 %v3688_v14 }
 0x1ca   : > { %1633 = vmatprep.mubr.bf16.mxu0 %v791_v42 }
 0x1d1   : > { %1634 = vmatmul.mubr.bf16.gmra.mrb[20].mxu0 %v790_v39 }
 0x213   : > { %v1818_v7 = vpop.f32.mrb[16].mxu1 }
 0x214   : > { %v1820_v20 = vpop.f32.mrb[17].mxu1 }
 0x215   : > { %v1827_v21 = vcombine.low %v1818_v7, %v1820_v20  ;;  %v1822_v22 = vpop.f32.mrb[18].mxu1 }
 0x216   : > { %v1823_v24 = vpop.f32.mrb[19].mxu1 }
 0x217   : > { %v1834_v26 = vrot.slane %v1827_v21, %v1833_v12 }
 0x219   : > { %v1841_v29 = vrot.slane %v1834_v26, %v1833_v12 }
 0x21b   : > { %v1843_v31 = vadd.f32 %v1841_v29, %v1660_v28 }
 0x21d   : > { %1848 = vst.msk [vmem:[#allocation3] sm:$0x3] %vm1846_vm11, %v1843_v31 }
 0x224   : > { %v1861_v56 = vld [vmem:[#allocation3] sm:$0x3] (!%p2176_p8) }
 0x225   : > { %v1862_v57 = vmax.f32 (!%p2176_p8), %v1861_v56, 1.0 }
 0x227   : > { %v1867_v59 = vrot.slane (!%p2176_p8), %v1862_v57, %v3690_v58  ;;  %v1871_v61 = vrot.slane (!%p2176_p8), %v1862_v57, %v3691_v60 }
 0x229   : > { %2455 = vrcp.f32 (!%p2176_p8), %v1867_v59 }
 0x22a   : > { %2457 = vrcp.f32 (!%p2176_p8), %v1871_v61 }
 0x233   : > { %v2456_v34 = vpop.eup (!%p2176_p8), %2455 }
 0x234   : > { %v2458_v2 = vpop.eup (!%p2176_p8), %2457 }
 0x29c   : > { %v1625_v35 = vpop.f32.mrb[16].mxu0 }
 0x29d   : > { %v1644_v36 = vadd.f32 %v1625_v35, %v768_v32  ;;  %v1627_v37 = vpop.f32.mrb[17].mxu0 }
 0x29e   : > { %v1645_v39 = vadd.f32 %v1627_v37, %v769_v33  ;;  %v1629_v4 = vpop.f32.mrb[18].mxu0 }
 0x29f   : > { %1652 = vst [vmem:[#allocation2] sm:$0xff] %v1644_v36  ;;  %v1646_v40 = vadd.f32 %v1629_v4, %v770_v27  ;;  %v1631_v41 = vpop.f32.mrb[19].mxu0 }
 0x2a0   : > { %1653 = vst [vmem:[#allocation2 + $0x8] sm:$0xff] %v1645_v39  ;;  %v1647_v42 = vadd.f32 %v1631_v41, %v771_v38 }
 0x2a1   : > { %1654 = vst [vmem:[#allocation2 + $0x10] sm:$0xff] %v1646_v40 }
 0x2a2   : > { %1655 = vst [vmem:[#allocation2 + $0x18] sm:$0xff] %v1647_v42 }
 0x2a4   : > { %v1635_v46 = vpop.f32.mrb[20].mxu0  ;;  %1852 = sbr.rel (%p2176_p8) target bundleno = 693 (0x2b5), region = 40 }
 0x2a5   : > { %v1648_v23 = vadd.f32 %v1635_v46, %v772_v9  ;;  %v1637_v49 = vpop.f32.mrb[21].mxu0 }
 0x2a6   : > { %v1649_v51 = vadd.f32 %v1637_v49, %v773_v44  ;;  %v1639_v52 = vpop.f32.mrb[22].mxu0  ;;  %v1853_v62 = vld [vmem:[#allocation2] sm:$0xff] (!%p2176_p8) }
 0x2a7   : > { %1656 = vst [vmem:[#allocation2 + $0x20] sm:$0xff] %v1648_v23  ;;  %v1650_v53 = vadd.f32 %v1639_v52, %v774_v10  ;;  %v1641_v54 = vpop.f32.mrb[23].mxu0  ;;  %v1854_v48 = vld [vmem:[#allocation2 + $0x8] sm:$0xff] (!%p2176_p8)  ;;  %v1875_v45 = vmul.f32 (!%p2176_p8), %v2456_v34, %v1853_v62 }
 0x2a8   : > { %1657 = vst [vmem:[#allocation2 + $0x28] sm:$0xff] %v1649_v51  ;;  %v1651_v55 = vadd.f32 %v1641_v54, %v775_v50  ;;  %v1855_v25 = vld [vmem:[#allocation2 + $0x10] sm:$0xff] (!%p2176_p8)  ;;  %v1877_v3 = vmul.f32 (!%p2176_p8), %v2458_v2, %v1854_v48 }
 0x2a9   : > { %1658 = vst [vmem:[#allocation2 + $0x30] sm:$0xff] %v1650_v53  ;;  %v1856_v11 = vld [vmem:[#allocation2 + $0x18] sm:$0xff] (!%p2176_p8)  ;;  %v1878_v1 = vmul.f32 (!%p2176_p8), %v2456_v34, %v1855_v25  ;;  %1884 = vst [vmem:[%s2569_s9] sm:$0xff] (!%p2176_p8), %v1875_v45 }
 0x2aa   : > { %1659 = vst [vmem:[#allocation2 + $0x38] sm:$0xff] %v1651_v55  ;;  %v1879_v6 = vmul.f32 (!%p2176_p8), %v2458_v2, %v1856_v11  ;;  %1885 = vst [vmem:[%s2569_s9 + $0x8] sm:$0xff] (!%p2176_p8), %v1877_v3 }
 0x2ab   : > { %1886 = vst [vmem:[%s2569_s9 + $0x10] sm:$0xff] %v1878_v1 }
 0x2ac   : > { %1887 = vst [vmem:[%s2569_s9 + $0x18] sm:$0xff] %v1879_v6 }
 0x2ae   : > { %v1857_v5 = vld [vmem:[#allocation2 + $0x20] sm:$0xff] }
 0x2af   : > { %v1858_v18 = vld [vmem:[#allocation2 + $0x28] sm:$0xff]  ;;  %v1880_v0 = vmul.f32 %v2456_v34, %v1857_v5 }
 0x2b0   : > { %v1859_v43 = vld [vmem:[#allocation2 + $0x30] sm:$0xff]  ;;  %v1881_v8 = vmul.f32 %v2458_v2, %v1858_v18 }
 0x2b1   : > { %v1860_v19 = vld [vmem:[#allocation2 + $0x38] sm:$0xff]  ;;  %v1882_v47 = vmul.f32 %v2456_v34, %v1859_v43  ;;  %1888 = vst [vmem:[%s2569_s9 + $0x20] sm:$0xff] %v1880_v0 }
 0x2b2   : > { %v1883_v13 = vmul.f32 %v2458_v2, %v1860_v19  ;;  %1889 = vst [vmem:[%s2569_s9 + $0x28] sm:$0xff] %v1881_v8 }
 0x2b3   : > { %1890 = vst [vmem:[%s2569_s9 + $0x30] sm:$0xff] %v1882_v47 }
 0x2b4   : > { %1891 = vst [vmem:[%s2569_s9 + $0x38] sm:$0xff] %v1883_v13 }
 0x2b5 PF: > { %s13_s16 = sadd.s32 1, %s2497_s16   ;;  %s3692_s12 = smov %s2489_s14 }
 0x2b6   : > { %p10_p9 = scmp.ge.s32.totalorder %s13_s16, 6   ;;  %s3693_s13 = smov %s2493_s15 }
 0x2b7   : > { %s3694_s14 = smov %s3697_s17  ;;  %s3695_s15 = smov %s3701_s18 }
 0x2b8   :  { %12 = sbr.rel (!%p10_p9) target bundleno = 3 (0x3), region = 73 }

</bundles_post_ra>
